<compile_context>
chip_gen: v5e
topology: v5e:2x2
jax: 0.10.0
libtpu: 0.0.40
codegen_flags: <defaults>
</compile_context>

<pallas_src>
import functools

import jax
import jax.numpy as jnp
import numpy as np
from jax import lax
from jax.experimental import pallas as pl
from jax.experimental.pallas import tpu as pltpu

BN_EPS = 1e-5


def _conv_stats_kernel(xp_ref, w_ref, ypre_ref, sum_ref, sumsq_ref, pooled_ref,
                       *, H, W, Wp_out, KH, KW, dil, TH, mask_tail):
    """Phase 1: dilated conv + BN partial stats + bypass pooling partials.

    Grid = (N, H_pad // TH).  Per step:
      xp_ref     : (1, Hp, Wp, Cin)     padded NHWC input (bf16), one batch element
      w_ref      : (KH*KW, Cin, Cp)     per-tap conv weights, bf16, Cout zero-padded to Cp
      ypre_ref   : (1, TH, Wp_out, Cp)  pre-BN conv output tile (bf16)
      sum_ref    : (1, 1, Cp)           per-channel sum, accumulated across h tiles (f32)
      sumsq_ref  : (1, 1, Cp)           per-channel sum of squares, accumulated across h
      pooled_ref : (1, 1, Cin)          per-image input sum over (H, W), accumulated across h
    """
    Cin = xp_ref.shape[-1]
    Cp = ypre_ref.shape[-1]
    h = pl.program_id(1)
    row0 = pl.multiple_of(h * TH, TH)
    center = (KH // 2) * KW + (KW // 2)

    acc = None        # f32 MXU accumulator (TH*Wp_out, Cp); init from first tap (no zero pass)
    psum = None
    for ky in range(KH):
        for kx in range(KW):
            # Read the tap window straight from the resident bf16 image (no per-tap casts).
            tap = xp_ref[0, pl.ds(row0 + ky * dil, TH), pl.ds(kx * dil, Wp_out), :]
            # Wp_out % 8 == 0, so collapsing (TH, Wp_out) is a free relayout.
            tap2 = tap.reshape(TH * Wp_out, Cin)
            if ky * KW + kx == center:
                # center tap == the un-padded interior: reuse it for the bypass avg-pool
                # (padded rows/cols of the input are zero, so no masking is needed here).
                psum = jnp.sum(tap2.astype(jnp.float32), axis=0, keepdims=True)   # (1, Cin)
            d = jnp.dot(tap2, w_ref[ky * KW + kx], preferred_element_type=jnp.float32)
            acc = d if acc is None else acc + d

    acc3 = acc.reshape(TH, Wp_out, Cp)
    if mask_tail:
        # Output rows >= H / cols >= W are tile padding: zero them so they do not pollute
        # the BN statistics (the junk region is sliced away in the wrapper anyway).
        rows = row0 + lax.broadcasted_iota(jnp.int32, (TH, Wp_out, Cp), 0)
        cols = lax.broadcasted_iota(jnp.int32, (TH, Wp_out, Cp), 1)
        acc3 = jnp.where((rows < H) & (cols < W), acc3, 0.0)
        acc = acc3.reshape(TH * Wp_out, Cp)

    ypre_ref[0] = acc3.astype(ypre_ref.dtype)            # bf16 storage (HBM traffic halved)

    s = jnp.sum(acc, axis=0, keepdims=True)              # (1, Cp)  f32
    sq = jnp.sum(acc * acc, axis=0, keepdims=True)       # (1, Cp)  f32

    @pl.when(h == 0)
    def _():
        sum_ref[...] = jnp.zeros_like(sum_ref)
        sumsq_ref[...] = jnp.zeros_like(sumsq_ref)
        pooled_ref[...] = jnp.zeros_like(pooled_ref)

    sum_ref[0] = sum_ref[0] + s
    sumsq_ref[0] = sumsq_ref[0] + sq
    pooled_ref[0] = pooled_ref[0] + psum


def _bn_silu_gate_kernel(ypre_ref, scale_ref, shift_ref, gate_ref, out_ref):
    """Phase 2: out = silu(ypre * scale + shift) * gate, per (batch, row-block) tile."""
    y = ypre_ref[0].astype(jnp.float32) * scale_ref[...] + shift_ref[...]
    y = y * jax.nn.sigmoid(y)                             # SiLU (EUP)
    out_ref[0] = (y * gate_ref[0]).astype(out_ref.dtype)


def _round_up(x, m):
    return ((x + m - 1) // m) * m


def _vmem_limit_bytes():
    """Chip-aware VMEM budget (v7x has 64 MiB vs 128 MiB on v5e/v6e)."""
    try:
        cap = int(pltpu.get_tpu_info().vmem_capacity_bytes)
    except Exception:
        cap = 64 << 20            # conservative fallback, safe on every generation
    return min((cap * 3) // 4, 100 << 20)


def _pick_row_tile(H, per_row_bytes, budget_bytes):
    """Phase-1 row tile: prefer a divisor of H (no padding); otherwise take the largest
    tile under budget and mask the padded tail rows inside the kernel."""
    t_max = int(max(1, min(H, budget_bytes // max(per_row_bytes, 1))))
    best_div = max(t for t in range(1, t_max + 1) if H % t == 0)
    return best_div if best_div * 2 >= t_max else t_max


def _pick_divisor_tile(n, per_unit_bytes, budget_bytes):
    t = int(max(1, min(n, budget_bytes // max(per_unit_bytes, 1))))
    while n % t != 0:
        t -= 1
    return t


def aspp_conv_forward(x_nchw, params, *, dilation, row_tile=None):
    """Pallas implementation of ASPPConv.forward. Input/output are NCHW (torch layout)."""
    N, Cin, H, W = x_nchw.shape
    w_conv = params["w_conv"]                        # (Cout, Cin, KH, KW) torch layout
    Cout, _, KH, KW = w_conv.shape
    pad = dilation if KH == 3 else 0
    dil = dilation if KH == 3 else 1
    Cp = _round_up(Cout, 128)                        # lane-dense output channel count
    Wp_out = _round_up(W, 8)                         # sublane-friendly output width

    vmem_limit = _vmem_limit_bytes()

    # ---------- phase-1 row tile ----------
    if row_tile is not None:
        TH = max(1, int(row_tile))
    else:
        img_bytes = (_round_up(H, 8) + 2 * pad) * (Wp_out + 2 * pad) * Cin * 2
        fixed = 2 * img_bytes + 2 * KH * KW * Cin * Cp * 2 + (2 << 20)
        per_row = Wp_out * (Cp * 12 + Cin * 8)       # f32 acc + temps + dbuf bf16 y_pre tile
        TH = _pick_row_tile(H, per_row, max(per_row, vmem_limit - fixed - (4 << 20)))
    nH = int(pl.cdiv(H, TH))
    H_pad = nH * TH
    mask_tail = (H_pad != H) or (Wp_out != W)

    # ---- layout glue: NCHW -> NHWC in bf16 (half-size transpose/pad passes), zero pad ----
    x_nhwc = jnp.transpose(x_nchw.astype(jnp.bfloat16), (0, 2, 3, 1))
    xp = jnp.pad(x_nhwc, ((0, 0), (pad, pad + H_pad - H), (pad, pad + Wp_out - W), (0, 0)))
    Hp, Wp = H_pad + 2 * pad, Wp_out + 2 * pad

    # ---- parameter plumbing: per-tap (Cin, Cp) bf16 MXU operands ----
    wk = jnp.transpose(w_conv, (2, 3, 1, 0)).reshape(KH * KW, Cin, Cout)
    wk = jnp.pad(wk, ((0, 0), (0, 0), (0, Cp - Cout))).astype(jnp.bfloat16)

    # ---------- phase 1: conv + partial BN stats + bypass pooling ----------
    # NOTE(v7x): megacore parallelism comes from the batch axis; for N == 1 the h axis would
    # need to be split (with per-half stat outputs reduced in the glue) to use both cores.
    k1 = functools.partial(_conv_stats_kernel, H=H, W=W, Wp_out=Wp_out,
                           KH=KH, KW=KW, dil=dil, TH=TH, mask_tail=mask_tail)
    y_pre, csum, csumsq, pooled = pl.pallas_call(
        k1,
        out_shape=(
            jax.ShapeDtypeStruct((N, H_pad, Wp_out, Cp), jnp.bfloat16),  # pre-BN conv output
            jax.ShapeDtypeStruct((N, 1, Cp), jnp.float32),               # per-image channel sums
            jax.ShapeDtypeStruct((N, 1, Cp), jnp.float32),               # per-image channel sumsq
            jax.ShapeDtypeStruct((N, 1, Cin), jnp.float32),              # per-image input pool sums
        ),
        grid_spec=pltpu.PrefetchScalarGridSpec(
            num_scalar_prefetch=0,
            grid=(N, nH),
            in_specs=[
                pl.BlockSpec((1, Hp, Wp, Cin), lambda n, h: (n, 0, 0, 0)),
                pl.BlockSpec((KH * KW, Cin, Cp), lambda n, h: (0, 0, 0)),
            ],
            out_specs=[
                pl.BlockSpec((1, TH, Wp_out, Cp), lambda n, h: (n, h, 0, 0)),
                pl.BlockSpec((1, 1, Cp), lambda n, h: (n, 0, 0)),
                pl.BlockSpec((1, 1, Cp), lambda n, h: (n, 0, 0)),
                pl.BlockSpec((1, 1, Cin), lambda n, h: (n, 0, 0)),
            ],
        ),
        compiler_params=pltpu.CompilerParams(
            dimension_semantics=("parallel", "arbitrary"),
            vmem_limit_bytes=vmem_limit,
        ),
    )(xp, wk)

    # ---- tiny cross-tile glue (all O(N*C)): finalize BN stats + bypass gate ----
    cnt = jnp.float32(N * H * W)
    sum_c = jnp.sum(csum[:, 0, :], axis=0)
    sumsq_c = jnp.sum(csumsq[:, 0, :], axis=0)
    mean = sum_c / cnt
    # TODO(synk): E[x^2]-E[x]^2 in f32 can cancel for large-mean activations; switch to
    # per-tile centered partials if BN stats ever look off at very large N*H*W.
    var = jnp.maximum(sumsq_c / cnt - mean * mean, 0.0)        # biased batch variance
    gamma = jnp.pad(params["bn_gamma"].astype(jnp.float32), (0, Cp - Cout))
    beta = jnp.pad(params["bn_beta"].astype(jnp.float32), (0, Cp - Cout))
    scale = (gamma * lax.rsqrt(var + BN_EPS)).reshape(1, Cp)
    shift = beta.reshape(1, Cp) - mean.reshape(1, Cp) * scale

    pooled_mean = pooled[:, 0, :] / jnp.float32(H * W)                      # (N, Cin)
    wadj = params["w_adjust"][:, :, 0, 0].astype(jnp.float32)               # (Cout, Cin)
    adj = jnp.matmul(pooled_mean, wadj.T, precision=lax.Precision.HIGHEST)  # (N, Cout)
    wb = params["w_bypass"][0, 0].astype(jnp.float32)                       # (3,)
    adj_pad = jnp.pad(adj, ((0, 0), (1, 1)))
    gate = jax.nn.sigmoid(wb[0] * adj_pad[:, :-2] + wb[1] * adj_pad[:, 1:-1]
                          + wb[2] * adj_pad[:, 2:])                         # (N, Cout)
    gate = jnp.pad(gate, ((0, 0), (0, Cp - Cout))).reshape(N, 1, Cp)

    # ---------- phase 2: BN apply + SiLU + channel gate (own, larger tile) ----------
    out_dtype = x_nchw.dtype
    out_bytes = jnp.dtype(out_dtype).itemsize
    per_row2 = Wp_out * Cp * 2 * (2 + out_bytes)       # double-buffered bf16 input + output
    TH2 = _pick_divisor_tile(H_pad, per_row2, max(per_row2, vmem_limit - (4 << 20)))
    nH2 = H_pad // TH2

    out_nhwc = pl.pallas_call(
        _bn_silu_gate_kernel,
        out_shape=jax.ShapeDtypeStruct((N, H_pad, Wp_out, Cp), out_dtype),
        grid_spec=pltpu.PrefetchScalarGridSpec(
            num_scalar_prefetch=0,
            grid=(N, nH2),
            in_specs=[
                pl.BlockSpec((1, TH2, Wp_out, Cp), lambda n, h: (n, h, 0, 0)),
                pl.BlockSpec((1, Cp), lambda n, h: (0, 0)),
                pl.BlockSpec((1, Cp), lambda n, h: (0, 0)),
                pl.BlockSpec((1, 1, Cp), lambda n, h: (n, 0, 0)),
            ],
            out_specs=pl.BlockSpec((1, TH2, Wp_out, Cp), lambda n, h: (n, h, 0, 0)),
        ),
        compiler_params=pltpu.CompilerParams(
            dimension_semantics=("parallel", "parallel"),
            vmem_limit_bytes=vmem_limit,
        ),
    )(y_pre, scale, shift, gate)

    # keep the kernel output lane-dense NHWC; layout back to the torch NCHW contract here.
    return jnp.transpose(out_nhwc[:, :H, :W, :Cout], (0, 3, 1, 2))


def aspp_conv_reference(x_nchw, params, *, dilation):
    """Pure-JAX reference (independent of the kernel's tap decomposition)."""
    w_conv = params["w_conv"]
    Cout, Cin, KH, KW = w_conv.shape
    pad = dilation if KH == 3 else 0
    rhs_dil = (dilation, dilation) if KH == 3 else (1, 1)
    out = lax.conv_general_dilated(
        x_nchw, w_conv, window_strides=(1, 1),
        padding=((pad, pad), (pad, pad)), rhs_dilation=rhs_dil,
        dimension_numbers=("NCHW", "OIHW", "NCHW"),
        precision=lax.Precision.HIGHEST)
    mean = out.mean(axis=(0, 2, 3), keepdims=True)
    var = ((out - mean) ** 2).mean(axis=(0, 2, 3), keepdims=True)
    y = (out - mean) / jnp.sqrt(var + BN_EPS)
    y = y * params["bn_gamma"][None, :, None, None] + params["bn_beta"][None, :, None, None]
    y = y * jax.nn.sigmoid(y)

    pooled = x_nchw.mean(axis=(2, 3))                                # (N, Cin)
    adj = pooled @ params["w_adjust"][:, :, 0, 0].T                  # (N, Cout)
    wb = params["w_bypass"][0, 0]
    adj_pad = jnp.pad(adj, ((0, 0), (1, 1)))
    gate = jax.nn.sigmoid(wb[0] * adj_pad[:, :-2] + wb[1] * adj_pad[:, 1:-1]
                          + wb[2] * adj_pad[:, 2:])
    return y * gate[:, :, None, None]


def _make_params(key, Cin, Cout, KH, KW):
    kc, kg, kb, ka, kp = jax.random.split(key, 5)
    return dict(
        w_conv=0.3 * jax.random.normal(kc, (Cout, Cin, KH, KW), jnp.float32),
        bn_gamma=1.0 + 0.1 * jax.random.normal(kg, (Cout,), jnp.float32),
        bn_beta=0.1 * jax.random.normal(kb, (Cout,), jnp.float32),
        w_adjust=0.3 * jax.random.normal(ka, (Cout, Cin, 1, 1), jnp.float32),
        w_bypass=0.3 * jax.random.normal(kp, (1, 1, 3), jnp.float32),
    )


if __name__ == "__main__":
    def _check(key, N, Cin, Cout, H, W, dilation, row_tile):
        KH = KW = 3 if dilation > 1 else 1
        kx_, kp_ = jax.random.split(key)
        x = jax.random.normal(kx_, (N, Cin, H, W), jnp.float32)
        params = _make_params(kp_, Cin, Cout, KH, KW)
        fwd = jax.jit(functools.partial(aspp_conv_forward, dilation=dilation,
                                        row_tile=row_tile))
        out = jax.block_until_ready(fwd(x, params))
        ref = jax.block_until_ready(aspp_conv_reference(x, params, dilation=dilation))
        # bf16 MXU operands + bf16 y_pre storage vs the f32 HIGHEST reference -> loose tol.
        np.testing.assert_allclose(np.asarray(out), np.asarray(ref), rtol=4e-2, atol=4e-2)

    key = jax.random.PRNGKey(0)
    k1, k2 = jax.random.split(key)
    # main case: row_tile=8 forces several H tiles so the cross-tile BN accumulation runs.
    _check(k1, N=2, Cin=4, Cout=8, H=16, W=16, dilation=2, row_tile=8)
    # awkward-shape case: H/W not tile-aligned (in-kernel tail masking) and N == 1.
    _check(k2, N=1, Cin=3, Cout=5, H=13, W=10, dilation=2, row_tile=8)
    print("KERNEL_OK")
</pallas_src>

<mosaic_0001>
module attributes {stable_mosaic.version = 11 : i64} {
  func.func @_conv_stats_kernel(%arg0: i32, %arg1: i32, %arg2: memref<1x20x20x4xbf16, #tpu.memory_space<vmem>>, %arg3: memref<9x4x128xbf16, #tpu.memory_space<vmem>>, %arg4: memref<1x8x16x128xbf16, #tpu.memory_space<vmem>>, %arg5: memref<1x1x128xf32, #tpu.memory_space<vmem>>, %arg6: memref<1x1x128xf32, #tpu.memory_space<vmem>>, %arg7: memref<1x1x4xf32, #tpu.memory_space<vmem>>) attributes {dimension_semantics = [#tpu.dimension_semantics<parallel>, #tpu.dimension_semantics<arbitrary>], iteration_bounds = array<i64: 2, 2>, scalar_prefetch = 0 : i64, scratch_operands = 0 : i64, tpu.core_type = #tpu.core_type<tc>, window_params = [{transform_indices = @transform_0, window_bounds = array<i64: 1, 20, 20, 4>}, {pipeline_mode = #tpu.pipeline_mode<synchronous>, transform_indices = @transform_1, window_bounds = array<i64: 9, 4, 128>}, {transform_indices = @transform_2, window_bounds = array<i64: 1, 8, 16, 128>}, {transform_indices = @transform_3, window_bounds = array<i64: 1, 1, 128>}, {transform_indices = @transform_4, window_bounds = array<i64: 1, 1, 128>}, {transform_indices = @transform_5, window_bounds = array<i64: 1, 1, 4>}]} {
    %c8_i32 = arith.constant 8 : i32
    %0 = arith.muli %arg1, %c8_i32 : i32
    %1 = tpu.assume_multiple %0, 8 : i32
    %c0_i32 = arith.constant 0 : i32
    %2 = arith.addi %1, %c0_i32 : i32
    %c0 = arith.constant 0 : index
    %3 = arith.index_cast %2 : i32 to index
    %c0_0 = arith.constant 0 : index
    %c0_1 = arith.constant 0 : index
    %4 = vector.load %arg2[%c0, %3, %c0_0, %c0_1] : memref<1x20x20x4xbf16, #tpu.memory_space<vmem>>, vector<1x8x16x4xbf16>
    %5 = vector.shape_cast %4 : vector<1x8x16x4xbf16> to vector<8x16x4xbf16>
    %6 = vector.shape_cast %5 : vector<8x16x4xbf16> to vector<128x4xbf16>
    %c0_2 = arith.constant 0 : index
    %c0_3 = arith.constant 0 : index
    %c0_4 = arith.constant 0 : index
    %7 = vector.load %arg3[%c0_2, %c0_3, %c0_4] : memref<9x4x128xbf16, #tpu.memory_space<vmem>>, vector<1x4x128xbf16>
    %8 = vector.shape_cast %7 : vector<1x4x128xbf16> to vector<4x128xbf16>
    %cst = arith.constant dense<0.000000e+00> : vector<128x128xf32>
    %9 = tpu.matmul %6, %8, %cst {dimension_numbers = #tpu.dot_dimension_numbers<[1], [0], [0], [1], [0, 0, 1, 1], [], []>} : vector<128x4xbf16>, vector<4x128xbf16>, vector<128x128xf32> -> vector<128x128xf32>
    %c0_i32_5 = arith.constant 0 : i32
    %10 = arith.addi %1, %c0_i32_5 : i32
    %c0_6 = arith.constant 0 : index
    %11 = arith.index_cast %10 : i32 to index
    %c2 = arith.constant 2 : index
    %c0_7 = arith.constant 0 : index
    %12 = vector.load %arg2[%c0_6, %11, %c2, %c0_7] : memref<1x20x20x4xbf16, #tpu.memory_space<vmem>>, vector<1x8x16x4xbf16>
    %13 = vector.shape_cast %12 : vector<1x8x16x4xbf16> to vector<8x16x4xbf16>
    %14 = vector.shape_cast %13 : vector<8x16x4xbf16> to vector<128x4xbf16>
    %c1 = arith.constant 1 : index
    %c0_8 = arith.constant 0 : index
    %c0_9 = arith.constant 0 : index
    %15 = vector.load %arg3[%c1, %c0_8, %c0_9] : memref<9x4x128xbf16, #tpu.memory_space<vmem>>, vector<1x4x128xbf16>
    %16 = vector.shape_cast %15 : vector<1x4x128xbf16> to vector<4x128xbf16>
    %cst_10 = arith.constant dense<0.000000e+00> : vector<128x128xf32>
    %17 = tpu.matmul %14, %16, %cst_10 {dimension_numbers = #tpu.dot_dimension_numbers<[1], [0], [0], [1], [0, 0, 1, 1], [], []>} : vector<128x4xbf16>, vector<4x128xbf16>, vector<128x128xf32> -> vector<128x128xf32>
    %18 = arith.addf %9, %17 : vector<128x128xf32>
    %c0_i32_11 = arith.constant 0 : i32
    %19 = arith.addi %1, %c0_i32_11 : i32
    %c0_12 = arith.constant 0 : index
    %20 = arith.index_cast %19 : i32 to index
    %c4 = arith.constant 4 : index
    %c0_13 = arith.constant 0 : index
    %21 = vector.load %arg2[%c0_12, %20, %c4, %c0_13] : memref<1x20x20x4xbf16, #tpu.memory_space<vmem>>, vector<1x8x16x4xbf16>
    %22 = vector.shape_cast %21 : vector<1x8x16x4xbf16> to vector<8x16x4xbf16>
    %23 = vector.shape_cast %22 : vector<8x16x4xbf16> to vector<128x4xbf16>
    %c2_14 = arith.constant 2 : index
    %c0_15 = arith.constant 0 : index
    %c0_16 = arith.constant 0 : index
    %24 = vector.load %arg3[%c2_14, %c0_15, %c0_16] : memref<9x4x128xbf16, #tpu.memory_space<vmem>>, vector<1x4x128xbf16>
    %25 = vector.shape_cast %24 : vector<1x4x128xbf16> to vector<4x128xbf16>
    %cst_17 = arith.constant dense<0.000000e+00> : vector<128x128xf32>
    %26 = tpu.matmul %23, %25, %cst_17 {dimension_numbers = #tpu.dot_dimension_numbers<[1], [0], [0], [1], [0, 0, 1, 1], [], []>} : vector<128x4xbf16>, vector<4x128xbf16>, vector<128x128xf32> -> vector<128x128xf32>
    %27 = arith.addf %18, %26 : vector<128x128xf32>
    %c2_i32 = arith.constant 2 : i32
    %28 = arith.addi %1, %c2_i32 : i32
    %c0_18 = arith.constant 0 : index
    %29 = arith.index_cast %28 : i32 to index
    %c0_19 = arith.constant 0 : index
    %c0_20 = arith.constant 0 : index
    %30 = vector.load %arg2[%c0_18, %29, %c0_19, %c0_20] : memref<1x20x20x4xbf16, #tpu.memory_space<vmem>>, vector<1x8x16x4xbf16>
    %31 = vector.shape_cast %30 : vector<1x8x16x4xbf16> to vector<8x16x4xbf16>
    %32 = vector.shape_cast %31 : vector<8x16x4xbf16> to vector<128x4xbf16>
    %c3 = arith.constant 3 : index
    %c0_21 = arith.constant 0 : index
    %c0_22 = arith.constant 0 : index
    %33 = vector.load %arg3[%c3, %c0_21, %c0_22] : memref<9x4x128xbf16, #tpu.memory_space<vmem>>, vector<1x4x128xbf16>
    %34 = vector.shape_cast %33 : vector<1x4x128xbf16> to vector<4x128xbf16>
    %cst_23 = arith.constant dense<0.000000e+00> : vector<128x128xf32>
    %35 = tpu.matmul %32, %34, %cst_23 {dimension_numbers = #tpu.dot_dimension_numbers<[1], [0], [0], [1], [0, 0, 1, 1], [], []>} : vector<128x4xbf16>, vector<4x128xbf16>, vector<128x128xf32> -> vector<128x128xf32>
    %36 = arith.addf %27, %35 : vector<128x128xf32>
    %c2_i32_24 = arith.constant 2 : i32
    %37 = arith.addi %1, %c2_i32_24 : i32
    %c0_25 = arith.constant 0 : index
    %38 = arith.index_cast %37 : i32 to index
    %c2_26 = arith.constant 2 : index
    %c0_27 = arith.constant 0 : index
    %39 = vector.load %arg2[%c0_25, %38, %c2_26, %c0_27] : memref<1x20x20x4xbf16, #tpu.memory_space<vmem>>, vector<1x8x16x4xbf16>
    %40 = vector.shape_cast %39 : vector<1x8x16x4xbf16> to vector<8x16x4xbf16>
    %41 = vector.shape_cast %40 : vector<8x16x4xbf16> to vector<128x4xbf16>
    %42 = arith.extf %41 : vector<128x4xbf16> to vector<128x4xf32>
    %cst_28 = arith.constant dense<0.000000e+00> : vector<4xf32>
    %43 = vector.multi_reduction <add>, %42, %cst_28 [0] : vector<128x4xf32> to vector<4xf32>
    %44 = vector.shape_cast %43 : vector<4xf32> to vector<1x4xf32>
    %c4_29 = arith.constant 4 : index
    %c0_30 = arith.constant 0 : index
    %c0_31 = arith.constant 0 : index
    %45 = vector.load %arg3[%c4_29, %c0_30, %c0_31] : memref<9x4x128xbf16, #tpu.memory_space<vmem>>, vector<1x4x128xbf16>
    %46 = vector.shape_cast %45 : vector<1x4x128xbf16> to vector<4x128xbf16>
    %cst_32 = arith.constant dense<0.000000e+00> : vector<128x128xf32>
    %47 = tpu.matmul %41, %46, %cst_32 {dimension_numbers = #tpu.dot_dimension_numbers<[1], [0], [0], [1], [0, 0, 1, 1], [], []>} : vector<128x4xbf16>, vector<4x128xbf16>, vector<128x128xf32> -> vector<128x128xf32>
    %48 = arith.addf %36, %47 : vector<128x128xf32>
    %c2_i32_33 = arith.constant 2 : i32
    %49 = arith.addi %1, %c2_i32_33 : i32
    %c0_34 = arith.constant 0 : index
    %50 = arith.index_cast %49 : i32 to index
    %c4_35 = arith.constant 4 : index
    %c0_36 = arith.constant 0 : index
    %51 = vector.load %arg2[%c0_34, %50, %c4_35, %c0_36] : memref<1x20x20x4xbf16, #tpu.memory_space<vmem>>, vector<1x8x16x4xbf16>
    %52 = vector.shape_cast %51 : vector<1x8x16x4xbf16> to vector<8x16x4xbf16>
    %53 = vector.shape_cast %52 : vector<8x16x4xbf16> to vector<128x4xbf16>
    %c5 = arith.constant 5 : index
    %c0_37 = arith.constant 0 : index
    %c0_38 = arith.constant 0 : index
    %54 = vector.load %arg3[%c5, %c0_37, %c0_38] : memref<9x4x128xbf16, #tpu.memory_space<vmem>>, vector<1x4x128xbf16>
    %55 = vector.shape_cast %54 : vector<1x4x128xbf16> to vector<4x128xbf16>
    %cst_39 = arith.constant dense<0.000000e+00> : vector<128x128xf32>
    %56 = tpu.matmul %53, %55, %cst_39 {dimension_numbers = #tpu.dot_dimension_numbers<[1], [0], [0], [1], [0, 0, 1, 1], [], []>} : vector<128x4xbf16>, vector<4x128xbf16>, vector<128x128xf32> -> vector<128x128xf32>
    %57 = arith.addf %48, %56 : vector<128x128xf32>
    %c4_i32 = arith.constant 4 : i32
    %58 = arith.addi %1, %c4_i32 : i32
    %c0_40 = arith.constant 0 : index
    %59 = arith.index_cast %58 : i32 to index
    %c0_41 = arith.constant 0 : index
    %c0_42 = arith.constant 0 : index
    %60 = vector.load %arg2[%c0_40, %59, %c0_41, %c0_42] : memref<1x20x20x4xbf16, #tpu.memory_space<vmem>>, vector<1x8x16x4xbf16>
    %61 = vector.shape_cast %60 : vector<1x8x16x4xbf16> to vector<8x16x4xbf16>
    %62 = vector.shape_cast %61 : vector<8x16x4xbf16> to vector<128x4xbf16>
    %c6 = arith.constant 6 : index
    %c0_43 = arith.constant 0 : index
    %c0_44 = arith.constant 0 : index
    %63 = vector.load %arg3[%c6, %c0_43, %c0_44] : memref<9x4x128xbf16, #tpu.memory_space<vmem>>, vector<1x4x128xbf16>
    %64 = vector.shape_cast %63 : vector<1x4x128xbf16> to vector<4x128xbf16>
    %cst_45 = arith.constant dense<0.000000e+00> : vector<128x128xf32>
    %65 = tpu.matmul %62, %64, %cst_45 {dimension_numbers = #tpu.dot_dimension_numbers<[1], [0], [0], [1], [0, 0, 1, 1], [], []>} : vector<128x4xbf16>, vector<4x128xbf16>, vector<128x128xf32> -> vector<128x128xf32>
    %66 = arith.addf %57, %65 : vector<128x128xf32>
    %c4_i32_46 = arith.constant 4 : i32
    %67 = arith.addi %1, %c4_i32_46 : i32
    %c0_47 = arith.constant 0 : index
    %68 = arith.index_cast %67 : i32 to index
    %c2_48 = arith.constant 2 : index
    %c0_49 = arith.constant 0 : index
    %69 = vector.load %arg2[%c0_47, %68, %c2_48, %c0_49] : memref<1x20x20x4xbf16, #tpu.memory_space<vmem>>, vector<1x8x16x4xbf16>
    %70 = vector.shape_cast %69 : vector<1x8x16x4xbf16> to vector<8x16x4xbf16>
    %71 = vector.shape_cast %70 : vector<8x16x4xbf16> to vector<128x4xbf16>
    %c7 = arith.constant 7 : index
    %c0_50 = arith.constant 0 : index
    %c0_51 = arith.constant 0 : index
    %72 = vector.load %arg3[%c7, %c0_50, %c0_51] : memref<9x4x128xbf16, #tpu.memory_space<vmem>>, vector<1x4x128xbf16>
    %73 = vector.shape_cast %72 : vector<1x4x128xbf16> to vector<4x128xbf16>
    %cst_52 = arith.constant dense<0.000000e+00> : vector<128x128xf32>
    %74 = tpu.matmul %71, %73, %cst_52 {dimension_numbers = #tpu.dot_dimension_numbers<[1], [0], [0], [1], [0, 0, 1, 1], [], []>} : vector<128x4xbf16>, vector<4x128xbf16>, vector<128x128xf32> -> vector<128x128xf32>
    %75 = arith.addf %66, %74 : vector<128x128xf32>
    %c4_i32_53 = arith.constant 4 : i32
    %76 = arith.addi %1, %c4_i32_53 : i32
    %c0_54 = arith.constant 0 : index
    %77 = arith.index_cast %76 : i32 to index
    %c4_55 = arith.constant 4 : index
    %c0_56 = arith.constant 0 : index
    %78 = vector.load %arg2[%c0_54, %77, %c4_55, %c0_56] : memref<1x20x20x4xbf16, #tpu.memory_space<vmem>>, vector<1x8x16x4xbf16>
    %79 = vector.shape_cast %78 : vector<1x8x16x4xbf16> to vector<8x16x4xbf16>
    %80 = vector.shape_cast %79 : vector<8x16x4xbf16> to vector<128x4xbf16>
    %c8 = arith.constant 8 : index
    %c0_57 = arith.constant 0 : index
    %c0_58 = arith.constant 0 : index
    %81 = vector.load %arg3[%c8, %c0_57, %c0_58] : memref<9x4x128xbf16, #tpu.memory_space<vmem>>, vector<1x4x128xbf16>
    %82 = vector.shape_cast %81 : vector<1x4x128xbf16> to vector<4x128xbf16>
    %cst_59 = arith.constant dense<0.000000e+00> : vector<128x128xf32>
    %83 = tpu.matmul %80, %82, %cst_59 {dimension_numbers = #tpu.dot_dimension_numbers<[1], [0], [0], [1], [0, 0, 1, 1], [], []>} : vector<128x4xbf16>, vector<4x128xbf16>, vector<128x128xf32> -> vector<128x128xf32>
    %84 = arith.addf %75, %83 : vector<128x128xf32>
    %85 = vector.shape_cast %84 : vector<128x128xf32> to vector<8x16x128xf32>
    %86 = arith.truncf %85 : vector<8x16x128xf32> to vector<8x16x128xbf16>
    %c0_60 = arith.constant 0 : index
    %c0_61 = arith.constant 0 : index
    %c0_62 = arith.constant 0 : index
    %c0_63 = arith.constant 0 : index
    %87 = vector.load %arg4[%c0_60, %c0_61, %c0_62, %c0_63] : memref<1x8x16x128xbf16, #tpu.memory_space<vmem>>, vector<1x8x16x128xbf16>
    %88 = vector.shape_cast %87 : vector<1x8x16x128xbf16> to vector<8x16x128xbf16>
    %89 = vector.shape_cast %86 : vector<8x16x128xbf16> to vector<1x8x16x128xbf16>
    tpu.vector_store %arg4[%c0_60, %c0_61, %c0_62, %c0_63], %89 {strides = array<i32>} : memref<1x8x16x128xbf16, #tpu.memory_space<vmem>>, vector<1x8x16x128xbf16>,
    %cst_64 = arith.constant dense<0.000000e+00> : vector<128xf32>
    %90 = vector.multi_reduction <add>, %84, %cst_64 [0] : vector<128x128xf32> to vector<128xf32>
    %91 = vector.shape_cast %90 : vector<128xf32> to vector<1x128xf32>
    %92 = arith.mulf %84, %84 : vector<128x128xf32>
    %cst_65 = arith.constant dense<0.000000e+00> : vector<128xf32>
    %93 = vector.multi_reduction <add>, %92, %cst_65 [0] : vector<128x128xf32> to vector<128xf32>
    %94 = vector.shape_cast %93 : vector<128xf32> to vector<1x128xf32>
    %c0_i32_66 = arith.constant 0 : i32
    %95 = arith.cmpi eq, %arg1, %c0_i32_66 : i32
    %96 = arith.extui %95 : i1 to i32
    %c0_i32_67 = arith.constant 0 : i32
    %97 = arith.cmpi ne, %96, %c0_i32_67 : i32
    scf.if %97 {
      %cst_86 = arith.constant 0.000000e+00 : f32
      %116 = vector.broadcast %cst_86 : f32 to vector<1x1x128xf32>
      %c0_87 = arith.constant 0 : index
      %c0_88 = arith.constant 0 : index
      %c0_89 = arith.constant 0 : index
      %117 = vector.load %arg5[%c0_87, %c0_88, %c0_89] : memref<1x1x128xf32, #tpu.memory_space<vmem>>, vector<1x1x128xf32>
      tpu.vector_store %arg5[%c0_87, %c0_88, %c0_89], %116 {strides = array<i32>} : memref<1x1x128xf32, #tpu.memory_space<vmem>>, vector<1x1x128xf32>,
      %cst_90 = arith.constant 0.000000e+00 : f32
      %118 = vector.broadcast %cst_90 : f32 to vector<1x1x128xf32>
      %c0_91 = arith.constant 0 : index
      %c0_92 = arith.constant 0 : index
      %c0_93 = arith.constant 0 : index
      %119 = vector.load %arg6[%c0_91, %c0_92, %c0_93] : memref<1x1x128xf32, #tpu.memory_space<vmem>>, vector<1x1x128xf32>
      tpu.vector_store %arg6[%c0_91, %c0_92, %c0_93], %118 {strides = array<i32>} : memref<1x1x128xf32, #tpu.memory_space<vmem>>, vector<1x1x128xf32>,
      %cst_94 = arith.constant 0.000000e+00 : f32
      %120 = vector.broadcast %cst_94 : f32 to vector<1x1x4xf32>
      %c0_95 = arith.constant 0 : index
      %c0_96 = arith.constant 0 : index
      %c0_97 = arith.constant 0 : index
      %121 = vector.load %arg7[%c0_95, %c0_96, %c0_97] : memref<1x1x4xf32, #tpu.memory_space<vmem>>, vector<1x1x4xf32>
      tpu.vector_store %arg7[%c0_95, %c0_96, %c0_97], %120 {strides = array<i32>} : memref<1x1x4xf32, #tpu.memory_space<vmem>>, vector<1x1x4xf32>,
    } else {
    }
    %c0_68 = arith.constant 0 : index
    %c0_69 = arith.constant 0 : index
    %c0_70 = arith.constant 0 : index
    %98 = vector.load %arg5[%c0_68, %c0_69, %c0_70] : memref<1x1x128xf32, #tpu.memory_space<vmem>>, vector<1x1x128xf32>
    %99 = vector.shape_cast %98 : vector<1x1x128xf32> to vector<1x128xf32>
    %100 = arith.addf %99, %91 : vector<1x128xf32>
    %c0_71 = arith.constant 0 : index
    %c0_72 = arith.constant 0 : index
    %c0_73 = arith.constant 0 : index
    %101 = vector.load %arg5[%c0_71, %c0_72, %c0_73] : memref<1x1x128xf32, #tpu.memory_space<vmem>>, vector<1x1x128xf32>
    %102 = vector.shape_cast %101 : vector<1x1x128xf32> to vector<1x128xf32>
    %103 = vector.shape_cast %100 : vector<1x128xf32> to vector<1x1x128xf32>
    tpu.vector_store %arg5[%c0_71, %c0_72, %c0_73], %103 {strides = array<i32>} : memref<1x1x128xf32, #tpu.memory_space<vmem>>, vector<1x1x128xf32>,
    %c0_74 = arith.constant 0 : index
    %c0_75 = arith.constant 0 : index
    %c0_76 = arith.constant 0 : index
    %104 = vector.load %arg6[%c0_74, %c0_75, %c0_76] : memref<1x1x128xf32, #tpu.memory_space<vmem>>, vector<1x1x128xf32>
    %105 = vector.shape_cast %104 : vector<1x1x128xf32> to vector<1x128xf32>
    %106 = arith.addf %105, %94 : vector<1x128xf32>
    %c0_77 = arith.constant 0 : index
    %c0_78 = arith.constant 0 : index
    %c0_79 = arith.constant 0 : index
    %107 = vector.load %arg6[%c0_77, %c0_78, %c0_79] : memref<1x1x128xf32, #tpu.memory_space<vmem>>, vector<1x1x128xf32>
    %108 = vector.shape_cast %107 : vector<1x1x128xf32> to vector<1x128xf32>
    %109 = vector.shape_cast %106 : vector<1x128xf32> to vector<1x1x128xf32>
    tpu.vector_store %arg6[%c0_77, %c0_78, %c0_79], %109 {strides = array<i32>} : memref<1x1x128xf32, #tpu.memory_space<vmem>>, vector<1x1x128xf32>,
    %c0_80 = arith.constant 0 : index
    %c0_81 = arith.constant 0 : index
    %c0_82 = arith.constant 0 : index
    %110 = vector.load %arg7[%c0_80, %c0_81, %c0_82] : memref<1x1x4xf32, #tpu.memory_space<vmem>>, vector<1x1x4xf32>
    %111 = vector.shape_cast %110 : vector<1x1x4xf32> to vector<1x4xf32>
    %112 = arith.addf %111, %44 : vector<1x4xf32>
    %c0_83 = arith.constant 0 : index
    %c0_84 = arith.constant 0 : index
    %c0_85 = arith.constant 0 : index
    %113 = vector.load %arg7[%c0_83, %c0_84, %c0_85] : memref<1x1x4xf32, #tpu.memory_space<vmem>>, vector<1x1x4xf32>
    %114 = vector.shape_cast %113 : vector<1x1x4xf32> to vector<1x4xf32>
    %115 = vector.shape_cast %112 : vector<1x4xf32> to vector<1x1x4xf32>
    tpu.vector_store %arg7[%c0_83, %c0_84, %c0_85], %115 {strides = array<i32>} : memref<1x1x4xf32, #tpu.memory_space<vmem>>, vector<1x1x4xf32>,
    return
  }
  func.func @transform_0(%arg0: i32, %arg1: i32) -> (i32, i32, i32, i32) {
    %c0_i32 = arith.constant 0 : i32
    %c0_i32_0 = arith.constant 0 : i32
    %c0_i32_1 = arith.constant 0 : i32
    %c0_i32_2 = arith.constant 0 : i32
    return %arg0, %c0_i32, %c0_i32_0, %c0_i32_1 : i32, i32, i32, i32
  }
  func.func @transform_1(%arg0: i32, %arg1: i32) -> (i32, i32, i32) {
    %c0_i32 = arith.constant 0 : i32
    %c0_i32_0 = arith.constant 0 : i32
    %c0_i32_1 = arith.constant 0 : i32
    %c0_i32_2 = arith.constant 0 : i32
    return %c0_i32, %c0_i32_0, %c0_i32_1 : i32, i32, i32
  }
  func.func @transform_2(%arg0: i32, %arg1: i32) -> (i32, i32, i32, i32) {
    %c0_i32 = arith.constant 0 : i32
    %c0_i32_0 = arith.constant 0 : i32
    %c0_i32_1 = arith.constant 0 : i32
    return %arg0, %arg1, %c0_i32, %c0_i32_0 : i32, i32, i32, i32
  }
  func.func @transform_3(%arg0: i32, %arg1: i32) -> (i32, i32, i32) {
    %c0_i32 = arith.constant 0 : i32
    %c0_i32_0 = arith.constant 0 : i32
    %c0_i32_1 = arith.constant 0 : i32
    return %arg0, %c0_i32, %c0_i32_0 : i32, i32, i32
  }
  func.func @transform_4(%arg0: i32, %arg1: i32) -> (i32, i32, i32) {
    %c0_i32 = arith.constant 0 : i32
    %c0_i32_0 = arith.constant 0 : i32
    %c0_i32_1 = arith.constant 0 : i32
    return %arg0, %c0_i32, %c0_i32_0 : i32, i32, i32
  }
  func.func @transform_5(%arg0: i32, %arg1: i32) -> (i32, i32, i32) {
    %c0_i32 = arith.constant 0 : i32
    %c0_i32_0 = arith.constant 0 : i32
    %c0_i32_1 = arith.constant 0 : i32
    return %arg0, %c0_i32, %c0_i32_0 : i32, i32, i32
  }
}

module attributes {stable_mosaic.version = 11 : i64} {
  func.func @_bn_silu_gate_kernel(%arg0: i32, %arg1: i32, %arg2: memref<1x16x16x128xbf16, #tpu.memory_space<vmem>>, %arg3: memref<1x128xf32, #tpu.memory_space<vmem>>, %arg4: memref<1x128xf32, #tpu.memory_space<vmem>>, %arg5: memref<1x1x128xf32, #tpu.memory_space<vmem>>, %arg6: memref<1x16x16x128xf32, #tpu.memory_space<vmem>>) attributes {dimension_semantics = [#tpu.dimension_semantics<parallel>, #tpu.dimension_semantics<parallel>], iteration_bounds = array<i64: 2, 1>, scalar_prefetch = 0 : i64, scratch_operands = 0 : i64, tpu.core_type = #tpu.core_type<tc>, window_params = [{transform_indices = @transform_0, window_bounds = array<i64: 1, 16, 16, 128>}, {pipeline_mode = #tpu.pipeline_mode<synchronous>, transform_indices = @transform_1, window_bounds = array<i64: 1, 128>}, {pipeline_mode = #tpu.pipeline_mode<synchronous>, transform_indices = @transform_2, window_bounds = array<i64: 1, 128>}, {transform_indices = @transform_3, window_bounds = array<i64: 1, 1, 128>}, {transform_indices = @transform_4, window_bounds = array<i64: 1, 16, 16, 128>}]} {
    %c0 = arith.constant 0 : index
    %c0_0 = arith.constant 0 : index
    %c0_1 = arith.constant 0 : index
    %c0_2 = arith.constant 0 : index
    %0 = vector.load %arg2[%c0, %c0_0, %c0_1, %c0_2] : memref<1x16x16x128xbf16, #tpu.memory_space<vmem>>, vector<1x16x16x128xbf16>
    %1 = vector.shape_cast %0 : vector<1x16x16x128xbf16> to vector<16x16x128xbf16>
    %2 = arith.extf %1 : vector<16x16x128xbf16> to vector<16x16x128xf32>
    %c0_3 = arith.constant 0 : index
    %c0_4 = arith.constant 0 : index
    %3 = vector.load %arg3[%c0_3, %c0_4] : memref<1x128xf32, #tpu.memory_space<vmem>>, vector<1x128xf32>
    %4 = vector.shape_cast %3 : vector<1x128xf32> to vector<1x1x128xf32>
    %5 = vector.broadcast %4 : vector<1x1x128xf32> to vector<16x16x128xf32>
    %6 = arith.mulf %2, %5 : vector<16x16x128xf32>
    %c0_5 = arith.constant 0 : index
    %c0_6 = arith.constant 0 : index
    %7 = vector.load %arg4[%c0_5, %c0_6] : memref<1x128xf32, #tpu.memory_space<vmem>>, vector<1x128xf32>
    %8 = vector.shape_cast %7 : vector<1x128xf32> to vector<1x1x128xf32>
    %9 = vector.broadcast %8 : vector<1x1x128xf32> to vector<16x16x128xf32>
    %10 = arith.addf %6, %9 : vector<16x16x128xf32>
    %11 = arith.negf %10 : vector<16x16x128xf32>
    %12 = math.exp %11 : vector<16x16x128xf32>
    %cst = arith.constant 1.000000e+00 : f32
    %13 = vector.broadcast %cst : f32 to vector<16x16x128xf32>
    %14 = arith.addf %13, %12 : vector<16x16x128xf32>
    %15 = arith.divf %13, %14 : vector<16x16x128xf32>
    %16 = arith.mulf %10, %15 : vector<16x16x128xf32>
    %c0_7 = arith.constant 0 : index
    %c0_8 = arith.constant 0 : index
    %c0_9 = arith.constant 0 : index
    %17 = vector.load %arg5[%c0_7, %c0_8, %c0_9] : memref<1x1x128xf32, #tpu.memory_space<vmem>>, vector<1x1x128xf32>
    %18 = vector.shape_cast %17 : vector<1x1x128xf32> to vector<1x128xf32>
    %19 = vector.shape_cast %18 : vector<1x128xf32> to vector<1x1x128xf32>
    %20 = vector.broadcast %19 : vector<1x1x128xf32> to vector<16x16x128xf32>
    %21 = arith.mulf %16, %20 : vector<16x16x128xf32>
    %c0_10 = arith.constant 0 : index
    %c0_11 = arith.constant 0 : index
    %c0_12 = arith.constant 0 : index
    %c0_13 = arith.constant 0 : index
    %22 = vector.load %arg6[%c0_10, %c0_11, %c0_12, %c0_13] : memref<1x16x16x128xf32, #tpu.memory_space<vmem>>, vector<1x16x16x128xf32>
    %23 = vector.shape_cast %22 : vector<1x16x16x128xf32> to vector<16x16x128xf32>
    %24 = vector.shape_cast %21 : vector<16x16x128xf32> to vector<1x16x16x128xf32>
    tpu.vector_store %arg6[%c0_10, %c0_11, %c0_12, %c0_13], %24 {strides = array<i32>} : memref<1x16x16x128xf32, #tpu.memory_space<vmem>>, vector<1x16x16x128xf32>,
    return
  }
  func.func @transform_0(%arg0: i32, %arg1: i32) -> (i32, i32, i32, i32) {
    %c0_i32 = arith.constant 0 : i32
    %c0_i32_0 = arith.constant 0 : i32
    %c0_i32_1 = arith.constant 0 : i32
    return %arg0, %arg1, %c0_i32, %c0_i32_0 : i32, i32, i32, i32
  }
  func.func @transform_1(%arg0: i32, %arg1: i32) -> (i32, i32) {
    %c0_i32 = arith.constant 0 : i32
    %c0_i32_0 = arith.constant 0 : i32
    %c0_i32_1 = arith.constant 0 : i32
    return %c0_i32, %c0_i32_0 : i32, i32
  }
  func.func @transform_2(%arg0: i32, %arg1: i32) -> (i32, i32) {
    %c0_i32 = arith.constant 0 : i32
    %c0_i32_0 = arith.constant 0 : i32
    %c0_i32_1 = arith.constant 0 : i32
    return %c0_i32, %c0_i32_0 : i32, i32
  }
  func.func @transform_3(%arg0: i32, %arg1: i32) -> (i32, i32, i32) {
    %c0_i32 = arith.constant 0 : i32
    %c0_i32_0 = arith.constant 0 : i32
    %c0_i32_1 = arith.constant 0 : i32
    return %arg0, %c0_i32, %c0_i32_0 : i32, i32, i32
  }
  func.func @transform_4(%arg0: i32, %arg1: i32) -> (i32, i32, i32, i32) {
    %c0_i32 = arith.constant 0 : i32
    %c0_i32_0 = arith.constant 0 : i32
    %c0_i32_1 = arith.constant 0 : i32
    return %arg0, %arg1, %c0_i32, %c0_i32_0 : i32, i32, i32, i32
  }
}

</mosaic_0001>

<bundles_post_ra>
// kernel: aspp_conv_forward.3
= control target key start
LH: loop header
LB: loop body
LE: loop exit
PB: predicated region body
PF: predicated region fallthrough
CT: control target
= control target key end

     0   :  { %s1536_s15 = smov 0   ;;  %s1538_s16 = smov 0   ;;  %s2548_s0 = inlined_call_operand.vmem [shape: bf16[2,16,16,128], index: 0, kind: input, shape index: {}]   ;;  %s2549_s1 = inlined_call_operand.vmem [shape: f32[1,128], index: 1, kind: input, shape index: {}]   ;;  %s2550_s2 = inlined_call_operand.vmem [shape: f32[1,128], index: 2, kind: input, shape index: {}]   ;;  %s2551_s3 = inlined_call_operand.vmem [shape: f32[2,1,128], index: 3, kind: input, shape index: {}]   ;;  %s2552_s4 = inlined_call_operand.vmem [shape: f32[2,16,16,128], index: 4, kind: output, shape index: {}]  }
   0x1   :  { %s1540_s17 = smov 0  }
   0x2 LB: > { %s26_s18 = sadd.s32 1, %s1505_s16  ;;  %p1209_p0 = scmp.ge.s32.totalorder %s1509_s17, 1  ;;  %s1509_s17 = sphi %s1540_s17, %s14_s17   ;;  %s1505_s16 = sphi %s1538_s16, %s2667_s16   ;;  %s1501_s15 = sphi %s1536_s15, %s2666_s15  }
   0x3   : > { %p28_p1 = scmp.ge.s32.totalorder %s26_s18, 2  ;;  %p192_p2 = scmp.lt.s32.totalorder %s1509_s17, 3 }
   0x5   : > { %s2669_s18 = smov (%p28_p1, %s26_s18), 0  ;;  %p193_p3 = pnand %p1209_p0, %p192_p2 }
   0x6   : > { %p232_p4 = scmp.lt.s32.totalorder (!%p193_p3), %s1501_s15, 1 }
   0x7   : > { %196 = sbr.rel (%p193_p3) target bundleno = 204 (0xcc), region = 36 }
   0xc   : > { %s2671_s15 = smov (!%p232_p4, %s1501_s15), 1  ;;  %v1571_v0 = vld [vmem:[%s2549_s1] ss:$0 sm:$0xff] }
   0xd   : > { %s1248_s19 = sshll.u32 %s2671_s15, 7  ;;  %s1561_s22 = scalar_lea.vmem %s2551_s3, %s2671_s15  ;;  %v1579_v5 = vld [vmem:[%s2550_s2] ss:$0 sm:$0xff] }
   0xe   : > { %s1566_s25 = scalar_lea.vmem %s2548_s0, %s1248_s19  ;;  %s1249_s30 = sshll.u32 %s2671_s15, 8 }
   0xf   : > { %v1251_v1 = vld [vmem:[%s1566_s25] sm:$0xff]   ;;  %v1314_v2 = vld [vmem:[%s1566_s25 + $0x8] sm:$0xff]   ;;  %v1315_v3 = vld [vmem:[%s1566_s25 + $0x10] sm:$0xff]   ;;  %s1778_s7 = scalar_lea.vmem %s2552_s4, %s1249_s30 }
  0x10   : > { %v1252_v4 = vunpack.c.l.bf16 %v1251_v1  ;;  %v1253_v6 = vunpack.c.h.bf16 %v1251_v1  ;;  %v1256_v7 = vunpack.c.l.bf16 %v1314_v2  ;;  %v1257_v8 = vunpack.c.h.bf16 %v1314_v2  ;;  %v1316_v9 = vld [vmem:[%s1566_s25 + $0x18] sm:$0xff]   ;;  %v1317_v22 = vld [vmem:[%s1566_s25 + $0x20] sm:$0xff]   ;;  %v1318_v29 = vld [vmem:[%s1566_s25 + $0x28] sm:$0xff]  }
  0x11   : > { %v1260_v10 = vunpack.c.l.bf16 %v1315_v3  ;;  %v1261_v11 = vunpack.c.h.bf16 %v1315_v3  ;;  %v1264_v12 = vunpack.c.l.bf16 %v1316_v9  ;;  %v1265_v13 = vunpack.c.h.bf16 %v1316_v9  ;;  %v1625_v44 = vld [vmem:[%s1566_s25 + $0x30] sm:$0xff]  }
  0x12   : > { %v324_v14 = vmul.f32 %v1571_v0, %v1252_v4  ;;  %v325_v15 = vmul.f32 %v1571_v0, %v1253_v6  ;;  %v326_v16 = vmul.f32 %v1571_v0, %v1256_v7  ;;  %v327_v17 = vmul.f32 %v1571_v0, %v1257_v8 }
  0x13   : > { %v328_v18 = vmul.f32 %v1571_v0, %v1260_v10  ;;  %v329_v19 = vmul.f32 %v1571_v0, %v1261_v11  ;;  %v330_v20 = vmul.f32 %v1571_v0, %v1264_v12  ;;  %v331_v21 = vmul.f32 %v1571_v0, %v1265_v13 }
  0x14   : > { %v1592_v23 = vadd.f32 %v1579_v5, %v324_v14  ;;  %v1595_v24 = vadd.f32 %v1579_v5, %v325_v15  ;;  %v1598_v25 = vadd.f32 %v1579_v5, %v326_v16  ;;  %v1601_v26 = vadd.f32 %v1579_v5, %v327_v17 }
  0x15   : > { %v1604_v27 = vadd.f32 %v1579_v5, %v328_v18  ;;  %v1607_v28 = vadd.f32 %v1579_v5, %v329_v19  ;;  %v1268_v33 = vunpack.c.l.bf16 %v1317_v22  ;;  %v1615_v35 = vadd.f32 %v1579_v5, %v330_v20 }
  0x16   : > { %v1214_v30 = vmul.f32 -1.442695, %v1592_v23  ;;  %v1215_v31 = vmul.f32 -1.442695, %v1595_v24  ;;  %v1216_v32 = vmul.f32 -1.442695, %v1598_v25  ;;  %v1269_v36 = vunpack.c.h.bf16 %v1317_v22 }
  0x17   : > { %v1217_v34 = vmul.f32 -1.442695, %v1601_v26  ;;  %v1218_v37 = vmul.f32 -1.442695, %v1604_v27  ;;  %v1619_v38 = vadd.f32 %v1579_v5, %v331_v21  ;;  %v332_v39 = vmul.f32 %v1571_v0, %v1268_v33 }
  0x18   : > { %1356 = vpow2.f32 %v1214_v30  ;;  %v1219_v40 = vmul.f32 -1.442695, %v1607_v28  ;;  %v333_v41 = vmul.f32 %v1571_v0, %v1269_v36  ;;  %v1272_v42 = vunpack.c.l.bf16 %v1318_v29 }
  0x19   : > { %1358 = vpow2.f32 %v1215_v31  ;;  %v1273_v43 = vunpack.c.h.bf16 %v1318_v29  ;;  %v1220_v45 = vmul.f32 -1.442695, %v1615_v35  ;;  %v1221_v46 = vmul.f32 -1.442695, %v1619_v38 }
  0x1a   : > { %1360 = vpow2.f32 %v1216_v32  ;;  %v1630_v47 = vadd.f32 %v1579_v5, %v332_v39  ;;  %v334_v48 = vmul.f32 %v1571_v0, %v1272_v42  ;;  %v1634_v49 = vadd.f32 %v1579_v5, %v333_v41 }
  0x1b   : > { %1362 = vpow2.f32 %v1217_v34  ;;  %v1276_v50 = vunpack.c.l.bf16 %v1625_v44  ;;  %v335_v52 = vmul.f32 %v1571_v0, %v1273_v43  ;;  %v1277_v3 = vunpack.c.h.bf16 %v1625_v44 }
  0x1c   : > { %1364 = vpow2.f32 %v1218_v37  ;;  %v1222_v57 = vmul.f32 -1.442695, %v1630_v47  ;;  %v1644_v58 = vadd.f32 %v1579_v5, %v334_v48  ;;  %v1649_v61 = vmul.f32 -1.442695, %v1634_v49 }
  0x1d   : > { %1366 = vpow2.f32 %v1219_v40  ;;  %v1652_v62 = vmul.f32 %v1571_v0, %v1276_v50  ;;  %v1657_v2 = vadd.f32 %v1579_v5, %v335_v52 }
  0x1e   : > { %v1357_v51 = vpop.eup %1356  ;;  %1368 = vpow2.f32 %v1220_v45  ;;  %v1670_v11 = vmul.f32 -1.442695, %v1644_v58 }
  0x1f   : > { %v1359_v53 = vpop.eup %1358  ;;  %v1638_v54 = vadd.f32 1.0, %v1357_v51  ;;  %1370 = vpow2.f32 %v1221_v46 }
  0x20   : > { %v1361_v55 = vpop.eup %1360  ;;  %v1640_v56 = vadd.f32 1.0, %v1359_v53  ;;  %v1225_v53 = vmul.f32 -1.442695, %v1657_v2 }
  0x21   : > { %v1363_v59 = vpop.eup %1362  ;;  %1372 = vrcp.f32 %v1638_v54  ;;  %v531_v60 = vand.u32 2147483648, %v1638_v54  ;;  %v529_v1 = vand.u32 2147483647, %v1638_v54  ;;  %v1662_v8 = vadd.f32 1.0, %v1361_v55 }
  0x22   : > { %v1365_v63 = vpop.eup %1364  ;;  %1374 = vrcp.f32 %v1640_v56  ;;  %v544_v6 = vand.u32 2147483647, %v1640_v56  ;;  %v546_v7 = vand.u32 2147483648, %v1640_v56  ;;  %v1664_v9 = vadd.f32 1.0, %v1363_v59 }
  0x23   : > { %v1367_v4 = vpop.eup %1366  ;;  %vm525_vm0 = vweird.f32 %v1638_v54  ;;  %v1667_v10 = vadd.f32 1.0, %v1365_v63  ;;  %1376 = vpow2.f32 %v1222_v57  ;;  %v1672_v13 = vor.u32 1.1754944e-38, %v531_v60 }
  0x24   : > { %v1369_v12 = vpop.eup %1368  ;;  %vm540_vm1 = vweird.f32 %v1640_v56  ;;  %1378 = vrcp.f32 %v1662_v8  ;;  %v561_v14 = vand.u32 2147483648, %v1662_v8  ;;  %vm1677_vm2 = vcmp.eq.f32.partialorder %v529_v1, 8.507059e+37 }
  0x25   : > { %v1371_v15 = vpop.eup %1370  ;;  %v559_v17 = vand.u32 2147483647, %v1662_v8  ;;  %1380 = vrcp.f32 %v1664_v9  ;;  %v576_v18 = vand.u32 2147483648, %v1664_v9  ;;  %v1684_v19 = vadd.f32 1.0, %v1367_v4 }
  0x26   : > { %vm1686_vm3 = vcmp.eq.f32.partialorder %v544_v6, 8.507059e+37  ;;  %v547_v22 = vor.u32 1.1754944e-38, %v546_v7  ;;  %vm555_vm4 = vweird.f32 %v1662_v8  ;;  %v574_v29 = vand.u32 2147483647, %v1664_v9 }
  0x27   : > { %v1373_v20 = vpop.eup %1372  ;;  %1382 = vrcp.f32 %v1667_v10  ;;  %v1694_v32 = vor.u32 1.1754944e-38, %v561_v14  ;;  %vm570_vm5 = vweird.f32 %v1664_v9  ;;  %vm585_vm6 = vweird.f32 %v1667_v10 }
  0x28   : > { %v1375_v30 = vpop.eup %1374  ;;  %v521_v31 = vmul.f32 %v1373_v20, %v1638_v54  ;;  %vm526_vm7 = vweird.f32 %v1373_v20  ;;  %v589_v34 = vand.u32 2147483647, %v1667_v10  ;;  %v591_v36 = vand.u32 2147483648, %v1667_v10 }
  0x29   : > { %v536_v33 = vmul.f32 %v1375_v30, %v1640_v56  ;;  %v1701_v37 = vpop.eup %1376  ;;  %vm541_vm8 = vweird.f32 %v1375_v30  ;;  %vm1703_vm9 = vcmp.eq.f32.partialorder %v559_v17, 8.507059e+37  ;;  %v1707_v41 = vor.u32 1.1754944e-38, %v576_v18  ;;  %vm1725_vm13 = vmor %vm525_vm0, %vm526_vm7 }
  0x2a   : > { %v522_v39 = vsub.f32 1.0, %v521_v31  ;;  %1384 = vrcp.f32 %v1684_v19  ;;  %v1379_v42 = vpop.eup %1378  ;;  %vm1710_vm10 = vcmp.eq.f32.partialorder %v574_v29, 8.507059e+37  ;;  %v604_v46 = vand.u32 2147483647, %v1684_v19  ;;  %vm1733_vm11 = vmor %vm540_vm1, %vm541_vm8 }
  0x2b   : > { %v537_v43 = vsub.f32 1.0, %v536_v33  ;;  %v606_v48 = vand.u32 2147483648, %v1684_v19  ;;  %v1381_v50 = vpop.eup %1380  ;;  %v551_v52 = vmul.f32 %v1379_v42, %v1662_v8  ;;  %vm1718_vm12 = vcmp.eq.f32.partialorder %v589_v34, 8.507059e+37  ;;  %v1748_v33 = vld [vmem:[%s1561_s22] ss:$0 sm:$0xff] }
  0x2c   : > { %v523_v51 = vmul.f32 %v1373_v20, %v522_v39  ;;  %v592_v55 = vor.u32 1.1754944e-38, %v591_v36  ;;  %vm556_vm14 = vweird.f32 %v1379_v42  ;;  %v566_v63 = vmul.f32 %v1381_v50, %v1664_v9 }
  0x2d   : > { %v1383_v57 = vpop.eup %1382  ;;  %v538_v60 = vmul.f32 %v1375_v30, %v537_v43  ;;  %vm571_vm15 = vweird.f32 %v1381_v50  ;;  %v552_v54 = vsub.f32 1.0, %v551_v52  ;;  %v607_v7 = vor.u32 1.1754944e-38, %v606_v48  ;;  %vm1760_vm1 = vmor %vm555_vm4, %vm556_vm14 }
  0x2e   : > { %v524_v1 = vadd.f32 %v1373_v20, %v523_v51  ;;  %v581_v6 = vmul.f32 %v1383_v57, %v1667_v10  ;;  %v567_v17 = vsub.f32 1.0, %v566_v63  ;;  %vm586_vm0 = vweird.f32 %v1383_v57 }
  0x2f   : > { %v539_v14 = vadd.f32 %v1375_v30, %v538_v60  ;;  %vm1738_vm7 = vcmp.eq.f32.partialorder %v604_v46, 8.507059e+37  ;;  %v1742_v29 = vadd.f32 1.0, %v1369_v12  ;;  %v553_v34 = vmul.f32 %v1379_v42, %v552_v54 }
  0x30   : > { %v1385_v31 = vpop.eup %1384  ;;  %v528_v56 = vsel %vm1725_vm13, %v1373_v20, %v524_v1  ;;  %v582_v36 = vsub.f32 1.0, %v581_v6  ;;  %v1750_v39 = vadd.f32 1.0, %v1371_v15  ;;  %v568_v20 = vmul.f32 %v1381_v50, %v567_v17 }
  0x31   : > { %v533_v43 = vsel %vm1677_vm2, %v1672_v13, %v528_v56  ;;  %v543_v46 = vsel %vm1733_vm11, %v1375_v30, %v539_v14  ;;  %v596_v48 = vmul.f32 %v1385_v31, %v1684_v19  ;;  %v554_v16 = vadd.f32 %v1379_v42, %v553_v34  ;;  %vm1771_vm2 = vmor %vm570_vm5, %vm571_vm15 }
  0x32   : > { %v1000_v15 = vmul.f32 %v533_v43, %v1592_v23  ;;  %v548_v51 = vsel %vm1686_vm3, %v547_v22, %v543_v46  ;;  %v583_v8 = vmul.f32 %v1383_v57, %v582_v36  ;;  %v569_v30 = vadd.f32 %v1381_v50, %v568_v20  ;;  %vm1784_vm3 = vmor %vm585_vm6, %vm586_vm0  ;;  %v1320_v36 = vld [vmem:[%s1566_s25 + $0x38] sm:$0xff]  }
  0x33   : > { %v1001_v23 = vmul.f32 %v548_v51, %v1595_v24  ;;  %v597_v9 = vsub.f32 1.0, %v596_v48  ;;  %vm601_vm4 = vweird.f32 %v1385_v31  ;;  %v558_v52 = vsel %vm1760_vm1, %v1379_v42, %v554_v16 }
  0x34   : > { %v1036_v22 = vmul.f32 %v1748_v33, %v1000_v15  ;;  %v584_v59 = vadd.f32 %v1383_v57, %v583_v8  ;;  %1386 = vrcp.f32 %v1742_v29  ;;  %v563_v10 = vsel %vm1703_vm9, %v1694_v32, %v558_v52 }
  0x35   : > { %v1037_v24 = vmul.f32 %v1748_v33, %v1001_v23  ;;  %v573_v60 = vsel %vm1771_vm2, %v1381_v50, %v569_v30  ;;  %v598_v63 = vmul.f32 %v1385_v31, %v597_v9  ;;  %v1002_v1 = vmul.f32 %v563_v10, %v1598_v25  ;;  %v1321_v10 = vld [vmem:[%s1566_s25 + $0x40] sm:$0xff]  }
  0x36   : > { %1068 = vst [vmem:[%s1778_s7] sm:$0xff] %v1036_v22  ;;  %v578_v42 = vsel %vm1710_vm10, %v1707_v41, %v573_v60  ;;  %v588_v4 = vsel %vm1784_vm3, %v1383_v57, %v584_v59  ;;  %vm2575_vm5 = vweird.f32 %v1684_v19  ;;  %v1812_v32 = vadd.f32 1.0, %v1701_v37 }
  0x37   : > { %vm1807_vm6 = vmor %vm2575_vm5, %vm601_vm4  ;;  %1069 = vst [vmem:[%s1778_s7 + $0x8] sm:$0xff] %v1037_v24  ;;  %v1003_v25 = vmul.f32 %v578_v42, %v1601_v26  ;;  %v593_v40 = vsel %vm1718_vm12, %v592_v55, %v588_v4  ;;  %v599_v41 = vadd.f32 %v1385_v31, %v598_v63  ;;  %v619_v45 = vand.u32 2147483647, %v1742_v29 }
  0x38   : > { %v1038_v19 = vmul.f32 %v1748_v33, %v1002_v1  ;;  %v1004_v50 = vmul.f32 %v593_v40, %v1604_v27  ;;  %v621_v57 = vand.u32 2147483648, %v1742_v29  ;;  %1388 = vrcp.f32 %v1750_v39 }
  0x39   : > { %v1039_v37 = vmul.f32 %v1748_v33, %v1003_v25  ;;  %v603_v26 = vsel %vm1807_vm6, %v1385_v31, %v599_v41  ;;  %v1829_v55 = vadd.f32 %v1579_v5, %v1652_v62  ;;  %v634_v17 = vand.u32 2147483647, %v1750_v39 }
  0x3a   : > { %v1387_v6 = vpop.eup %1386  ;;  %1070 = vst [vmem:[%s1778_s7 + $0x10] sm:$0xff] %v1038_v19  ;;  %v1040_v27 = vmul.f32 %v1748_v33, %v1004_v50  ;;  %v608_v14 = vsel %vm1738_vm7, %v607_v7, %v603_v26  ;;  %v337_v31 = vmul.f32 %v1571_v0, %v1277_v3  ;;  %vm615_vm8 = vweird.f32 %v1742_v29 }
  0x3b   : > { %1071 = vst [vmem:[%s1778_s7 + $0x18] sm:$0xff] %v1039_v37  ;;  %v1005_v56 = vmul.f32 %v608_v14, %v1607_v28  ;;  %v611_v62 = vmul.f32 %v1387_v6, %v1742_v29  ;;  %v636_v34 = vand.u32 2147483648, %v1750_v39  ;;  %vm1845_vm9 = vcmp.eq.f32.partialorder %v619_v45, 8.507059e+37 }
  0x3c   : > { %1072 = vst [vmem:[%s1778_s7 + $0x20] sm:$0xff] %v1040_v27  ;;  %v622_v18 = vor.u32 1.1754944e-38, %v621_v57  ;;  %vm630_vm10 = vweird.f32 %v1750_v39  ;;  %1390 = vrcp.f32 %v1812_v32  ;;  %vm616_vm11 = vweird.f32 %v1387_v6 }
  0x3d   : > { %v1041_v44 = vmul.f32 %v1748_v33, %v1005_v56  ;;  %v612_v28 = vsub.f32 1.0, %v611_v62  ;;  %vm1852_vm12 = vcmp.eq.f32.partialorder %v634_v17, 8.507059e+37  ;;  %vm645_vm13 = vweird.f32 %v1812_v32  ;;  %vm1868_vm14 = vmor %vm615_vm8, %vm616_vm11 }
  0x3e   : > { %v1389_v43 = vpop.eup %1388  ;;  %v649_v46 = vand.u32 2147483647, %v1812_v32  ;;  %1392 = vpow2.f32 %v1649_v61  ;;  %v1226_v12 = vmul.f32 -1.442695, %v1829_v55  ;;  %v637_v15 = vor.u32 1.1754944e-38, %v636_v34 }
  0x3f   : > { %1073 = vst [vmem:[%s1778_s7 + $0x28] sm:$0xff] %v1041_v44  ;;  %v613_v20 = vmul.f32 %v1387_v6, %v612_v28  ;;  %v626_v48 = vmul.f32 %v1389_v43, %v1750_v39  ;;  %v1864_v51 = vadd.f32 %v1579_v5, %v337_v31  ;;  %v651_v13 = vand.u32 2147483648, %v1812_v32 }
  0x40   : > { %1394 = vpow2.f32 %v1670_v11  ;;  %v1280_v61 = vunpack.c.l.bf16 %v1320_v36  ;;  %v1281_v8 = vunpack.c.h.bf16 %v1320_v36  ;;  %vm631_vm15 = vweird.f32 %v1389_v43 }
  0x41   : > { %v614_v23 = vadd.f32 %v1387_v6, %v613_v20  ;;  %v627_v30 = vsub.f32 1.0, %v626_v48  ;;  %1396 = vpow2.f32 %v1225_v53  ;;  %vm1874_vm0 = vcmp.eq.f32.partialorder %v649_v46, 8.507059e+37  ;;  %vm1889_vm7 = vmor %vm630_vm10, %vm631_vm15 }
  0x42   : > { %v1391_v21 = vpop.eup %1390  ;;  %1398 = vpow2.f32 %v1226_v12  ;;  %v338_v29 = vmul.f32 %v1571_v0, %v1280_v61  ;;  %v339_v22 = vmul.f32 %v1571_v0, %v1281_v8  ;;  %v1227_v24 = vmul.f32 -1.442695, %v1864_v51 }
  0x43   : > { %v618_v11 = vsel %vm1868_vm14, %v1387_v6, %v614_v23  ;;  %v628_v52 = vmul.f32 %v1389_v43, %v627_v30  ;;  %v641_v59 = vmul.f32 %v1391_v21, %v1812_v32  ;;  %vm646_vm1 = vweird.f32 %v1391_v21 }
  0x44   : > { %v1393_v60 = vpop.eup %1392  ;;  %v623_v63 = vsel %vm1845_vm9, %v622_v18, %v618_v11  ;;  %v1894_v42 = vadd.f32 %v1579_v5, %v338_v29  ;;  %v1897_v4 = vadd.f32 %v1579_v5, %v339_v22  ;;  %v652_v39 = vor.u32 1.1754944e-38, %v651_v13  ;;  %vm1912_vm2 = vmor %vm645_vm13, %vm646_vm1 }
  0x45   : > { %v1006_v54 = vmul.f32 %v623_v63, %v1615_v35  ;;  %v629_v25 = vadd.f32 %v1389_v43, %v628_v52  ;;  %v642_v40 = vsub.f32 1.0, %v641_v59  ;;  %v1900_v41 = vadd.f32 1.0, %v1393_v60 }
  0x46   : > { %v1395_v45 = vpop.eup %1394  ;;  %v1228_v19 = vmul.f32 -1.442695, %v1894_v42  ;;  %v1284_v50 = vunpack.c.l.bf16 %v1321_v10  ;;  %v1285_v57 = vunpack.c.h.bf16 %v1321_v10  ;;  %v1229_v31 = vmul.f32 -1.442695, %v1897_v4 }
  0x47   : > { %v1397_v37 = vpop.eup %1396  ;;  %v1042_v26 = vmul.f32 %v1748_v33, %v1006_v54  ;;  %v633_v53 = vsel %vm1889_vm7, %v1389_v43, %v629_v25  ;;  %v643_v6 = vmul.f32 %v1391_v21, %v642_v40  ;;  %1400 = vrcp.f32 %v1900_v41 }
  0x48   : > { %v1399_v35 = vpop.eup %1398  ;;  %v638_v27 = vsel %vm1852_vm12, %v637_v15, %v633_v53  ;;  %v664_v17 = vand.u32 2147483647, %v1900_v41  ;;  %1402 = vpow2.f32 %v1227_v24  ;;  %v1920_v34 = vadd.f32 1.0, %v1395_v45 }
  0x49   : > { %1074 = vst [vmem:[%s1778_s7 + $0x30] sm:$0xff] %v1042_v26  ;;  %v1007_v56 = vmul.f32 %v638_v27, %v1619_v38  ;;  %v644_v62 = vadd.f32 %v1391_v21, %v643_v6  ;;  %v1922_v7 = vadd.f32 1.0, %v1397_v37  ;;  %v666_v32 = vand.u32 2147483648, %v1900_v41 }
  0x4a   : > { %1404 = vpow2.f32 %v1228_v19  ;;  %v340_v18 = vmul.f32 %v1571_v0, %v1284_v50  ;;  %v1927_v44 = vmul.f32 %v1571_v0, %v1285_v57  ;;  %v1933_v38 = vadd.f32 1.0, %v1399_v35  ;;  %v1323_v19 = vld [vmem:[%s1566_s25 + $0x50] sm:$0xff]  }
  0x4b   : > { %v1043_v28 = vmul.f32 %v1748_v33, %v1007_v56  ;;  %v648_v3 = vsel %vm1912_vm2, %v1391_v21, %v644_v62  ;;  %1406 = vrcp.f32 %v1920_v34  ;;  %v679_v43 = vand.u32 2147483647, %v1920_v34 }
  0x4c   : > { %v653_v36 = vsel %vm1874_vm0, %v652_v39, %v648_v3  ;;  %v681_v46 = vand.u32 2147483648, %v1920_v34  ;;  %1408 = vrcp.f32 %v1922_v7  ;;  %vm660_vm3 = vweird.f32 %v1900_v41 }
  0x4d   : > { %v1401_v12 = vpop.eup %1400  ;;  %1075 = vst [vmem:[%s1778_s7 + $0x38] sm:$0xff] %v1043_v28  ;;  %v1008_v20 = vmul.f32 %v653_v36, %v1630_v47  ;;  %vm1943_vm4 = vcmp.eq.f32.partialorder %v664_v17, 8.507059e+37  ;;  %v694_v15 = vand.u32 2147483647, %v1922_v7  ;;  %v667_v61 = vor.u32 1.1754944e-38, %v666_v32 }
  0x4e   : > { %v1403_v16 = vpop.eup %1402  ;;  %v656_v13 = vmul.f32 %v1401_v12, %v1900_v41  ;;  %vm675_vm5 = vweird.f32 %v1920_v34  ;;  %v696_v8 = vand.u32 2147483648, %v1922_v7  ;;  %vm661_vm6 = vweird.f32 %v1401_v12 }
  0x4f   : > { %v1044_v23 = vmul.f32 %v1748_v33, %v1008_v20  ;;  %vm690_vm8 = vweird.f32 %v1922_v7  ;;  %1410 = vrcp.f32 %v1933_v38  ;;  %vm1954_vm9 = vcmp.eq.f32.partialorder %v679_v43, 8.507059e+37  ;;  %vm1974_vm12 = vmor %vm660_vm3, %vm661_vm6 }
  0x50   : > { %v1405_v47 = vpop.eup %1404  ;;  %v657_v30 = vsub.f32 1.0, %v656_v13  ;;  %v682_v9 = vor.u32 1.1754944e-38, %v681_v46  ;;  %v709_v29 = vand.u32 2147483647, %v1933_v38  ;;  %vm1960_vm10 = vcmp.eq.f32.partialorder %v694_v15, 8.507059e+37 }
  0x51   : > { %v1407_v22 = vpop.eup %1406  ;;  %1076 = vst [vmem:[%s1778_s7 + $0x40] sm:$0xff] %v1044_v23  ;;  %v711_v52 = vand.u32 2147483648, %v1933_v38  ;;  %v1965_v59 = vadd.f32 1.0, %v1403_v16  ;;  %v1967_v24 = vadd.f32 1.0, %v1405_v47  ;;  %1412 = vpow2.f32 %v1229_v31 }
  0x52   : > { %v1409_v10 = vpop.eup %1408  ;;  %v658_v60 = vmul.f32 %v1401_v12, %v657_v30  ;;  %v671_v63 = vmul.f32 %v1407_v22, %v1920_v34  ;;  %v697_v1 = vor.u32 1.1754944e-38, %v696_v8  ;;  %vm705_vm11 = vweird.f32 %v1933_v38 }
  0x53   : > { %vm676_vm13 = vweird.f32 %v1407_v22  ;;  %v686_v25 = vmul.f32 %v1409_v10, %v1922_v7  ;;  %1414 = vrcp.f32 %v1965_v59  ;;  %v1981_v40 = vadd.f32 %v1579_v5, %v340_v18 }
  0x54   : > { %v659_v45 = vadd.f32 %v1401_v12, %v658_v60  ;;  %v672_v39 = vsub.f32 1.0, %v671_v63  ;;  %vm691_vm14 = vweird.f32 %v1409_v10  ;;  %vm1983_vm15 = vcmp.eq.f32.partialorder %v709_v29, 8.507059e+37  ;;  %vm1999_vm7 = vmor %vm675_vm5, %vm676_vm13 }
  0x55   : > { %v724_v41 = vand.u32 2147483647, %v1965_v59  ;;  %v1411_v50 = vpop.eup %1410  ;;  %v687_v57 = vsub.f32 1.0, %v686_v25  ;;  %v712_v37 = vor.u32 1.1754944e-38, %v711_v52  ;;  %v726_v26 = vand.u32 2147483648, %v1965_v59  ;;  %vm2008_vm3 = vmor %vm690_vm8, %vm691_vm14  ;;  %v1322_v52 = vld [vmem:[%s1566_s25 + $0x48] sm:$0xff]  }
  0x56   : > { %1416 = vrcp.f32 %v1967_v24  ;;  %v663_v53 = vsel %vm1974_vm12, %v1401_v12, %v659_v45  ;;  %v673_v6 = vmul.f32 %v1407_v22, %v672_v39  ;;  %v701_v35 = vmul.f32 %v1411_v50, %v1933_v38 }
  0x57   : > { %vm720_vm0 = vweird.f32 %v1965_v59  ;;  %v1413_v27 = vpop.eup %1412  ;;  %v668_v14 = vsel %vm1943_vm4, %v667_v61, %v663_v53  ;;  %v688_v31 = vmul.f32 %v1409_v10, %v687_v57  ;;  %vm706_vm1 = vweird.f32 %v1411_v50 }
  0x58   : > { %vm735_vm2 = vweird.f32 %v1967_v24  ;;  %v1009_v56 = vmul.f32 %v668_v14, %v1634_v49  ;;  %v674_v62 = vadd.f32 %v1407_v22, %v673_v6  ;;  %v702_v18 = vsub.f32 1.0, %v701_v35  ;;  %vm2030_vm5 = vmor %vm705_vm11, %vm706_vm1 }
  0x59   : > { %vm2012_vm4 = vcmp.eq.f32.partialorder %v724_v41, 8.507059e+37  ;;  %v1415_v28 = vpop.eup %1414  ;;  %v689_v3 = vadd.f32 %v1409_v10, %v688_v31  ;;  %v727_v36 = vor.u32 1.1754944e-38, %v726_v26  ;;  %v739_v43 = vand.u32 2147483647, %v1967_v24 }
  0x5a   : > { %v2017_v49 = vadd.f32 1.0, %v1413_v27  ;;  %v1045_v46 = vmul.f32 %v1748_v33, %v1009_v56  ;;  %v678_v7 = vsel %vm1999_vm7, %v1407_v22, %v674_v62  ;;  %v703_v12 = vmul.f32 %v1411_v50, %v702_v18  ;;  %v1324_v62 = vld [vmem:[%s1566_s25 + $0x58] sm:$0xff]  }
  0x5b   : > { %v716_v20 = vmul.f32 %v1415_v28, %v1965_v59  ;;  %v683_v15 = vsel %vm1954_vm9, %v682_v9, %v678_v7  ;;  %v693_v16 = vsel %vm2008_vm3, %v1409_v10, %v689_v3  ;;  %vm721_vm6 = vweird.f32 %v1415_v28 }
  0x5c   : > { %v1417_v48 = vpop.eup %1416  ;;  %v741_v61 = vand.u32 2147483648, %v1967_v24  ;;  %1077 = vst [vmem:[%s1778_s7 + $0x48] sm:$0xff] %v1045_v46  ;;  %v1010_v8 = vmul.f32 %v683_v15, %v1644_v58  ;;  %v698_v23 = vsel %vm1960_vm10, %v697_v1, %v693_v16  ;;  %v704_v47 = vadd.f32 %v1411_v50, %v703_v12  ;;  %vm2057_vm9 = vmor %vm720_vm0, %vm721_vm6 }
  0x5d   : > { %v717_v30 = vsub.f32 1.0, %v716_v20  ;;  %v1011_v21 = vmul.f32 %v698_v23, %v1657_v2  ;;  %v731_v38 = vmul.f32 %v1417_v48, %v1967_v24  ;;  %vm2041_vm8 = vcmp.eq.f32.partialorder %v739_v43, 8.507059e+37 }
  0x5e   : > { %v1230_v29 = vmul.f32 -1.442695, %v1981_v40  ;;  %v1046_v22 = vmul.f32 %v1748_v33, %v1010_v8  ;;  %v708_v58 = vsel %vm2030_vm5, %v1411_v50, %v704_v47  ;;  %1418 = vrcp.f32 %v2017_v49 }
  0x5f   : > { %v718_v11 = vmul.f32 %v1415_v28, %v717_v30  ;;  %v1047_v2 = vmul.f32 %v1748_v33, %v1011_v21  ;;  %v713_v10 = vsel %vm1983_vm15, %v712_v37, %v708_v58  ;;  %v732_v63 = vsub.f32 1.0, %v731_v38 }
  0x60   : > { %vm736_vm10 = vweird.f32 %v1417_v48  ;;  %1078 = vst [vmem:[%s1778_s7 + $0x50] sm:$0xff] %v1046_v22  ;;  %v1012_v1 = vmul.f32 %v713_v10, %v1829_v55  ;;  %v742_v25 = vor.u32 1.1754944e-38, %v741_v61  ;;  %vm750_vm11 = vweird.f32 %v2017_v49  ;;  %v2160_v55 = vld [vmem:[%s1566_s25 + $0x68] sm:$0xff]  }
  0x61   : > { %v719_v54 = vadd.f32 %v1415_v28, %v718_v11  ;;  %1079 = vst [vmem:[%s1778_s7 + $0x58] sm:$0xff] %v1047_v2  ;;  %v733_v45 = vmul.f32 %v1417_v48, %v732_v63  ;;  %1420 = vpow2.f32 %v1230_v29  ;;  %v2067_v59 = vadd.f32 %v1579_v5, %v1927_v44  ;;  %vm2075_vm12 = vmor %vm735_vm2, %vm736_vm10 }
  0x62   : > { %v1288_v39 = vunpack.c.l.bf16 %v1322_v52  ;;  %v1048_v41 = vmul.f32 %v1748_v33, %v1012_v1  ;;  %v754_v57 = vand.u32 2147483647, %v2017_v49  ;;  %v756_v37 = vand.u32 2147483648, %v2017_v49 }
  0x63   : > { %v723_v50 = vsel %vm2057_vm9, %v1415_v28, %v719_v54  ;;  %v734_v26 = vadd.f32 %v1417_v48, %v733_v45  ;;  %v1231_v53 = vmul.f32 -1.442695, %v2067_v59  ;;  %v1289_v27 = vunpack.c.h.bf16 %v1322_v52  ;;  %v2138_v52 = vld [vmem:[%s1566_s25 + $0x60] sm:$0xff]  }
  0x64   : > { %v728_v44 = vsel %vm2012_vm4, %v727_v36, %v723_v50  ;;  %v342_v6 = vmul.f32 %v1571_v0, %v1288_v39  ;;  %v1419_v35 = vpop.eup %1418  ;;  %1080 = vst [vmem:[%s1778_s7 + $0x60] sm:$0xff] %v1048_v41  ;;  %v1292_v14 = vunpack.c.l.bf16 %v1323_v19  ;;  %v1293_v17 = vunpack.c.h.bf16 %v1323_v19 }
  0x65   : > { %v1013_v24 = vmul.f32 %v728_v44, %v1864_v51  ;;  %v738_v31 = vsel %vm2075_vm12, %v1417_v48, %v734_v26  ;;  %v746_v56 = vmul.f32 %v1419_v35, %v2017_v49  ;;  %vm751_vm13 = vweird.f32 %v1419_v35 }
  0x66   : > { %1422 = vpow2.f32 %v1231_v53  ;;  %v743_v18 = vsel %vm2041_vm8, %v742_v25, %v738_v31  ;;  %v2095_v34 = vadd.f32 %v1579_v5, %v342_v6  ;;  %v343_v51 = vmul.f32 %v1571_v0, %v1289_v27  ;;  %vm2118_vm14 = vmor %vm750_vm11, %vm751_vm13 }
  0x67   : > { %v1049_v32 = vmul.f32 %v1748_v33, %v1013_v24  ;;  %v1421_v28 = vpop.eup %1420  ;;  %v1014_v3 = vmul.f32 %v743_v18, %v1894_v42  ;;  %v747_v36 = vsub.f32 1.0, %v746_v56  ;;  %v344_v43 = vmul.f32 %v1571_v0, %v1292_v14 }
  0x68   : > { %v345_v46 = vmul.f32 %v1571_v0, %v1293_v17  ;;  %v2102_v7 = vadd.f32 1.0, %v1421_v28  ;;  %v1232_v12 = vmul.f32 -1.442695, %v2095_v34  ;;  %v2106_v20 = vadd.f32 %v1579_v5, %v343_v51 }
  0x69   : > { %1081 = vst [vmem:[%s1778_s7 + $0x68] sm:$0xff] %v1049_v32  ;;  %v1296_v48 = vunpack.c.l.bf16 %v1324_v62  ;;  %v1050_v15 = vmul.f32 %v1748_v33, %v1014_v3  ;;  %v748_v16 = vmul.f32 %v1419_v35, %v747_v36  ;;  %v2110_v42 = vadd.f32 %v1579_v5, %v344_v43 }
  0x6a   : > { %v2113_v13 = vadd.f32 %v1579_v5, %v345_v46  ;;  %vm2122_vm15 = vcmp.eq.f32.partialorder %v754_v57, 8.507059e+37  ;;  %v757_v23 = vor.u32 1.1754944e-38, %v756_v37  ;;  %1424 = vrcp.f32 %v2102_v7 }
  0x6b   : > { %1082 = vst [vmem:[%s1778_s7 + $0x70] sm:$0xff] %v1050_v15  ;;  %v749_v30 = vadd.f32 %v1419_v35, %v748_v16  ;;  %1426 = vpow2.f32 %v1232_v12  ;;  %v1233_v21 = vmul.f32 -1.442695, %v2106_v20  ;;  %v1234_v49 = vmul.f32 -1.442695, %v2110_v42 }
  0x6c   : > { %v1423_v47 = vpop.eup %1422  ;;  %v769_v38 = vand.u32 2147483647, %v2102_v7  ;;  %v1235_v29 = vmul.f32 -1.442695, %v2113_v13  ;;  %v346_v58 = vmul.f32 %v1571_v0, %v1296_v48  ;;  %v1297_v11 = vunpack.c.h.bf16 %v1324_v62 }
  0x6d   : > { %v2131_v9 = vadd.f32 1.0, %v1423_v47  ;;  %v753_v22 = vsel %vm2118_vm14, %v1419_v35, %v749_v30  ;;  %1428 = vpow2.f32 %v1233_v21  ;;  %v771_v10 = vand.u32 2147483648, %v2102_v7 }
  0x6e   : > { %v758_v2 = vsel %vm2122_vm15, %v757_v23, %v753_v22  ;;  %v2148_v54 = vadd.f32 %v1579_v5, %v346_v58  ;;  %vm765_vm0 = vweird.f32 %v2102_v7  ;;  %v347_v45 = vmul.f32 %v1571_v0, %v1297_v11 }
  0x6f   : > { %1430 = vrcp.f32 %v2131_v9  ;;  %v784_v60 = vand.u32 2147483647, %v2131_v9  ;;  %v1015_v63 = vmul.f32 %v758_v2, %v1897_v4  ;;  %v786_v1 = vand.u32 2147483648, %v2131_v9 }
  0x70   : > { %1432 = vpow2.f32 %v1234_v49  ;;  %v1425_v25 = vpop.eup %1424  ;;  %v1300_v39 = vunpack.c.l.bf16 %v2138_v52  ;;  %vm2155_vm7 = vcmp.eq.f32.partialorder %v769_v38, 8.507059e+37  ;;  %v772_v57 = vor.u32 1.1754944e-38, %v771_v10 }
  0x71   : > { %v1427_v19 = vpop.eup %1426  ;;  %v1051_v41 = vmul.f32 %v1748_v33, %v1015_v63  ;;  %v761_v50 = vmul.f32 %v1425_v25, %v2102_v7  ;;  %1434 = vpow2.f32 %v1235_v29  ;;  %vm780_vm1 = vweird.f32 %v2131_v9 }
  0x72   : > { %v2163_v37 = vadd.f32 1.0, %v1427_v19  ;;  %v1236_v44 = vmul.f32 -1.442695, %v2148_v54  ;;  %vm766_vm2 = vweird.f32 %v1425_v25  ;;  %vm2167_vm3 = vcmp.eq.f32.partialorder %v784_v60, 8.507059e+37 }
  0x73   : > { %v1429_v26 = vpop.eup %1428  ;;  %1083 = vst [vmem:[%s1778_s7 + $0x78] sm:$0xff] %v1051_v41  ;;  %v762_v53 = vsub.f32 1.0, %v761_v50  ;;  %v787_v35 = vor.u32 1.1754944e-38, %v786_v1  ;;  %v2172_v24 = vadd.f32 %v1579_v5, %v347_v45  ;;  %v2176_v14 = vmul.f32 %v1571_v0, %v1300_v39  ;;  %vm2186_vm4 = vmor %vm765_vm0, %vm766_vm2 }
  0x74   : > { %1436 = vrcp.f32 %v2163_v37  ;;  %v1301_v17 = vunpack.c.h.bf16 %v2138_v52  ;;  %v1304_v31 = vunpack.c.l.bf16 %v2160_v55  ;;  %v799_v18 = vand.u32 2147483647, %v2163_v37 }
  0x75   : > { %v1431_v27 = vpop.eup %1430  ;;  %v763_v62 = vmul.f32 %v1425_v25, %v762_v53  ;;  %v2182_v51 = vadd.f32 1.0, %v1429_v26  ;;  %v801_v0 = vand.u32 2147483648, %v2163_v37  ;;  %1438 = vpow2.f32 %v1236_v44 }
  0x76   : > { %v1433_v56 = vpop.eup %1432  ;;  %v776_v32 = vmul.f32 %v1431_v27, %v2131_v9  ;;  %v1305_v3 = vunpack.c.h.bf16 %v2160_v55  ;;  %vm781_vm5 = vweird.f32 %v1431_v27  ;;  %vm795_vm6 = vweird.f32 %v2163_v37 }
  0x77   : > { %v2191_v28 = vadd.f32 1.0, %v1433_v56  ;;  %v1435_v36 = vpop.eup %1434  ;;  %v764_v43 = vadd.f32 %v1425_v25, %v763_v62  ;;  %1440 = vrcp.f32 %v2182_v51  ;;  %v814_v7 = vand.u32 2147483647, %v2182_v51  ;;  %vm2211_vm9 = vmor %vm780_vm1, %vm781_vm5 }
  0x78   : > { %v777_v46 = vsub.f32 1.0, %v776_v32  ;;  %v816_v12 = vand.u32 2147483648, %v2182_v51  ;;  %vm2201_vm8 = vcmp.eq.f32.partialorder %v799_v18, 8.507059e+37  ;;  %v802_v21 = vor.u32 1.1754944e-38, %v801_v0 }
  0x79   : > { %1442 = vrcp.f32 %v2191_v28  ;;  %v768_v48 = vsel %vm2186_vm4, %v1425_v25, %v764_v43  ;;  %v829_v61 = vand.u32 2147483647, %v2191_v28  ;;  %v831_v8 = vand.u32 2147483648, %v2191_v28 }
  0x7a   : > { %v778_v15 = vmul.f32 %v1431_v27, %v777_v46  ;;  %v1437_v23 = vpop.eup %1436  ;;  %v773_v47 = vsel %vm2155_vm7, %v772_v57, %v768_v48  ;;  %vm810_vm10 = vweird.f32 %v2182_v51  ;;  %v2216_v49 = vadd.f32 1.0, %v1435_v36 }
  0x7b   : > { %v1016_v38 = vmul.f32 %v773_v47, %v1981_v40  ;;  %v791_v22 = vmul.f32 %v1437_v23, %v2163_v37  ;;  %vm825_vm11 = vweird.f32 %v2191_v28  ;;  %v1439_v58 = vpop.eup %1438  ;;  %vm796_vm12 = vweird.f32 %v1437_v23 }
  0x7c   : > { %v779_v29 = vadd.f32 %v1431_v27, %v778_v15  ;;  %vm2221_vm13 = vcmp.eq.f32.partialorder %v814_v7, 8.507059e+37  ;;  %v817_v11 = vor.u32 1.1754944e-38, %v816_v12  ;;  %1444 = vrcp.f32 %v2216_v49  ;;  %vm2245_vm0 = vmor %vm795_vm6, %vm796_vm12 }
  0x7d   : > { %v1441_v2 = vpop.eup %1440  ;;  %v1052_v10 = vmul.f32 %v1748_v33, %v1016_v38  ;;  %v792_v60 = vsub.f32 1.0, %v791_v22  ;;  %vm2229_vm14 = vcmp.eq.f32.partialorder %v829_v61, 8.507059e+37  ;;  %v832_v1 = vor.u32 1.1754944e-38, %v831_v8 }
  0x7e   : > { %v783_v40 = vsel %vm2211_vm9, %v1431_v27, %v779_v29  ;;  %v806_v39 = vmul.f32 %v1441_v2, %v2182_v51  ;;  %v844_v19 = vand.u32 2147483647, %v2216_v49  ;;  %v846_v41 = vand.u32 2147483648, %v2216_v49 }
  0x7f   : > { %v1443_v25 = vpop.eup %1442  ;;  %v788_v45 = vsel %vm2167_vm3, %v787_v35, %v783_v40  ;;  %1084 = vst [vmem:[%s1778_s7 + $0x80] sm:$0xff] %v1052_v10  ;;  %v793_v4 = vmul.f32 %v1437_v23, %v792_v60  ;;  %vm840_vm15 = vweird.f32 %v2216_v49  ;;  %vm811_vm7 = vweird.f32 %v1441_v2  ;;  %v1327_v40 = vld [vmem:[%s1566_s25 + $0x70] sm:$0xff]  }
  0x80   : > { %v1017_v50 = vmul.f32 %v788_v45, %v2067_v59  ;;  %v821_v57 = vmul.f32 %v1443_v25, %v2191_v28  ;;  %v807_v26 = vsub.f32 1.0, %v806_v39  ;;  %vm826_vm1 = vweird.f32 %v1443_v25  ;;  %vm2263_vm3 = vmor %vm810_vm10, %vm811_vm7  ;;  %v2286_v28 = vld [vmem:[%s2550_s2] ss:$0 sm:$0xff] }
  0x81   : > { %v2249_v53 = vadd.f32 1.0, %v1439_v58  ;;  %v794_v6 = vadd.f32 %v1437_v23, %v793_v4  ;;  %v1237_v27 = vmul.f32 -1.442695, %v2172_v24  ;;  %vm2253_vm2 = vcmp.eq.f32.partialorder %v844_v19, 8.507059e+37  ;;  %vm2274_vm5 = vmor %vm825_vm11, %vm826_vm1 }
  0x82   : > { %v1053_v59 = vmul.f32 %v1748_v33, %v1017_v50  ;;  %v822_v35 = vsub.f32 1.0, %v821_v57  ;;  %v1445_v56 = vpop.eup %1444  ;;  %v808_v62 = vmul.f32 %v1441_v2, %v807_v26  ;;  %v847_v37 = vor.u32 1.1754944e-38, %v846_v41 }
  0x83   : > { %1446 = vrcp.f32 %v2249_v53  ;;  %v798_v18 = vsel %vm2245_vm0, %v1437_v23, %v794_v6  ;;  %v836_v36 = vmul.f32 %v1445_v56, %v2216_v49  ;;  %vm855_vm4 = vweird.f32 %v2249_v53 }
  0x84   : > { %1085 = vst [vmem:[%s1778_s7 + $0x88] sm:$0xff] %v1053_v59  ;;  %v823_v0 = vmul.f32 %v1443_v25, %v822_v35  ;;  %v803_v43 = vsel %vm2201_vm8, %v802_v21, %v798_v18  ;;  %v809_v46 = vadd.f32 %v1441_v2, %v808_v62  ;;  %vm841_vm6 = vweird.f32 %v1445_v56 }
  0x85   : > { %v859_v51 = vand.u32 2147483647, %v2249_v53  ;;  %v1018_v12 = vmul.f32 %v803_v43, %v2095_v34  ;;  %v837_v15 = vsub.f32 1.0, %v836_v36  ;;  %1448 = vpow2.f32 %v1237_v27  ;;  %v2295_v34 = vld [vmem:[%s2549_s1] ss:$0 sm:$0xff]  ;;  %vm2311_vm8 = vmor %vm840_vm15, %vm841_vm6  ;;  %v2374_v43 = vld [vmem:[%s1566_s25 + $0x78] sm:$0xff]  }
  0x86   : > { %v824_v48 = vadd.f32 %v1443_v25, %v823_v0  ;;  %v813_v16 = vsel %vm2263_vm3, %v1441_v2, %v809_v46  ;;  %v861_v61 = vand.u32 2147483648, %v2249_v53  ;;  %v2290_v8 = vadd.f32 %v2286_v28, %v2176_v14 }
  0x87   : > { %v349_v23 = vmul.f32 %v2295_v34, %v1301_v17  ;;  %v1054_v47 = vmul.f32 %v1748_v33, %v1018_v12  ;;  %v818_v30 = vsel %vm2221_vm13, %v817_v11, %v813_v16  ;;  %v838_v38 = vmul.f32 %v1445_v56, %v837_v15 }
  0x88   : > { %v828_v21 = vsel %vm2274_vm5, %v1443_v25, %v824_v48  ;;  %v1019_v29 = vmul.f32 %v818_v30, %v2106_v20  ;;  %v1238_v17 = vmul.f32 -1.442695, %v2290_v8  ;;  %v350_v10 = vmul.f32 %v2295_v34, %v1304_v31 }
  0x89   : > { %v1447_v14 = vpop.eup %1446  ;;  %v833_v22 = vsel %vm2229_vm14, %v832_v1, %v828_v21  ;;  %v2317_v58 = vadd.f32 %v2286_v28, %v349_v23  ;;  %1086 = vst [vmem:[%s1778_s7 + $0x90] sm:$0xff] %v1054_v47  ;;  %v839_v20 = vadd.f32 %v1445_v56, %v838_v38  ;;  %v351_v25 = vmul.f32 %v2295_v34, %v1305_v3 }
  0x8a   : > { %v1020_v9 = vmul.f32 %v833_v22, %v2110_v42  ;;  %v851_v11 = vmul.f32 %v1447_v14, %v2249_v53  ;;  %vm856_vm9 = vweird.f32 %v1447_v14  ;;  %v1055_v49 = vmul.f32 %v1748_v33, %v1019_v29 }
  0x8b   : > { %1450 = vpow2.f32 %v1238_v17  ;;  %v1239_v2 = vmul.f32 -1.442695, %v2317_v58  ;;  %v1449_v60 = vpop.eup %1448  ;;  %v843_v42 = vsel %vm2311_vm8, %v1445_v56, %v839_v20  ;;  %v2338_v31 = vadd.f32 %v2286_v28, %v350_v10  ;;  %vm2348_vm10 = vmor %vm855_vm4, %vm856_vm9 }
  0x8c   : > { %v1056_v63 = vmul.f32 %v1748_v33, %v1020_v9  ;;  %v852_v1 = vsub.f32 1.0, %v851_v11  ;;  %1087 = vst [vmem:[%s1778_s7 + $0x98] sm:$0xff] %v1055_v49  ;;  %v848_v45 = vsel %vm2253_vm2, %v847_v37, %v843_v42  ;;  %v511_v39 = vadd.f32 1.0, %v1449_v60 }
  0x8d   : > { %1452 = vpow2.f32 %v1239_v2  ;;  %v1021_v19 = vmul.f32 %v848_v45, %v2113_v13  ;;  %v2343_v50 = vadd.f32 %v2286_v28, %v351_v25  ;;  %v1308_v55 = vunpack.c.l.bf16 %v1327_v40 }
  0x8e   : > { %1088 = vst [vmem:[%s1778_s7 + $0xa0] sm:$0xff] %v1056_v63  ;;  %v853_v41 = vmul.f32 %v1447_v14, %v852_v1  ;;  %vm2352_vm11 = vcmp.eq.f32.partialorder %v859_v51, 8.507059e+37  ;;  %v862_v57 = vor.u32 1.1754944e-38, %v861_v61  ;;  %1454 = vrcp.f32 %v511_v39 }
  0x8f   : > { %v1057_v13 = vmul.f32 %v1748_v33, %v1021_v19  ;;  %v1240_v26 = vmul.f32 -1.442695, %v2338_v31  ;;  %v1241_v59 = vmul.f32 -1.442695, %v2343_v50  ;;  %v352_v53 = vmul.f32 %v2295_v34, %v1308_v55 }
  0x90   : > { %v854_v44 = vadd.f32 %v1447_v14, %v853_v41  ;;  %v1309_v35 = vunpack.c.h.bf16 %v1327_v40  ;;  %v874_v56 = vand.u32 2147483647, %v511_v39  ;;  %v876_v36 = vand.u32 2147483648, %v511_v39 }
  0x91   : > { %v1451_v6 = vpop.eup %1450  ;;  %1089 = vst [vmem:[%s1778_s7 + $0xa8] sm:$0xff] %v1057_v13  ;;  %1456 = vpow2.f32 %v1240_v26  ;;  %v2368_v18 = vadd.f32 %v2286_v28, %v352_v53  ;;  %vm870_vm12 = vweird.f32 %v511_v39  ;;  %v1312_v23 = vunpack.c.l.bf16 %v2374_v43 }
  0x92   : > { %v858_v27 = vsel %vm2348_vm10, %v1447_v14, %v854_v44  ;;  %v2363_v62 = vadd.f32 1.0, %v1451_v6  ;;  %1458 = vpow2.f32 %v1241_v59  ;;  %v353_v5 = vmul.f32 %v2295_v34, %v1309_v35 }
  0x93   : > { %v1453_v32 = vpop.eup %1452  ;;  %v863_v37 = vsel %vm2352_vm11, %v862_v57, %v858_v27  ;;  %v1242_v12 = vmul.f32 -1.442695, %v2368_v18  ;;  %vm2384_vm13 = vcmp.eq.f32.partialorder %v874_v56, 8.507059e+37  ;;  %v877_v14 = vor.u32 1.1754944e-38, %v876_v36 }
  0x94   : > { %v1022_v0 = vmul.f32 %v863_v37, %v2148_v54  ;;  %1460 = vrcp.f32 %v2363_v62  ;;  %v1455_v46 = vpop.eup %1454  ;;  %v889_v7 = vand.u32 2147483647, %v2363_v62  ;;  %v2377_v51 = vadd.f32 1.0, %v1453_v32 }
  0x95   : > { %v2381_v48 = vadd.f32 %v2286_v28, %v353_v5  ;;  %v866_v16 = vmul.f32 %v1455_v46, %v511_v39  ;;  %vm871_vm14 = vweird.f32 %v1455_v46  ;;  %v891_v61 = vand.u32 2147483648, %v2363_v62 }
  0x96   : > { %v1058_v15 = vmul.f32 %v1748_v33, %v1022_v0  ;;  %1462 = vrcp.f32 %v2377_v51  ;;  %v904_v21 = vand.u32 2147483647, %v2377_v51  ;;  %vm885_vm15 = vweird.f32 %v2363_v62  ;;  %vm2406_vm7 = vmor %vm870_vm12, %vm871_vm14 }
  0x97   : > { %v1457_v47 = vpop.eup %1456  ;;  %v867_v30 = vsub.f32 1.0, %v866_v16  ;;  %1464 = vpow2.f32 %v1242_v12  ;;  %v1243_v33 = vmul.f32 -1.442695, %v2381_v48  ;;  %vm2395_vm0 = vcmp.eq.f32.partialorder %v889_v7, 8.507059e+37 }
  0x98   : > { %1090 = vst [vmem:[%s1778_s7 + $0xb0] sm:$0xff] %v1058_v15  ;;  %v1459_v38 = vpop.eup %1458  ;;  %v2399_v22 = vadd.f32 1.0, %v1457_v47  ;;  %v906_v9 = vand.u32 2147483648, %v2377_v51  ;;  %v892_v2 = vor.u32 1.1754944e-38, %v891_v61  ;;  %vm900_vm1 = vweird.f32 %v2377_v51 }
  0x99   : > { %v868_v17 = vmul.f32 %v1455_v46, %v867_v30  ;;  %v2402_v20 = vadd.f32 1.0, %v1459_v38  ;;  %1466 = vpow2.f32 %v1243_v33  ;;  %vm2413_vm2 = vcmp.eq.f32.partialorder %v904_v21, 8.507059e+37 }
  0x9a   : > { %v1461_v52 = vpop.eup %1460  ;;  %1468 = vrcp.f32 %v2399_v22  ;;  %v354_v60 = vmul.f32 %v2295_v34, %v1312_v23  ;;  %v919_v1 = vand.u32 2147483647, %v2399_v22  ;;  %v1313_v25 = vunpack.c.h.bf16 %v2374_v43 }
  0x9b   : > { %v881_v49 = vmul.f32 %v1461_v52, %v2363_v62  ;;  %v869_v10 = vadd.f32 %v1455_v46, %v868_v17  ;;  %1470 = vrcp.f32 %v2402_v20  ;;  %vm886_vm3 = vweird.f32 %v1461_v52  ;;  %v2445_v62 = vld [vmem:[%s1561_s22] ss:$0 sm:$0xff] }
  0x9c   : > { %v1463_v63 = vpop.eup %1462  ;;  %v907_v41 = vor.u32 1.1754944e-38, %v906_v9  ;;  %vm915_vm4 = vweird.f32 %v2399_v22  ;;  %v921_v4 = vand.u32 2147483648, %v2399_v22  ;;  %vm930_vm5 = vweird.f32 %v2402_v20  ;;  %vm2432_vm6 = vmor %vm885_vm15, %vm886_vm3 }
  0x9d   : > { %v882_v42 = vsub.f32 1.0, %v881_v49  ;;  %v1465_v45 = vpop.eup %1464  ;;  %v873_v39 = vsel %vm2406_vm7, %v1455_v46, %v869_v10  ;;  %v896_v19 = vmul.f32 %v1463_v63, %v2377_v51  ;;  %vm901_vm8 = vweird.f32 %v1463_v63 }
  0x9e   : > { %v878_v55 = vsel %vm2384_vm13, %v877_v14, %v873_v39  ;;  %v2436_v59 = vadd.f32 1.0, %v1465_v45  ;;  %vm2438_vm9 = vcmp.eq.f32.partialorder %v919_v1, 8.507059e+37  ;;  %v934_v27 = vand.u32 2147483647, %v2402_v20  ;;  %vm2455_vm10 = vmor %vm900_vm1, %vm901_vm8 }
  0x9f   : > { %v883_v3 = vmul.f32 %v1461_v52, %v882_v42  ;;  %v1467_v57 = vpop.eup %1466  ;;  %v1023_v13 = vmul.f32 %v878_v55, %v2172_v24  ;;  %v897_v26 = vsub.f32 1.0, %v896_v19  ;;  %v936_v24 = vand.u32 2147483648, %v2402_v20 }
  0xa0   : > { %v1469_v6 = vpop.eup %1468  ;;  %v2449_v0 = vadd.f32 1.0, %v1467_v57  ;;  %1472 = vrcp.f32 %v2436_v59  ;;  %v2462_v7 = vadd.f32 %v2286_v28, %v354_v60  ;;  %v355_v61 = vmul.f32 %v2295_v34, %v1313_v25 }
  0xa1   : > { %v884_v53 = vadd.f32 %v1461_v52, %v883_v3  ;;  %v1471_v56 = vpop.eup %1470  ;;  %v1059_v32 = vmul.f32 %v2445_v62, %v1023_v13  ;;  %v898_v37 = vmul.f32 %v1463_v63, %v897_v26  ;;  %v911_v5 = vmul.f32 %v1469_v6, %v2399_v22 }
  0xa2   : > { %v926_v46 = vmul.f32 %v1471_v56, %v2402_v20  ;;  %vm916_vm11 = vweird.f32 %v1469_v6  ;;  %vm931_vm12 = vweird.f32 %v1471_v56  ;;  %v922_v30 = vor.u32 1.1754944e-38, %v921_v4 }
  0xa3   : > { %v888_v36 = vsel %vm2432_vm6, %v1461_v52, %v884_v53  ;;  %1091 = vst [vmem:[%s1778_s7 + $0xb8] sm:$0xff] %v1059_v32  ;;  %v899_v15 = vadd.f32 %v1463_v63, %v898_v37  ;;  %v912_v16 = vsub.f32 1.0, %v911_v5  ;;  %1474 = vrcp.f32 %v2449_v0  ;;  %vm2477_vm13 = vmor %vm915_vm4, %vm916_vm11 }
  0xa4   : > { %v893_v12 = vsel %vm2395_vm0, %v892_v2, %v888_v36  ;;  %v927_v54 = vsub.f32 1.0, %v926_v46  ;;  %vm2481_vm14 = vcmp.eq.f32.partialorder %v934_v27, 8.507059e+37  ;;  %vm2488_vm15 = vmor %vm930_vm5, %vm931_vm12  ;;  %v937_v17 = vor.u32 1.1754944e-38, %v936_v24 }
  0xa5   : > { %v1024_v51 = vmul.f32 %v893_v12, %v2290_v8  ;;  %v903_v23 = vsel %vm2455_vm10, %v1463_v63, %v899_v15  ;;  %v913_v47 = vmul.f32 %v1469_v6, %v912_v16  ;;  %vm945_vm0 = vweird.f32 %v2436_v59 }
  0xa6   : > { %v908_v33 = vsel %vm2413_vm2, %v907_v41, %v903_v23  ;;  %v928_v34 = vmul.f32 %v1471_v56, %v927_v54  ;;  %v1473_v22 = vpop.eup %1472  ;;  %v951_v11 = vand.u32 2147483648, %v2436_v59  ;;  %v1244_v49 = vmul.f32 -1.442695, %v2462_v7 }
  0xa7   : > { %v1060_v21 = vmul.f32 %v2445_v62, %v1024_v51  ;;  %v1025_v14 = vmul.f32 %v908_v33, %v2317_v58  ;;  %v914_v29 = vadd.f32 %v1469_v6, %v913_v47  ;;  %v2497_v58 = vadd.f32 %v2286_v28, %v355_v61 }
  0xa8   : > { %v929_v9 = vadd.f32 %v1471_v56, %v928_v34  ;;  %v941_v10 = vmul.f32 %v1473_v22, %v2436_v59  ;;  %v949_v40 = vand.u32 2147483647, %v2436_v59  ;;  %vm946_vm7 = vweird.f32 %v1473_v22 }
  0xa9   : > { %1092 = vst [vmem:[%s1778_s7 + $0xc0] sm:$0xff] %v1060_v21  ;;  %v1061_v20 = vmul.f32 %v2445_v62, %v1025_v14  ;;  %v918_v2 = vsel %vm2477_vm13, %v1469_v6, %v914_v29  ;;  %vm960_vm1 = vweird.f32 %v2449_v0  ;;  %v1475_v28 = vpop.eup %1474  ;;  %1476 = vpow2.f32 %v1244_v49  ;;  %vm947_vm2 = vmor %vm945_vm0, %vm946_vm7 }
  0xaa   : > { %v923_v60 = vsel %vm2438_vm9, %v922_v30, %v918_v2  ;;  %v933_v63 = vsel %vm2488_vm15, %v1471_v56, %v929_v9  ;;  %v942_v25 = vsub.f32 1.0, %v941_v10  ;;  %v952_v39 = vor.u32 1.1754944e-38, %v951_v11 }
  0xab   : > { %1093 = vst [vmem:[%s1778_s7 + $0xc8] sm:$0xff] %v1061_v20  ;;  %v1026_v42 = vmul.f32 %v923_v60, %v2338_v31  ;;  %v938_v1 = vsel %vm2481_vm14, %v937_v17, %v933_v63  ;;  %v956_v19 = vmul.f32 %v1475_v28, %v2449_v0  ;;  %v1245_v41 = vmul.f32 -1.442695, %v2497_v58 }
  0xac   : > { %v1027_v45 = vmul.f32 %v938_v1, %v2343_v50  ;;  %v943_v3 = vmul.f32 %v1473_v22, %v942_v25  ;;  %v964_v4 = vand.u32 2147483647, %v2449_v0  ;;  %v966_v31 = vand.u32 2147483648, %v2449_v0 }
  0xad   : > { %v1062_v55 = vmul.f32 %v2445_v62, %v1026_v42  ;;  %v957_v50 = vsub.f32 1.0, %v956_v19  ;;  %vm961_vm3 = vweird.f32 %v1475_v28  ;;  %1478 = vpow2.f32 %v1245_v41 }
  0xae   : > { %v1063_v57 = vmul.f32 %v2445_v62, %v1027_v45  ;;  %v944_v13 = vadd.f32 %v1473_v22, %v943_v3  ;;  %vm950_vm4 = vcmp.eq.f32.partialorder %v949_v40, 8.507059e+37  ;;  %vm962_vm5 = vmor %vm960_vm1, %vm961_vm3  ;;  %v967_v53 = vor.u32 1.1754944e-38, %v966_v31 }
  0xaf   : > { %1094 = vst [vmem:[%s1778_s7 + $0xd0] sm:$0xff] %v1062_v55  ;;  %v958_v44 = vmul.f32 %v1475_v28, %v957_v50  ;;  %v1477_v26 = vpop.eup %1476  ;;  %vm965_vm6 = vcmp.eq.f32.partialorder %v964_v4, 8.507059e+37 }
  0xb0   : > { %1095 = vst [vmem:[%s1778_s7 + $0xd8] sm:$0xff] %v1063_v57  ;;  %v948_v6 = vsel %vm947_vm2, %v1473_v22, %v944_v13  ;;  %v518_v59 = vadd.f32 1.0, %v1477_v26 }
  0xb1   : > { %v953_v35 = vsel %vm950_vm4, %v952_v39, %v948_v6  ;;  %v959_v27 = vadd.f32 %v1475_v28, %v958_v44 }
  0xb2   : > { %v1028_v24 = vmul.f32 %v953_v35, %v2368_v18  ;;  %1480 = vrcp.f32 %v518_v59  ;;  %v981_v15 = vand.u32 2147483648, %v518_v59  ;;  %vm975_vm8 = vweird.f32 %v518_v59 }
  0xb3   : > { %v1479_v56 = vpop.eup %1478  ;;  %v963_v32 = vsel %vm962_vm5, %v1475_v28, %v959_v27  ;;  %v979_v18 = vand.u32 2147483647, %v518_v59 }
  0xb4   : > { %v1064_v37 = vmul.f32 %v2445_v62, %v1028_v24  ;;  %v968_v5 = vsel %vm965_vm6, %v967_v53, %v963_v32  ;;  %v519_v36 = vadd.f32 1.0, %v1479_v56  ;;  %v982_v23 = vor.u32 1.1754944e-38, %v981_v15 }
  0xb5   : > { %v1029_v43 = vmul.f32 %v968_v5, %v2381_v48  ;;  %vm980_vm13 = vcmp.eq.f32.partialorder %v979_v18, 8.507059e+37 }
  0xb6   : > { %1096 = vst [vmem:[%s1778_s7 + $0xe0] sm:$0xff] %v1064_v37  ;;  %1482 = vrcp.f32 %v519_v36  ;;  %v996_v47 = vand.u32 2147483648, %v519_v36  ;;  %vm990_vm11 = vweird.f32 %v519_v36  ;;  %v994_v48 = vand.u32 2147483647, %v519_v36 }
  0xb7   : > { %v1065_v0 = vmul.f32 %v2445_v62, %v1029_v43 }
  0xb8   : > { %v1481_v46 = vpop.eup %1480  ;;  %v997_v34 = vor.u32 1.1754944e-38, %v996_v47  ;;  %vm995_vm15 = vcmp.eq.f32.partialorder %v994_v48, 8.507059e+37 }
  0xb9   : > { %1097 = vst [vmem:[%s1778_s7 + $0xe8] sm:$0xff] %v1065_v0  ;;  %v971_v12 = vmul.f32 %v1481_v46, %v518_v59  ;;  %vm976_vm9 = vweird.f32 %v1481_v46 }
  0xba   : > { %vm977_vm10 = vmor %vm975_vm8, %vm976_vm9 }
  0xbb   : > { %v972_v51 = vsub.f32 1.0, %v971_v12 }
  0xbc   : > { %v1483_v16 = vpop.eup %1482 }
  0xbd   : > { %v986_v54 = vmul.f32 %v1483_v16, %v519_v36  ;;  %v973_v61 = vmul.f32 %v1481_v46, %v972_v51  ;;  %vm991_vm12 = vweird.f32 %v1483_v16 }
  0xbe   : > { %vm992_vm14 = vmor %vm990_vm11, %vm991_vm12 }
  0xbf   : > { %v987_v30 = vsub.f32 1.0, %v986_v54  ;;  %v974_v21 = vadd.f32 %v1481_v46, %v973_v61 }
  0xc1   : > { %v988_v33 = vmul.f32 %v1483_v16, %v987_v30  ;;  %v978_v8 = vsel %vm977_vm10, %v1481_v46, %v974_v21 }
  0xc2   : > { %v983_v38 = vsel %vm980_vm13, %v982_v23, %v978_v8 }
  0xc3   : > { %v989_v14 = vadd.f32 %v1483_v16, %v988_v33  ;;  %v1030_v29 = vmul.f32 %v983_v38, %v2462_v7 }
  0xc5   : > { %v993_v52 = vsel %vm992_vm14, %v1483_v16, %v989_v14  ;;  %v1066_v17 = vmul.f32 %v2445_v62, %v1030_v29 }
  0xc6   : > { %v998_v22 = vsel %vm995_vm15, %v997_v34, %v993_v52 }
  0xc7   : > { %v1031_v9 = vmul.f32 %v998_v22, %v2497_v58  ;;  %1098 = vst [vmem:[%s1778_s7 + $0xf0] sm:$0xff] %v1066_v17 }
  0xc9   : > { %v1067_v11 = vmul.f32 %v2445_v62, %v1031_v9 }
  0xcb   : > { %1099 = vst [vmem:[%s1778_s7 + $0xf8] sm:$0xff] %v1067_v11 }
  0xcc PF: > { %s14_s17 = sadd.s32 1, %s1509_s17   ;;  %s2666_s15 = smov %s1505_s16 }
  0xcd   : > { %p11_p5 = scmp.ge.s32.totalorder %s14_s17, 4   ;;  %s2667_s16 = smov %s2669_s18 }
  0xcf   :  { %13 = sbr.rel (!%p11_p5) target bundleno = 2 (0x2), region = 69 }

// kernel: aspp_conv_forward.2
= control target key start
LH: loop header
LB: loop body
LE: loop exit
PB: predicated region body
PF: predicated region fallthrough
CT: control target
= control target key end

     0   :  { %s2877_s18 = smov 0   ;;  %s2879_s19 = smov 0   ;;  %s3669_s0 = inlined_call_operand.vmem [shape: bf16[2,20,20,4], index: 0, kind: input, shape index: {}]   ;;  %s3670_s1 = inlined_call_operand.vmem [shape: bf16[9,4,128], index: 1, kind: input, shape index: {}]   ;;  %s3671_s2 = inlined_call_operand.vmem [shape: bf16[2,16,16,128], index: 2, kind: output, shape index: {0}]   ;;  %s3672_s3 = inlined_call_operand.vmem [shape: f32[2,1,128], index: 3, kind: output, shape index: {1}]   ;;  %s3673_s4 = inlined_call_operand.vmem [shape: f32[2,1,128], index: 4, kind: output, shape index: {2}]   ;;  %s3674_s5 = inlined_call_operand.vmem [shape: f32[2,1,4], index: 5, kind: output, shape index: {3}]  }
   0x1   :  { %s2881_s20 = smov 0   ;;  %s2883_s21 = smov 0  }
   0x2   :  { %s2885_s22 = smov 0  }
   0x3 LB: > { %s25_s23 = sadd.s32 1, %s2836_s20  ;;  %s28_s24 = sadd.s32 1, %s2840_s21  ;;  %s2844_s22 = sphi %s2885_s22, %s16_s22   ;;  %s2840_s21 = sphi %s2883_s21, %s3682_s21   ;;  %s2836_s20 = sphi %s2881_s20, %s3681_s20   ;;  %s2832_s19 = sphi %s2879_s19, %s3680_s19   ;;  %s2828_s18 = sphi %s2877_s18, %s3679_s18  }
   0x4   : > { %p26_p0 = scmp.ge.s32.totalorder %s25_s23, 2  ;;  %p2337_p1 = scmp.ge.s32.totalorder %s2844_s22, 1 }
   0x5   : > { %p208_p2 = scmp.lt.s32.totalorder %s2844_s22, 5 }
   0x6   : > { %s3684_s23 = smov (%p26_p0, %s25_s23), 0  ;;  %s3686_s24 = smov (!%p26_p0, %s28_s24), %s2840_s21 }
   0x7   : > { %p209_p3 = pnand %p2337_p1, %p208_p2  ;;  %p30_p4 = scmp.ge.s32.totalorder %s3686_s24, 2 }
   0x8   : > { %p250_p5 = scmp.lt.s32.totalorder (!%p209_p3), %s2832_s19, 1  ;;  %s2689_s8 = smul.u32 (!%p209_p3), 96, %s2828_s18 }
   0x9   : > { %s3688_s24 = smov (%p30_p4, %s3686_s24), 0  ;;  %212 = sbr.rel (%p209_p3) target bundleno = 478 (0x1de), region = 28 }
   0xa   : > { %s2339_s16 = sshll.u32 (!%p209_p3), %s2828_s18, 3  ;;  %p2686_p7 = scmp.ne.s32.totalorder (!%p209_p3), %s2828_s18, 0 }
   0xb   : > { %p258_p6 = scmp.lt.s32.totalorder (!%p209_p3), %s2339_s16, 15 }
   0xe   : > { %v2354_v0 = vld [vmem:[%s3670_s1 + $0x2] sm:$0x3]  ;;  %vm447_vm0 = vcmask 1041408   ;;  %v2411_v2 = vld [vmem:[%s3670_s1 + $0x4] sm:$0x3]  ;;  %s3690_s19 = smov (!%p250_p5, %s2832_s19), 1 }
   0xf   : > { %v449_v1 = vsel %vm447_vm0, %v2354_v0, 0  ;;  %v750_v3 = vsel %vm447_vm0, %v2411_v2, 0  ;;  %v2438_v4 = vld [vmem:[%s3670_s1 + $0x6] sm:$0x3]  ;;  %v296_v5 = vld [vmem:[%s3670_s1] sm:$0x3]  ;;  %s2936_s14 = scalar_lea.vmem %s3672_s3, %s3690_s19  ;;  %s2943_s17 = scalar_lea.vmem %s3673_s4, %s3690_s19 }
  0x10   : > { %2761 = vmatpush.bf16.msra.mxu1 %v449_v1  ;;  %2762 = vmatpush.bf16.msra.mxu2 %v449_v1  ;;  %v904_v6 = vsel %vm447_vm0, %v2438_v4, 0  ;;  %v557_v7 = vsel %vm447_vm0, %v296_v5, 0  ;;  %v2511_v8 = vld [vmem:[%s3670_s1 + $0x8] sm:$0x3]  ;;  %s2764_s11 = smul.u32 240, %s3690_s19  ;;  %vm337_vm1 = vcmask 1042432   ;;  %s2949_s27 = scalar_lea.vmem %s3674_s5, %s3690_s19 }
  0x11   : > { %2763 = vmatpush.bf16.msra.mxu3 %v449_v1  ;;  %458 = vmatpush.bf16.msra.mxu0 %v449_v1  ;;  %vm338_vm2 = vcmask 1046532   ;;  %v1195_v9 = vsel %vm447_vm0, %v2511_v8, 0  ;;  %vm422_vm4 = vcmask 31744   ;;  %vm641_vm5 = vcmask 1045508   ;;  %s3692_s16 = smov (!%p258_p6, %s2339_s16), 15  ;;  %s2341_s26 = sshll.u32 %s3690_s19, 5 }
  0x12   : > { %s254_s30 = scalar_lea.vmem %s3669_s0, %s2764_s11  ;;  %vm2956_vm3 = vmor %vm337_vm1, %vm338_vm2  ;;  %s2340_s25 = sshll.u32 %s3692_s16, 1 }
  0x13   : > { %s2954_s6 = scalar_lea.vmem %s254_s30, %s2689_s8  ;;  %vm3091_vm6 = vmor %vm447_vm0, %vm641_vm5  ;;  %s262_s28 = sadd.s32 %s2341_s26, %s2340_s25 }
  0x14   : > { %759 = vmatpush.bf16.msrb.mxu2 %v750_v3  ;;  %566 = vmatpush.bf16.msrb.mxu1 %v557_v7  ;;  %v2961_v11 = vld [vmem:[%s2954_s6 + $0x1c] sm:$0xf]  ;;  %v301_v12 = vld [vmem:[%s2954_s6 + $0x18] sm:$0xe]  ;;  %v302_v13 = vld [vmem:[%s2954_s6 + $0x20] sm:$0x1] }
  0x15   : > { %913 = vmatpush.bf16.msrb.mxu3 %v904_v6  ;;  %1204 = vmatpush.bf16.msrb.mxu0 %v1195_v9  ;;  %v2348_v14 = vrot.slane %v301_v12, 9  ;;  %v356_v15 = vrot.slane %v2961_v11, 5  ;;  %v359_v16 = vrot.slane %v302_v13, 5  ;;  %v2967_v17 = vld [vmem:[%s2954_s6 + $0x34] sm:$0xf]  ;;  %s2342_s29 = sshll.u32 %s262_s28, 2 }
  0x16   : > { %v305_v18 = vld [vmem:[%s2954_s6 + $0x30] sm:$0xe]  ;;  %v306_v19 = vld [vmem:[%s2954_s6 + $0x38] sm:$0x1]  ;;  %v370_v20 = vrot.slane %v2967_v17, 5  ;;  %s3619_s7 = scalar_lea.vmem %s3671_s2, %s2342_s29 }
  0x17   : > { %v357_v21 = vsel %vm2956_vm3, %v2348_v14, %v356_v15  ;;  %v358_v22 = vrot.slane %v356_v15, 4  ;;  %v2350_v23 = vrot.slane %v305_v18, 9  ;;  %v373_v24 = vrot.slane %v306_v19, 5  ;;  %v2975_v25 = vld [vmem:[%s2954_s6 + $0x4c] sm:$0xf] }
  0x18   : > { %v402_v26 = vunpack.c.l.b16 %v357_v21  ;;  %v372_v27 = vrot.slane %v370_v20, 4  ;;  %v309_v28 = vld [vmem:[%s2954_s6 + $0x48] sm:$0xe]  ;;  %v310_v29 = vld [vmem:[%s2954_s6 + $0x50] sm:$0x1]  ;;  %v384_v30 = vrot.slane %v2975_v25, 5 }
  0x19   : > { %v360_v31 = vsel %vm2956_vm3, %v358_v22, %v359_v16  ;;  %v371_v32 = vsel %vm2956_vm3, %v2350_v23, %v370_v20  ;;  %v2352_v33 = vrot.slane %v309_v28, 9  ;;  %v387_v34 = vrot.slane %v310_v29, 5  ;;  %v2985_v35 = vld [vmem:[%s2954_s6 + $0x4] sm:$0xf]  ;;  %v297_v36 = vld [vmem:[%s2954_s6] sm:$0xe] }
  0x1a   : > { %v403_v37 = vunpack.c.l.b16 %v360_v31  ;;  %v374_v38 = vsel %vm2956_vm3, %v372_v27, %v373_v24  ;;  %v406_v39 = vunpack.c.l.b16 %v371_v32  ;;  %v386_v40 = vrot.slane %v384_v30, 4  ;;  %v298_v41 = vld [vmem:[%s2954_s6 + $0x8] sm:$0x1]  ;;  %v303_v51 = vld [vmem:[%s2954_s6 + $0x24] sm:$0xe] }
  0x1b   : > { %v407_v42 = vunpack.c.l.b16 %v374_v38  ;;  %v385_v43 = vsel %vm2956_vm3, %v2352_v33, %v384_v30  ;;  %v2346_v44 = vrot.slane %v297_v36, 9  ;;  %v342_v45 = vrot.slane %v2985_v35, 5  ;;  %v2995_v46 = vld [vmem:[%s2954_s6 + $0x28] sm:$0xf]  ;;  %v304_v52 = vld [vmem:[%s2954_s6 + $0x2c] sm:$0x1] }
  0x1c   : > { %v416_v47 = vpack.c.b16 %v403_v37, %v402_v26  ;;  %v388_v48 = vsel %vm2956_vm3, %v386_v40, %v387_v34  ;;  %v410_v49 = vunpack.c.l.b16 %v385_v43  ;;  %v345_v50 = vrot.slane %v298_v41, 5  ;;  %v3004_v57 = vld [vmem:[%s2954_s6 + $0x40] sm:$0xf]  ;;  %v307_v58 = vld [vmem:[%s2954_s6 + $0x3c] sm:$0xe] }
  0x1d   : > { %v418_v53 = vpack.c.b16 %v407_v42, %v406_v39  ;;  %v411_v54 = vunpack.c.l.b16 %v388_v48  ;;  %v343_v55 = vsel %vm2956_vm3, %v2346_v44, %v342_v45  ;;  %v344_v56 = vrot.slane %v342_v45, 4  ;;  %v308_v61 = vld [vmem:[%s2954_s6 + $0x44] sm:$0x1]  ;;  %v3011_v62 = vld [vmem:[%s2954_s6 + $0x58] sm:$0xf] }
  0x1e   : > { %2357 = vmatmul.msk.bf16.vlgmr.msra.gmra.mxu1 %vm422_vm4, %v416_v47  ;;  %v398_v59 = vunpack.c.l.b16 %v343_v55  ;;  %v363_v60 = vrot.slane %v2995_v46, 5  ;;  %v2349_v1 = vrot.slane %v303_v51, 9  ;;  %v366_v2 = vrot.slane %v304_v52, 5  ;;  %v311_v3 = vld [vmem:[%s2954_s6 + $0x54] sm:$0xe] }
  0x1f   : > { %2359 = vmatmul.msk.bf16.vlgmr.msra.gmra.mxu2 %vm422_vm4, %v418_v53  ;;  %v420_v63 = vpack.c.b16 %v411_v54, %v410_v49  ;;  %v346_v0 = vsel %vm2956_vm3, %v344_v56, %v345_v50  ;;  %v2351_v6 = vrot.slane %v307_v58, 9  ;;  %v377_v7 = vrot.slane %v3004_v57, 5  ;;  %v312_v9 = vld [vmem:[%s2954_s6 + $0x5c] sm:$0x1]  ;;  %v299_v13 = vld [vmem:[%s2954_s6 + $0xc] sm:$0xe] }
  0x20   : > { %v399_v4 = vunpack.c.l.b16 %v346_v0  ;;  %v365_v5 = vrot.slane %v363_v60, 4  ;;  %v380_v8 = vrot.slane %v308_v61, 5  ;;  %v391_v12 = vrot.slane %v3011_v62, 5  ;;  %v3023_v18 = vld [vmem:[%s2954_s6 + $0x10] sm:$0xf] }
  0x21   : > { %2361 = vmatmul.msk.bf16.vlgmr.msra.gmra.mxu3 %vm422_vm4, %v420_v63  ;;  %v379_v15 = vrot.slane %v377_v7, 4  ;;  %v2353_v16 = vrot.slane %v311_v3, 9  ;;  %v300_v19 = vld [vmem:[%s2954_s6 + $0x14] sm:$0x1]  ;;  %v364_v20 = vsel %vm2956_vm3, %v2349_v1, %v363_v60  ;;  %v378_v23 = vsel %vm2956_vm3, %v2351_v6, %v377_v7  ;;  %v2571_v30 = vld [vmem:[%s3670_s1 + $0xc] sm:$0x3] }
  0x22   : > { %v414_v14 = vpack.c.b16 %v399_v4, %v398_v59  ;;  %v367_v21 = vsel %vm2956_vm3, %v365_v5, %v366_v2  ;;  %v393_v22 = vrot.slane %v391_v12, 4  ;;  %v394_v26 = vrot.slane %v312_v9, 5  ;;  %v2479_v36 = vld [vmem:[%s2954_s6 + $0x18] sm:$0xe]  ;;  %v3045_v40 = vld [vmem:[%s2954_s6 + $0x1c] sm:$0xf] }
  0x23   : > { %v381_v24 = vsel %vm2956_vm3, %v379_v15, %v380_v8  ;;  %v2347_v27 = vrot.slane %v299_v13, 9  ;;  %v349_v28 = vrot.slane %v3023_v18, 5  ;;  %v352_v29 = vrot.slane %v300_v19, 5  ;;  %v2481_v41 = vld [vmem:[%s2954_s6 + $0x20] sm:$0x1] }
  0x24   : > { %2355 = vmatmul.msk.bf16.vlgmr.msra.gmra.mxu0 %vm422_vm4, %v414_v14  ;;  %v404_v31 = vunpack.c.l.b16 %v364_v20  ;;  %v405_v32 = vunpack.c.l.b16 %v367_v21  ;;  %v392_v33 = vsel %vm2956_vm3, %v2353_v16, %v391_v12  ;;  %v395_v34 = vsel %vm2956_vm3, %v393_v22, %v394_v26  ;;  %v2644_v44 = vld [vmem:[%s3670_s1 + $0xe] sm:$0x3]  ;;  %v2544_v45 = vld [vmem:[%s3670_s1 + $0xa] sm:$0x3]  ;;  %v2677_v51 = vld [vmem:[%s3670_s1 + $0x10] sm:$0x3] }
  0x25   : > { %v408_v37 = vunpack.c.l.b16 %v378_v23  ;;  %v409_v38 = vunpack.c.l.b16 %v381_v24  ;;  %v351_v39 = vrot.slane %v349_v28, 4  ;;  %v350_v42 = vsel %vm2956_vm3, %v2347_v27, %v349_v28  ;;  %v608_v58 = vld [vmem:[%s2954_s6] sm:$0xc]  ;;  %v2482_v2 = vld [vmem:[%s2954_s6 + $0x24] sm:$0xe] }
  0x26   : > { %v1555_v43 = vsel %vm447_vm0, %v2571_v30, 0  ;;  %v645_v47 = vrot.slane %v2985_v35, 6  ;;  %v412_v48 = vunpack.c.l.b16 %v392_v33  ;;  %v413_v49 = vunpack.c.l.b16 %v395_v34  ;;  %v3074_v3 = vld [vmem:[%s2954_s6 + $0x28] sm:$0xf]  ;;  %v2484_v8 = vld [vmem:[%s2954_s6 + $0x2c] sm:$0x1] }
  0x27   : > { %v353_v50 = vsel %vm2956_vm3, %v351_v39, %v352_v29  ;;  %1564 = vmatpush.bf16.msra.mxu2 %v1555_v43  ;;  %v417_v52 = vpack.c.b16 %v405_v32, %v404_v31  ;;  %v2503_v53 = vrot.slane %v2479_v36, 9  ;;  %v1021_v54 = vrot.slane %v3045_v40, 5  ;;  %v609_v5 = vld [vmem:[%s2954_s6 + $0x8] sm:$0x3] }
  0x28   : > { %v1024_v55 = vrot.slane %v2481_v41, 5  ;;  %v419_v56 = vpack.c.b16 %v409_v38, %v408_v37  ;;  %v400_v35 = vunpack.c.l.b16 %v350_v42  ;;  %v1777_v59 = vsel %vm447_vm0, %v2644_v44, 0  ;;  %v2690_v41 = vld [vmem:[%s2954_s6] sm:$0xff]  ;;  %v3112_v42 = vld [vmem:[%s2954_s6 + $0x34] sm:$0xf] }
  0x29   : > { %v1401_v60 = vsel %vm447_vm0, %v2544_v45, 0  ;;  %v401_v61 = vunpack.c.l.b16 %v353_v50  ;;  %v3069_v63 = vsel %vm2956_vm3, %v2503_v53, %v1021_v54  ;;  %v1023_v0 = vrot.slane %v1021_v54, 4  ;;  %1786 = vmatpush.bf16.msra.mxu3 %v1777_v59  ;;  %v610_v44 = vld [vmem:[%s2954_s6 + $0xc] sm:$0xc]  ;;  %v611_v45 = vld [vmem:[%s2954_s6 + $0x14] sm:$0x3] }
  0x2a   : > { %1410 = vmatpush.bf16.msra.mxu1 %v1401_v60  ;;  %v1983_v1 = vsel %vm447_vm0, %v2677_v51, 0  ;;  %v421_v4 = vpack.c.b16 %v413_v49, %v412_v48  ;;  %v1091_v6 = vunpack.c.l.bf16 %v3069_v63  ;;  %v2504_v9 = vrot.slane %v2482_v2, 9  ;;  %v2485_v51 = vld [vmem:[%s2954_s6 + $0x30] sm:$0xe]  ;;  %v2698_v53 = vld [vmem:[%s2954_s6 + $0x18] sm:$0xff] }
  0x2b   : > { %1992 = vmatpush.bf16.msra.mxu0 %v1983_v1  ;;  %v1025_v7 = vsel %vm2956_vm3, %v1023_v0, %v1024_v55  ;;  %v1028_v12 = vrot.slane %v3074_v3, 5  ;;  %v2403_v13 = vrot.slane %v608_v58, 10  ;;  %v647_v14 = vrot.slane %v645_v47, 4 }
  0x2c   : > { %v1092_v15 = vunpack.c.l.bf16 %v1025_v7  ;;  %v1107_v16 = vsel %vm422_vm4, %v1091_v6, 0.0  ;;  %v415_v19 = vpack.c.b16 %v401_v61, %v400_v35  ;;  %v648_v20 = vrot.slane %v609_v5, 6 }
  0x2d   : > { %v3087_v21 = vsel %vm2956_vm3, %v2504_v9, %v1028_v12  ;;  %v1030_v22 = vrot.slane %v1028_v12, 4  ;;  %v1031_v26 = vrot.slane %v2484_v8, 5  ;;  %v646_v31 = vsel %vm3091_vm6, %v2403_v13, %v645_v47  ;;  %v2691_v12 = vld [vmem:[%s2954_s6 + $0xc] sm:$0xff] }
  0x2e   : > { %2358 = vmatmul.msk.bf16.gmra.mxu1 %vm422_vm4, %v417_v52  ;;  %v1108_v24 = vsel %vm422_vm4, %v1092_v15, 0.0  ;;  %v1093_v27 = vunpack.c.l.bf16 %v3087_v21  ;;  %v649_v32 = vsel %vm3091_vm6, %v647_v14, %v648_v20  ;;  %v701_v37 = vunpack.c.l.b16 %v646_v31  ;;  %v2487_v52 = vld [vmem:[%s2954_s6 + $0x38] sm:$0x1]  ;;  %v3145_v14 = vld [vmem:[%s2954_s6 + $0x40] sm:$0xf] }
  0x2f   : > { %2360 = vmatmul.msk.bf16.gmra.mxu2 %vm422_vm4, %v419_v56  ;;  %v1109_v28 = vadd.f32 %v1108_v24, %v1107_v16  ;;  %v3100_v29 = vsel %vm2956_vm3, %v1030_v22, %v1031_v26  ;;  %v702_v38 = vunpack.c.l.b16 %v649_v32  ;;  %v1035_v47 = vrot.slane %v3112_v42, 5  ;;  %v612_v22 = vld [vmem:[%s2954_s6 + $0x18] sm:$0xc]  ;;  %v2488_v24 = vld [vmem:[%s2954_s6 + $0x3c] sm:$0xe] }
  0x30   : > { %v1110_v30 = vsel %vm422_vm4, %v1093_v27, 0.0  ;;  %v1094_v33 = vunpack.c.l.bf16 %v3100_v29  ;;  %v1146_v48 = vunpack.c.l.b16 %v3069_v63  ;;  %v1147_v49 = vunpack.c.l.b16 %v1025_v7  ;;  %v2490_v26 = vld [vmem:[%s2954_s6 + $0x44] sm:$0x1] }
  0x31   : > { %2362 = vmatmul.msk.bf16.gmra.mxu3 %vm422_vm4, %v421_v4  ;;  %v1111_v34 = vadd.f32 %v1110_v30, %v1109_v28  ;;  %v717_v43 = vpack.c.b16 %v702_v38, %v701_v37  ;;  %v652_v50 = vrot.slane %v3023_v18, 6  ;;  %v2505_v54 = vrot.slane %v2485_v51, 9  ;;  %v2699_v27 = vld [vmem:[%s2954_s6 + $0x24] sm:$0xff]  ;;  %v613_v28 = vld [vmem:[%s2954_s6 + $0x20] sm:$0x3] }
  0x32   : > { %v1112_v36 = vsel %vm422_vm4, %v1094_v33, 0.0  ;;  %v1037_v55 = vrot.slane %v1035_v47, 4  ;;  %v1038_v56 = vrot.slane %v2487_v52, 5  ;;  %v2404_v35 = vrot.slane %v610_v44, 10  ;;  %v3177_v51 = vld [vmem:[%s2954_s6 + $0x4c] sm:$0xf] }
  0x33   : > { %v1113_v39 = vadd.f32 %v1112_v36, %v1111_v34  ;;  %v655_v58 = vrot.slane %v611_v45, 6  ;;  %v1162_v59 = vpack.c.b16 %v1147_v49, %v1146_v48  ;;  %v654_v60 = vrot.slane %v652_v50, 4 }
  0x34   : > { %2356 = vmatmul.msk.bf16.gmra.mxu0 %vm422_vm4, %v415_v19  ;;  %v3126_v61 = vsel %vm2956_vm3, %v2505_v54, %v1035_v47  ;;  %v3130_v18 = vsel %vm2956_vm3, %v1037_v55, %v1038_v56  ;;  %v653_v4 = vsel %vm3091_vm6, %v2404_v35, %v652_v50  ;;  %v1148_v13 = vunpack.c.l.b16 %v3087_v21  ;;  %v2692_v50 = vld [vmem:[%s2954_s6 + $0x18] sm:$0xff] }
  0x35   : > { %v1095_v63 = vunpack.c.l.bf16 %v3126_v61  ;;  %v1096_v0 = vunpack.c.l.bf16 %v3130_v18  ;;  %v656_v5 = vsel %vm3091_vm6, %v654_v60, %v655_v58  ;;  %v703_v8 = vunpack.c.l.b16 %v653_v4  ;;  %v615_v58 = vld [vmem:[%s2954_s6 + $0x2c] sm:$0x3]  ;;  %v2493_v60 = vld [vmem:[%s2954_s6 + $0x50] sm:$0x1] }
  0x36   : > { %v704_v9 = vunpack.c.l.b16 %v656_v5  ;;  %v1149_v16 = vunpack.c.l.b16 %v3100_v29  ;;  %v659_v19 = vrot.slane %v2961_v11, 6  ;;  %v1042_v20 = vrot.slane %v3145_v14, 5 }
  0x37   : > { %v1114_v1 = vsel %vm422_vm4, %v1095_v63, 0.0  ;;  %v1116_v2 = vsel %vm422_vm4, %v1096_v0, 0.0  ;;  %v2506_v30 = vrot.slane %v2488_v24, 9  ;;  %v1045_v32 = vrot.slane %v2490_v26, 5  ;;  %v2700_v63 = vld [vmem:[%s2954_s6 + $0x30] sm:$0xff]  ;;  %v2693_v24 = vld [vmem:[%s2954_s6 + $0x24] sm:$0xff] }
  0x38   : > { %v1115_v6 = vadd.f32 %v1114_v1, %v1113_v39  ;;  %v718_v15 = vpack.c.b16 %v704_v9, %v703_v8  ;;  %v1044_v31 = vrot.slane %v1042_v20, 4  ;;  %v1163_v21 = vpack.c.b16 %v1149_v16, %v1148_v13 }
  0x39   : > { %v2405_v33 = vrot.slane %v612_v22, 10  ;;  %v661_v34 = vrot.slane %v659_v19, 4  ;;  %v662_v29 = vrot.slane %v613_v28, 6  ;;  %v3159_v11 = vsel %vm2956_vm3, %v2506_v30, %v1042_v20 }
  0x3a   : > { %v1117_v7 = vadd.f32 %v1116_v2, %v1115_v6  ;;  %v3163_v36 = vsel %vm2956_vm3, %v1044_v31, %v1045_v32  ;;  %v1097_v37 = vunpack.c.l.bf16 %v3159_v11  ;;  %v666_v54 = vrot.slane %v2995_v46, 6 }
  0x3b   : > { %v1098_v38 = vunpack.c.l.bf16 %v3163_v36  ;;  %v663_v44 = vsel %vm3091_vm6, %v661_v34, %v662_v29  ;;  %v1049_v55 = vrot.slane %v3177_v51, 5  ;;  %v1150_v56 = vunpack.c.l.b16 %v3126_v61  ;;  %v2496_v34 = vld [vmem:[%s2954_s6 + $0x5c] sm:$0x1] }
  0x3c   : > { %v1118_v39 = vsel %vm422_vm4, %v1097_v37, 0.0  ;;  %v706_v49 = vunpack.c.l.b16 %v663_v44  ;;  %v1151_v35 = vunpack.c.l.b16 %v3130_v18  ;;  %v1052_v2 = vrot.slane %v2493_v60, 5  ;;  %v2701_v29 = vld [vmem:[%s2954_s6 + $0x3c] sm:$0xff]  ;;  %v617_v37 = vld [vmem:[%s2954_s6 + $0x38] sm:$0x3] }
  0x3d   : > { %v1119_v45 = vadd.f32 %v1118_v39, %v1117_v7  ;;  %v1051_v1 = vrot.slane %v1049_v55, 4  ;;  %v668_v5 = vrot.slane %v666_v54, 4  ;;  %v669_v46 = vrot.slane %v615_v58, 6  ;;  %v2694_v58 = vld [vmem:[%s2954_s6 + $0x30] sm:$0xff] }
  0x3e   : > { %2395 = vmatmul.msk.bf16.vlgmr.msrb.gmra.mxu1 %vm422_vm4, %v2690_v41  ;;  %v1120_v41 = vsel %vm422_vm4, %v1098_v38, 0.0  ;;  %v1164_v6 = vpack.c.b16 %v1151_v35, %v1150_v56  ;;  %v1152_v28 = vunpack.c.l.b16 %v3159_v11  ;;  %v1153_v30 = vunpack.c.l.b16 %v3163_v36 }
  0x3f   : > { %2412 = vmatmul.msk.bf16.vlgmr.msrb.gmra.mxu2 %vm422_vm4, %v717_v43  ;;  %v660_v43 = vsel %vm3091_vm6, %v2405_v33, %v659_v19  ;;  %v1121_v47 = vadd.f32 %v1120_v41, %v1119_v45  ;;  %v3196_v18 = vsel %vm2956_vm3, %v1051_v1, %v1052_v2  ;;  %v673_v31 = vrot.slane %v2967_v17, 6  ;;  %v2494_v33 = vld [vmem:[%s2954_s6 + $0x54] sm:$0xe] }
  0x40   : > { %v705_v48 = vunpack.c.l.b16 %v660_v43  ;;  %v1100_v8 = vunpack.c.l.bf16 %v3196_v18  ;;  %v2508_v38 = vrot.slane %v2494_v33, 9  ;;  %v1059_v41 = vrot.slane %v2496_v34, 5  ;;  %v2695_v33 = vld [vmem:[%s2954_s6 + $0x3c] sm:$0xff] }
  0x41   : > { %2471 = vmatmul.msk.bf16.vlgmr.msrb.gmra.mxu3 %vm422_vm4, %v2698_v53  ;;  %v614_v53 = vld [vmem:[%s2954_s6 + $0x24] sm:$0xc]  ;;  %v1165_v43 = vpack.c.b16 %v1153_v30, %v1152_v28  ;;  %v675_v44 = vrot.slane %v673_v31, 4  ;;  %v676_v36 = vrot.slane %v617_v37, 6 }
  0x42   : > { %v719_v52 = vpack.c.b16 %v706_v49, %v705_v48  ;;  %v2406_v4 = vrot.slane %v614_v53, 10 }
  0x43   : > { %v677_v53 = vsel %vm3091_vm6, %v675_v44, %v676_v36  ;;  %v2502_v44 = vld [vmem:[%s2954_s6 + $0x74] sm:$0x1] }
  0x44   : > { %2512 = vmatmul.msk.bf16.vlgmr.msrb.gmra.mxu0 %vm422_vm4, %v1162_v59  ;;  %v2491_v59 = vld [vmem:[%s2954_s6 + $0x48] sm:$0xe]  ;;  %v667_v9 = vsel %vm3091_vm6, %v2406_v4, %v666_v54  ;;  %v710_v35 = vunpack.c.l.b16 %v677_v53  ;;  %v1155_v4 = vunpack.c.l.b16 %v3196_v18  ;;  %v2703_v36 = vld [vmem:[%s2954_s6 + $0x54] sm:$0xff] }
  0x45   : > { %v2507_v0 = vrot.slane %v2491_v59, 9  ;;  %v707_v19 = vunpack.c.l.b16 %v667_v9  ;;  %v3243_v59 = vld [vmem:[%s2954_s6 + $0x64] sm:$0xf] }
  0x46   : > { %v1063_v1 = vrot.slane %v3243_v59, 5 }
  0x47   : > { %v3192_v61 = vsel %vm2956_vm3, %v2507_v0, %v1049_v55  ;;  %v680_v0 = vrot.slane %v3004_v57, 6 }
  0x48   : > { %v1099_v7 = vunpack.c.l.bf16 %v3192_v61  ;;  %v1154_v2 = vunpack.c.l.b16 %v3192_v61  ;;  %v1065_v9 = vrot.slane %v1063_v1, 4 }
  0x4a   : > { %v1122_v13 = vsel %vm422_vm4, %v1099_v7, 0.0  ;;  %v2702_v7 = vld [vmem:[%s2954_s6 + $0x48] sm:$0xff] }
  0x4b   : > { %v1123_v16 = vadd.f32 %v1122_v13, %v1121_v47 }
  0x4e   : > { %2396 = vmatmul.msk.bf16.gmra.mxu1 %vm422_vm4, %v2691_v12  ;;  %v670_v12 = vsel %vm3091_vm6, %v668_v5, %v669_v46  ;;  %v619_v5 = vld [vmem:[%s2954_s6 + $0x44] sm:$0x3]  ;;  %v2497_v46 = vld [vmem:[%s2954_s6 + $0x60] sm:$0xe] }
  0x4f   : > { %2413 = vmatmul.msk.bf16.gmra.mxu2 %vm422_vm4, %v718_v15  ;;  %v1124_v15 = vsel %vm422_vm4, %v1100_v8, 0.0  ;;  %v708_v20 = vunpack.c.l.b16 %v670_v12  ;;  %v2509_v8 = vrot.slane %v2497_v46, 9  ;;  %v683_v57 = vrot.slane %v619_v5, 6  ;;  %v2696_v46 = vld [vmem:[%s2954_s6 + $0x48] sm:$0xff] }
  0x50   : > { %v1125_v22 = vadd.f32 %v1124_v15, %v1123_v16  ;;  %v682_v15 = vrot.slane %v680_v0, 4  ;;  %v1166_v16 = vpack.c.b16 %v1155_v4, %v1154_v2 }
  0x51   : > { %2472 = vmatmul.msk.bf16.gmra.mxu3 %vm422_vm4, %v2699_v27  ;;  %v720_v26 = vpack.c.b16 %v708_v20, %v707_v19  ;;  %v3210_v27 = vld [vmem:[%s2954_s6 + $0x58] sm:$0xf]  ;;  %v3258_v61 = vsel %vm2956_vm3, %v2509_v8, %v1063_v1 }
  0x52   : > { %v1056_v32 = vrot.slane %v3210_v27, 5  ;;  %v1103_v19 = vunpack.c.l.bf16 %v3258_v61 }
  0x54   : > { %2513 = vmatmul.msk.bf16.gmra.mxu0 %vm422_vm4, %v1163_v21  ;;  %v616_v21 = vld [vmem:[%s2954_s6 + $0x30] sm:$0xc]  ;;  %v1058_v39 = vrot.slane %v1056_v32, 4  ;;  %v3225_v17 = vsel %vm2956_vm3, %v2508_v38, %v1056_v32 }
  0x55   : > { %v2407_v11 = vrot.slane %v616_v21, 10  ;;  %v1101_v47 = vunpack.c.l.bf16 %v3225_v17  ;;  %v1156_v37 = vunpack.c.l.b16 %v3225_v17 }
  0x56   : > { %v3229_v45 = vsel %vm2956_vm3, %v1058_v39, %v1059_v41  ;;  %v687_v39 = vrot.slane %v2975_v25, 6 }
  0x57   : > { %v1102_v48 = vunpack.c.l.bf16 %v3229_v45  ;;  %v1126_v49 = vsel %vm422_vm4, %v1101_v47, 0.0  ;;  %v1157_v38 = vunpack.c.l.b16 %v3229_v45  ;;  %v621_v47 = vld [vmem:[%s2954_s6 + $0x50] sm:$0x3] }
  0x58   : > { %v1127_v54 = vadd.f32 %v1126_v49, %v1125_v22  ;;  %v689_v53 = vrot.slane %v687_v39, 4  ;;  %v690_v45 = vrot.slane %v621_v47, 6 }
  0x5e   : > { %2397 = vmatmul.msk.bf16.gmra.mxu1 %vm422_vm4, %v2692_v50  ;;  %v1128_v50 = vsel %vm422_vm4, %v1102_v48, 0.0 }
  0x5f   : > { %2414 = vmatmul.msk.bf16.gmra.mxu2 %vm422_vm4, %v719_v52  ;;  %v674_v52 = vsel %vm3091_vm6, %v2407_v11, %v673_v31  ;;  %v1129_v55 = vadd.f32 %v1128_v50, %v1127_v54  ;;  %v2500_v11 = vld [vmem:[%s2954_s6 + $0x6c] sm:$0xe]  ;;  %v1073_v50 = vrot.slane %v2502_v44, 5 }
  0x60   : > { %v709_v56 = vunpack.c.l.b16 %v674_v52  ;;  %v2510_v48 = vrot.slane %v2500_v11, 9  ;;  %v1167_v52 = vpack.c.b16 %v1157_v38, %v1156_v37 }
  0x61   : > { %2473 = vmatmul.msk.bf16.gmra.mxu3 %vm422_vm4, %v2700_v63  ;;  %v618_v63 = vld [vmem:[%s2954_s6 + $0x3c] sm:$0xc] }
  0x62   : > { %v721_v60 = vpack.c.b16 %v710_v35, %v709_v56  ;;  %v2408_v13 = vrot.slane %v618_v63, 10  ;;  %v691_v63 = vsel %vm3091_vm6, %v689_v53, %v690_v45  ;;  %v2612_v53 = vld [vmem:[%s2954_s6 + $0x30] sm:$0xe] }
  0x63   : > { %v714_v4 = vunpack.c.l.b16 %v691_v63 }
  0x64   : > { %2514 = vmatmul.msk.bf16.gmra.mxu0 %vm422_vm4, %v1164_v6  ;;  %v2499_v6 = vld [vmem:[%s2954_s6 + $0x68] sm:$0x1]  ;;  %v681_v22 = vsel %vm3091_vm6, %v2408_v13, %v680_v0  ;;  %v694_v13 = vrot.slane %v3011_v62, 6 }
  0x65   : > { %v1066_v12 = vrot.slane %v2499_v6, 5  ;;  %v711_v31 = vunpack.c.l.b16 %v681_v22 }
  0x67   : > { %v3262_v18 = vsel %vm2956_vm3, %v1065_v9, %v1066_v12  ;;  %v1158_v9 = vunpack.c.l.b16 %v3258_v61 }
  0x68   : > { %v1104_v20 = vunpack.c.l.bf16 %v3262_v18  ;;  %v1159_v12 = vunpack.c.l.b16 %v3262_v18 }
  0x6a   : > { %v1132_v28 = vsel %vm422_vm4, %v1104_v20, 0.0  ;;  %v1168_v22 = vpack.c.b16 %v1159_v12, %v1158_v9 }
  0x6e   : > { %2398 = vmatmul.msk.bf16.gmra.mxu1 %vm422_vm4, %v2693_v24  ;;  %v684_v24 = vsel %vm3091_vm6, %v682_v15, %v683_v57  ;;  %v2704_v57 = vld [vmem:[%s2954_s6 + $0x60] sm:$0xff] }
  0x6f   : > { %2415 = vmatmul.msk.bf16.gmra.mxu2 %vm422_vm4, %v720_v26  ;;  %v1130_v26 = vsel %vm422_vm4, %v1103_v19, 0.0  ;;  %v712_v32 = vunpack.c.l.b16 %v684_v24  ;;  %v623_v19 = vld [vmem:[%s2954_s6 + $0x5c] sm:$0x3] }
  0x70   : > { %v1131_v30 = vadd.f32 %v1130_v26, %v1129_v55  ;;  %v696_v26 = vrot.slane %v694_v13, 4 }
  0x71   : > { %2474 = vmatmul.msk.bf16.gmra.mxu3 %vm422_vm4, %v2701_v29  ;;  %v722_v34 = vpack.c.b16 %v712_v32, %v711_v31  ;;  %v3276_v29 = vld [vmem:[%s2954_s6 + $0x70] sm:$0xf] }
  0x72   : > { %v1133_v21 = vadd.f32 %v1132_v28, %v1131_v30  ;;  %v1070_v41 = vrot.slane %v3276_v29, 5  ;;  %v697_v28 = vrot.slane %v623_v19, 6 }
  0x74   : > { %2515 = vmatmul.msk.bf16.gmra.mxu0 %vm422_vm4, %v1165_v43  ;;  %v620_v43 = vld [vmem:[%s2954_s6 + $0x48] sm:$0xc]  ;;  %v1072_v49 = vrot.slane %v1070_v41, 4  ;;  %v3291_v25 = vsel %vm2956_vm3, %v2510_v48, %v1070_v41  ;;  %v2697_v41 = vld [vmem:[%s2954_s6 + $0x54] sm:$0xff] }
  0x75   : > { %v2409_v17 = vrot.slane %v620_v43, 10  ;;  %v1105_v55 = vunpack.c.l.bf16 %v3291_v25  ;;  %v1296_v43 = vrot.slane %v3045_v40, 6  ;;  %v1160_v48 = vunpack.c.l.b16 %v3291_v25 }
  0x76   : > { %v3295_v54 = vsel %vm2956_vm3, %v1072_v49, %v1073_v50  ;;  %v2520_v50 = vld [vmem:[%s2954_s6 + $0x18] sm:$0xc]  ;;  %v2636_v25 = vrot.slane %v2612_v53, 9 }
  0x77   : > { %v1106_v56 = vunpack.c.l.bf16 %v3295_v54  ;;  %v1134_v35 = vsel %vm422_vm4, %v1105_v55, 0.0  ;;  %v1161_v49 = vunpack.c.l.b16 %v3295_v54  ;;  %v2536_v45 = vrot.slane %v2520_v50, 10  ;;  %v2523_v50 = vld [vmem:[%s2954_s6 + $0x2c] sm:$0x3] }
  0x78   : > { %v1135_v0 = vadd.f32 %v1134_v35, %v1133_v21  ;;  %v1298_v55 = vrot.slane %v1296_v43, 4  ;;  %v2614_v35 = vld [vmem:[%s2954_s6 + $0x38] sm:$0x1] }
  0x7e   : > { %2399 = vmatmul.msk.bf16.gmra.mxu1 %vm422_vm4, %v2694_v58  ;;  %v1136_v58 = vsel %vm422_vm4, %v1106_v56, 0.0 }
  0x7f   : > { %2416 = vmatmul.msk.bf16.gmra.mxu2 %vm422_vm4, %v721_v60  ;;  %v688_v60 = vsel %vm3091_vm6, %v2409_v17, %v687_v39  ;;  %v1137_v1 = vadd.f32 %v1136_v58, %v1135_v0  ;;  %v2705_v17 = vld [vmem:[%s2954_s6 + $0x6c] sm:$0xff]  ;;  %v1169_v58 = vpack.c.b16 %v1161_v49, %v1160_v48  ;;  %v2522_v49 = vld [vmem:[%s2954_s6 + $0x24] sm:$0xc] }
  0x80   : > { %v713_v2 = vunpack.c.l.b16 %v688_v60 }
  0x81   : > { %2475 = vmatmul.msk.bf16.gmra.mxu3 %vm422_vm4, %v2702_v7  ;;  %v1138_v5 = vrot.slane %v1137_v1, 4 }
  0x82   : > { %v723_v8 = vpack.c.b16 %v714_v4, %v713_v2  ;;  %v2653_v2 = vld [vmem:[%s2954_s6 + $0x30] sm:$0xc]  ;;  %v2654_v4 = vld [vmem:[%s2954_s6 + $0x38] sm:$0x3] }
  0x83   : > { %v1139_v6 = vadd.f32 %v1138_v5, %v1137_v1  ;;  %v1675_v1 = vrot.slane %v2614_v35, 5  ;;  %v2669_v9 = vrot.slane %v2653_v2, 10  ;;  %v2656_v2 = vld [vmem:[%s2954_s6 + $0x44] sm:$0x3] }
  0x84   : > { %2516 = vmatmul.msk.bf16.gmra.mxu0 %vm422_vm4, %v1166_v16  ;;  %v622_v16 = vld [vmem:[%s2954_s6 + $0x54] sm:$0xc] }
  0x85   : > { %v1140_v15 = vrot.slane %v1139_v6, 2  ;;  %v2410_v24 = vrot.slane %v622_v16, 10 }
  0x87   : > { %v1141_v20 = vadd.f32 %v1140_v15, %v1139_v6  ;;  %v695_v21 = vsel %vm3091_vm6, %v2410_v24, %v694_v13  ;;  %v1881_v13 = vrot.slane %v2654_v4, 6 }
  0x89   : > { %v1142_v30 = vrot.slane %v1141_v20, 1 }
  0x8b   : > { %v3323_v18 = vadd.f32 %v1142_v30, %v1141_v20 }
  0x8e   : > { %2400 = vmatmul.msk.bf16.gmra.mxu1 %vm422_vm4, %v2695_v33  ;;  %v698_v33 = vsel %vm3091_vm6, %v696_v26, %v697_v28 }
  0x8f   : > { %2417 = vmatmul.msk.bf16.gmra.mxu2 %vm422_vm4, %v722_v34  ;;  %v715_v34 = vunpack.c.l.b16 %v695_v21  ;;  %v716_v37 = vunpack.c.l.b16 %v698_v33 }
  0x91   : > { %2476 = vmatmul.msk.bf16.gmra.mxu3 %vm422_vm4, %v2703_v36  ;;  %v724_v44 = vpack.c.b16 %v716_v37, %v715_v34  ;;  %v2613_v36 = vld [vmem:[%s2954_s6 + $0x34] sm:$0xf]  ;;  %v1303_v37 = vrot.slane %v3074_v3, 6  ;;  %v2537_v3 = vrot.slane %v2522_v49, 10 }
  0x92   : > { %v1672_v40 = vrot.slane %v2613_v36, 5  ;;  %v1878_v54 = vrot.slane %v2613_v36, 6  ;;  %v2706_v34 = vld [vmem:[%s2954_s6 + $0x30] sm:$0xff] }
  0x94   : > { %2517 = vmatmul.msk.bf16.gmra.mxu0 %vm422_vm4, %v1167_v52  ;;  %v2521_v52 = vld [vmem:[%s2954_s6 + $0x20] sm:$0x3]  ;;  %v1674_v0 = vrot.slane %v1672_v40, 4  ;;  %v1880_v12 = vrot.slane %v1878_v54, 4  ;;  %v1673_v16 = vsel %vm2956_vm3, %v2636_v25, %v1672_v40  ;;  %v1879_v26 = vsel %vm3091_vm6, %v2669_v9, %v1878_v54 }
  0x95   : > { %v1299_v56 = vrot.slane %v2521_v52, 6  ;;  %v1934_v36 = vunpack.c.l.b16 %v1879_v26  ;;  %v1305_v40 = vrot.slane %v1303_v37, 4 }
  0x96   : > { %v1676_v19 = vsel %vm2956_vm3, %v1674_v0, %v1675_v1  ;;  %v1882_v28 = vsel %vm3091_vm6, %v1880_v12, %v1881_v13  ;;  %v2655_v1 = vld [vmem:[%s2954_s6 + $0x3c] sm:$0xc] }
  0x97   : > { %v1300_v6 = vsel %vm3091_vm6, %v1298_v55, %v1299_v56  ;;  %v1729_v24 = vunpack.c.l.b16 %v1676_v19  ;;  %v1935_v48 = vunpack.c.l.b16 %v1882_v28  ;;  %v2617_v55 = vld [vmem:[%s2954_s6 + $0x44] sm:$0x1]  ;;  %v1888_v19 = vrot.slane %v2656_v2, 6 }
  0x98   : > { %v1682_v0 = vrot.slane %v2617_v55, 5  ;;  %v2524_v55 = vld [vmem:[%s2954_s6 + $0x30] sm:$0xc] }
  0x99   : > { %v1950_v56 = vpack.c.b16 %v1935_v48, %v1934_v36  ;;  %v1310_v48 = vrot.slane %v3112_v42, 6  ;;  %v2538_v42 = vrot.slane %v2524_v55, 10 }
  0x9b   : > { %v3308_v7 = vpop.f32.mrf.mxu1 }
  0x9e   : > { %2401 = vmatmul.msk.bf16.gmra.mxu1 %vm422_vm4, %v2696_v46  ;;  %v1297_v46 = vsel %vm3091_vm6, %v2536_v45, %v1296_v43  ;;  %v1306_v45 = vrot.slane %v2523_v50, 6 }
  0x9f   : > { %2418 = vmatmul.msk.bf16.gmra.mxu2 %vm422_vm4, %v723_v8  ;;  %v1352_v15 = vunpack.c.l.b16 %v1297_v46 }
  0xa0   : > { %v1307_v9 = vsel %vm3091_vm6, %v1305_v40, %v1306_v45 }
  0xa1   : > { %v3318_v61 = vpop.f32.mrf.mxu0  ;;  %2477 = vmatmul.msk.bf16.gmra.mxu3 %vm422_vm4, %v2704_v57  ;;  %v1353_v57 = vunpack.c.l.b16 %v1300_v6  ;;  %v1304_v6 = vsel %vm3091_vm6, %v2537_v3, %v1303_v37 }
  0xa2   : > { %v3321_v62 = vpop.f32.mrf.mxu2 }
  0xa3   : > { %v3325_v31 = vpop.f32.mrf.mxu1  ;;  %v1368_v21 = vpack.c.b16 %v1353_v57, %v1352_v15  ;;  %v2670_v57 = vrot.slane %v2655_v1, 10  ;;  %v2620_v1 = vld [vmem:[%s2954_s6 + $0x50] sm:$0x1] }
  0xa4   : > { %2518 = vmatmul.msk.bf16.gmra.mxu0 %vm422_vm4, %v1168_v22  ;;  %v3328_v32 = vpop.f32.mrf.mxu3  ;;  %v1728_v22 = vunpack.c.l.b16 %v1673_v16 }
  0xa6   : > { %v1744_v52 = vpack.c.b16 %v1729_v24, %v1728_v22  ;;  %v1354_v22 = vunpack.c.l.b16 %v1304_v6  ;;  %v1355_v24 = vunpack.c.l.b16 %v1307_v9 }
  0xa8   : > { %v1369_v36 = vpack.c.b16 %v1355_v24, %v1354_v22  ;;  %v1311_v22 = vsel %vm3091_vm6, %v2538_v42, %v1310_v48 }
  0xa9   : > { %v3334_v38 = vpop.f32.mrf.mxu0 }
  0xaa   : > { %v3336_v39 = vpop.f32.mrf.mxu2 }
  0xab   : > { %v3340_v11 = vpop.f32.mrf.mxu1 }
  0xac   : > { %v3343_v47 = vpop.f32.mrf.mxu3 }
  0xae   : > { %2402 = vmatmul.msk.bf16.gmra.mxu1 %vm422_vm4, %v2697_v41  ;;  %v2616_v41 = vld [vmem:[%s2954_s6 + $0x40] sm:$0xf] }
  0xaf   : > { %2419 = vmatmul.msk.bf16.gmra.mxu2 %vm422_vm4, %v724_v44  ;;  %v1679_v53 = vrot.slane %v2616_v41, 5 }
  0xb1   : > { %v3354_v60 = vpop.f32.mrf.mxu0  ;;  %2478 = vmatmul.msk.bf16.gmra.mxu3 %vm422_vm4, %v2705_v17  ;;  %v2615_v17 = vld [vmem:[%s2954_s6 + $0x3c] sm:$0xe]  ;;  %v1681_v54 = vrot.slane %v1679_v53, 4 }
  0xb2   : > { %v3357_v63 = vpop.f32.mrf.mxu2 }
  0xb3   : > { %v3361_v5 = vpop.f32.mrf.mxu1  ;;  %v1683_v28 = vsel %vm2956_vm3, %v1681_v54, %v1682_v0  ;;  %v1312_v54 = vrot.slane %v1310_v48, 4 }
  0xb4   : > { %2519 = vmatmul.msk.bf16.gmra.mxu0 %vm422_vm4, %v1169_v58  ;;  %v3368_v8 = vpop.f32.mrf.mxu3  ;;  %v1885_v58 = vrot.slane %v2616_v41, 6 }
  0xb6   : > { %v1887_v16 = vrot.slane %v1885_v58, 4  ;;  %v1886_v37 = vsel %vm3091_vm6, %v2670_v57, %v1885_v58  ;;  %v2618_v58 = vld [vmem:[%s2954_s6 + $0x48] sm:$0xe]  ;;  %v2658_v57 = vld [vmem:[%s2954_s6 + $0x50] sm:$0x3] }
  0xb7   : > { %v1936_v40 = vunpack.c.l.b16 %v1886_v37  ;;  %v1895_v37 = vrot.slane %v2658_v57, 6 }
  0xb8   : > { %v1889_v41 = vsel %vm3091_vm6, %v1887_v16, %v1888_v19 }
  0xb9   : > { %v3374_v20 = vpop.f32.mrf.mxu0  ;;  %v1937_v45 = vunpack.c.l.b16 %v1889_v41  ;;  %v1356_v41 = vunpack.c.l.b16 %v1311_v22 }
  0xba   : > { %v3380_v30 = vpop.f32.mrf.mxu2 }
  0xbb   : > { %v568_v33 = vpop.f32.mrf.mxu1  ;;  %v1951_v2 = vpack.c.b16 %v1937_v45, %v1936_v40  ;;  %v1317_v45 = vrot.slane %v3145_v14, 6 }
  0xbc   : > { %v3385_v43 = vpop.f32.mrf.mxu3  ;;  %v569_v44 = vadd.f32 %v568_v33, %v3318_v61  ;;  %v2637_v61 = vrot.slane %v2615_v17, 9  ;;  %v2619_v17 = vld [vmem:[%s2954_s6 + $0x4c] sm:$0xf] }
  0xbd   : > { %v1892_v6 = vrot.slane %v2619_v17, 6 }
  0xbe   : > { %2545 = vmatmul.msk.bf16.vlgmr.msra.gmra.mxu1 %vm422_vm4, %v1368_v21  ;;  %v1680_v26 = vsel %vm2956_vm3, %v2637_v61, %v1679_v53 }
  0xbf   : > { %2604 = vmatmul.msk.bf16.vlgmr.msra.gmra.mxu2 %vm422_vm4, %v2706_v34  ;;  %v1730_v34 = vunpack.c.l.b16 %v1680_v26 }
  0xc1   : > { %v1206_v35 = vpop.f32.mrf.mxu0  ;;  %2645 = vmatmul.msk.bf16.vlgmr.msra.gmra.mxu3 %vm422_vm4, %v1744_v52  ;;  %v2707_v52 = vld [vmem:[%s2954_s6 + $0x3c] sm:$0xff] }
  0xc2   : > { %v761_v25 = vpop.f32.mrf.mxu2 }
  0xc3   : > { %v801_v4 = vadd.f32 %v761_v25, %v569_v44  ;;  %v570_v46 = vpop.f32.mrf.mxu1  ;;  %v1686_v25 = vrot.slane %v2619_v17, 5 }
  0xc4   : > { %2678 = vmatmul.msk.bf16.vlgmr.msra.gmra.mxu0 %vm422_vm4, %v1950_v56  ;;  %v915_v12 = vpop.f32.mrf.mxu3  ;;  %v571_v13 = vadd.f32 %v570_v46, %v3334_v38  ;;  %v1731_v38 = vunpack.c.l.b16 %v1683_v28  ;;  %v2525_v56 = vld [vmem:[%s2954_s6 + $0x38] sm:$0x3]  ;;  %v2638_v46 = vrot.slane %v2618_v58, 9 }
  0xc5   : > { %v955_v15 = vadd.f32 %v915_v12, %v801_v4  ;;  %v1313_v0 = vrot.slane %v2525_v56, 6  ;;  %v1688_v12 = vrot.slane %v1686_v25, 4 }
  0xc6   : > { %v1745_v61 = vpack.c.b16 %v1731_v38, %v1730_v34  ;;  %v1894_v38 = vrot.slane %v1892_v6, 4 }
  0xc7   : > { %v3407_v21 = vadd.f32 %v1206_v35, %v955_v15  ;;  %v2657_v15 = vld [vmem:[%s2954_s6 + $0x48] sm:$0xc]  ;;  %v1314_v24 = vsel %vm3091_vm6, %v1312_v54, %v1313_v0  ;;  %v2526_v0 = vld [vmem:[%s2954_s6 + $0x3c] sm:$0xc] }
  0xc8   : > { %v2671_v34 = vrot.slane %v2657_v15, 10  ;;  %v2539_v14 = vrot.slane %v2526_v0, 10 }
  0xc9   : > { %v1208_v33 = vpop.f32.mrf.mxu0 }
  0xca   : > { %v763_v44 = vpop.f32.mrf.mxu2  ;;  %v1893_v17 = vsel %vm3091_vm6, %v2671_v34, %v1892_v6 }
  0xcb   : > { %v802_v49 = vadd.f32 %v763_v44, %v571_v13  ;;  %v573_v50 = vpop.f32.mrf.mxu1  ;;  %v1689_v13 = vrot.slane %v2620_v1, 5  ;;  %v1357_v44 = vunpack.c.l.b16 %v1314_v24  ;;  %v1938_v42 = vunpack.c.l.b16 %v1893_v17  ;;  %v2527_v1 = vld [vmem:[%s2954_s6 + $0x44] sm:$0x3] }
  0xcc   : > { %v917_v53 = vpop.f32.mrf.mxu3  ;;  %v574_v3 = vadd.f32 %v573_v50, %v3354_v60 }
  0xcd   : > { %v956_v35 = vadd.f32 %v917_v53, %v802_v49  ;;  %v1690_v48 = vsel %vm2956_vm3, %v1688_v12, %v1689_v13  ;;  %v1896_v53 = vsel %vm3091_vm6, %v1894_v38, %v1895_v37  ;;  %v1370_v40 = vpack.c.b16 %v1357_v44, %v1356_v41  ;;  %v2623_v13 = vld [vmem:[%s2954_s6 + $0x5c] sm:$0x1] }
  0xce   : > { %2546 = vmatmul.msk.bf16.gmra.mxu1 %vm422_vm4, %v1369_v36  ;;  %v1687_v36 = vsel %vm2956_vm3, %v2638_v46, %v1686_v25  ;;  %v1939_v54 = vunpack.c.l.b16 %v1896_v53  ;;  %v2621_v46 = vld [vmem:[%s2954_s6 + $0x54] sm:$0xe]  ;;  %v1320_v12 = vrot.slane %v2527_v1, 6  ;;  %v1318_v37 = vsel %vm3091_vm6, %v2539_v14, %v1317_v45 }
  0xcf   : > { %2605 = vmatmul.msk.bf16.gmra.mxu2 %vm422_vm4, %v2707_v52  ;;  %v3423_v60 = vadd.f32 %v1208_v33, %v956_v35  ;;  %v1732_v52 = vunpack.c.l.b16 %v1687_v36  ;;  %v2708_v35 = vld [vmem:[%s2954_s6 + $0x48] sm:$0xff]  ;;  %v1358_v17 = vunpack.c.l.b16 %v1318_v37  ;;  %v2709_v1 = vld [vmem:[%s2954_s6 + $0x54] sm:$0xff] }
  0xd0   : > { %v1952_v15 = vpack.c.b16 %v1939_v54, %v1938_v42  ;;  %v1324_v42 = vrot.slane %v3177_v51, 6 }
  0xd1   : > { %v1211_v4 = vpop.f32.mrf.mxu0  ;;  %2646 = vmatmul.msk.bf16.gmra.mxu3 %vm422_vm4, %v1745_v61  ;;  %v2622_v61 = vld [vmem:[%s2954_s6 + $0x58] sm:$0xf] }
  0xd2   : > { %v766_v9 = vpop.f32.mrf.mxu2  ;;  %v1693_v6 = vrot.slane %v2622_v61, 5 }
  0xd3   : > { %v803_v16 = vadd.f32 %v766_v9, %v574_v3  ;;  %v575_v19 = vpop.f32.mrf.mxu1  ;;  %v1319_v9 = vrot.slane %v1317_v45, 4 }
  0xd4   : > { %2679 = vmatmul.msk.bf16.gmra.mxu0 %vm422_vm4, %v1951_v2  ;;  %v920_v26 = vpop.f32.mrf.mxu3  ;;  %v576_v28 = vadd.f32 %v575_v19, %v3374_v20  ;;  %v1733_v20 = vunpack.c.l.b16 %v1690_v48  ;;  %v1899_v19 = vrot.slane %v2622_v61, 6  ;;  %v1695_v24 = vrot.slane %v1693_v6, 4 }
  0xd5   : > { %v957_v33 = vadd.f32 %v920_v26, %v803_v16  ;;  %v2639_v16 = vrot.slane %v2621_v46, 9  ;;  %v1696_v26 = vrot.slane %v2623_v13, 5  ;;  %v1321_v41 = vsel %vm3091_vm6, %v1319_v9, %v1320_v12  ;;  %v2528_v9 = vld [vmem:[%s2954_s6 + $0x48] sm:$0xc]  ;;  %v2529_v12 = vld [vmem:[%s2954_s6 + $0x50] sm:$0x3] }
  0xd6   : > { %v1359_v53 = vunpack.c.l.b16 %v1321_v41  ;;  %v2540_v51 = vrot.slane %v2528_v9, 10  ;;  %v2710_v9 = vld [vmem:[%s2954_s6 + $0x60] sm:$0xff] }
  0xd7   : > { %v3438_v49 = vadd.f32 %v1211_v4, %v957_v33  ;;  %v1746_v4 = vpack.c.b16 %v1733_v20, %v1732_v52  ;;  %v2660_v33 = vld [vmem:[%s2954_s6 + $0x5c] sm:$0x3]  ;;  %v1901_v52 = vrot.slane %v1899_v19, 4 }
  0xd8   : > { %v1902_v20 = vrot.slane %v2660_v33, 6 }
  0xd9   : > { %v1213_v50 = vpop.f32.mrf.mxu0 }
  0xda   : > { %v768_v3 = vpop.f32.mrf.mxu2  ;;  %v1903_v61 = vsel %vm3091_vm6, %v1901_v52, %v1902_v20  ;;  %v1325_v52 = vsel %vm3091_vm6, %v2540_v51, %v1324_v42  ;;  %v2531_v51 = vld [vmem:[%s2954_s6 + $0x5c] sm:$0x3] }
  0xdb   : > { %v804_v55 = vadd.f32 %v768_v3, %v576_v28  ;;  %v578_v56 = vpop.f32.mrf.mxu1  ;;  %v2659_v28 = vld [vmem:[%s2954_s6 + $0x54] sm:$0xc]  ;;  %v1694_v3 = vsel %vm2956_vm3, %v2639_v16, %v1693_v6  ;;  %v1941_v14 = vunpack.c.l.b16 %v1903_v61 }
  0xdc   : > { %v922_v58 = vpop.f32.mrf.mxu3  ;;  %v579_v25 = vadd.f32 %v578_v56, %v3308_v7  ;;  %v1734_v56 = vunpack.c.l.b16 %v1694_v3 }
  0xdd   : > { %v958_v2 = vadd.f32 %v922_v58, %v804_v55 }
  0xde   : > { %2547 = vmatmul.msk.bf16.gmra.mxu1 %vm422_vm4, %v1370_v40  ;;  %v1697_v40 = vsel %vm2956_vm3, %v1695_v24, %v1696_v26  ;;  %v2626_v24 = vld [vmem:[%s2954_s6 + $0x68] sm:$0x1] }
  0xdf   : > { %2606 = vmatmul.msk.bf16.gmra.mxu2 %vm422_vm4, %v2708_v35  ;;  %v3454_v7 = vadd.f32 %v1213_v50, %v958_v2  ;;  %v2672_v50 = vrot.slane %v2659_v28, 10  ;;  %v2625_v2 = vld [vmem:[%s2954_s6 + $0x64] sm:$0xf]  ;;  %v1703_v41 = vrot.slane %v2626_v24, 5  ;;  %v2627_v24 = vld [vmem:[%s2954_s6 + $0x6c] sm:$0xe] }
  0xe0   : > { %v1700_v16 = vrot.slane %v2625_v2, 5 }
  0xe1   : > { %v1216_v57 = vpop.f32.mrf.mxu0  ;;  %2647 = vmatmul.msk.bf16.gmra.mxu3 %vm422_vm4, %v1746_v4  ;;  %v1900_v35 = vsel %vm3091_vm6, %v2672_v50, %v1899_v19  ;;  %v1326_v19 = vrot.slane %v1324_v42, 4 }
  0xe2   : > { %v771_v22 = vpop.f32.mrf.mxu2  ;;  %v1940_v6 = vunpack.c.l.b16 %v1900_v35  ;;  %v1702_v37 = vrot.slane %v1700_v16, 4 }
  0xe3   : > { %v805_v34 = vadd.f32 %v771_v22, %v579_v25  ;;  %v580_v38 = vpop.f32.mrf.mxu1  ;;  %v1371_v25 = vpack.c.b16 %v1359_v53, %v1358_v17  ;;  %v1327_v22 = vrot.slane %v2529_v12, 6  ;;  %v2628_v12 = vld [vmem:[%s2954_s6 + $0x70] sm:$0xf] }
  0xe4   : > { %2680 = vmatmul.msk.bf16.gmra.mxu0 %vm422_vm4, %v1952_v15  ;;  %v925_v44 = vpop.f32.mrf.mxu3  ;;  %v581_v36 = vadd.f32 %v580_v38, %v3325_v31  ;;  %v1735_v31 = vunpack.c.l.b16 %v1697_v40  ;;  %v1953_v26 = vpack.c.b16 %v1941_v14, %v1940_v6 }
  0xe5   : > { %v959_v48 = vadd.f32 %v925_v44, %v805_v34  ;;  %v1906_v34 = vrot.slane %v2625_v2, 6  ;;  %v2661_v44 = vld [vmem:[%s2954_s6 + $0x60] sm:$0xc]  ;;  %v1328_v20 = vsel %vm3091_vm6, %v1326_v19, %v1327_v22 }
  0xe6   : > { %v1747_v15 = vpack.c.b16 %v1735_v31, %v1734_v56  ;;  %v2673_v40 = vrot.slane %v2661_v44, 10  ;;  %v1360_v31 = vunpack.c.l.b16 %v1325_v52  ;;  %v1361_v35 = vunpack.c.l.b16 %v1328_v20 }
  0xe7   : > { %v3469_v45 = vadd.f32 %v1216_v57, %v959_v48  ;;  %v2624_v57 = vld [vmem:[%s2954_s6 + $0x60] sm:$0xe] }
  0xe8   : > { %v2640_v33 = vrot.slane %v2624_v57, 9 }
  0xe9   : > { %v1218_v55 = vpop.f32.mrf.mxu0 }
  0xea   : > { %v773_v58 = vpop.f32.mrf.mxu2  ;;  %v1701_v61 = vsel %vm2956_vm3, %v2640_v33, %v1700_v16  ;;  %v2530_v16 = vld [vmem:[%s2954_s6 + $0x54] sm:$0xc]  ;;  %v1334_v33 = vrot.slane %v2531_v51, 6  ;;  %v2711_v51 = vld [vmem:[%s2954_s6 + $0x6c] sm:$0xff] }
  0xeb   : > { %v806_v54 = vadd.f32 %v773_v58, %v581_v36  ;;  %v583_v0 = vpop.f32.mrf.mxu1  ;;  %v2662_v36 = vld [vmem:[%s2954_s6 + $0x68] sm:$0x3]  ;;  %v1704_v58 = vsel %vm2956_vm3, %v1702_v37, %v1703_v41 }
  0xec   : > { %v927_v4 = vpop.f32.mrf.mxu3  ;;  %v584_v46 = vadd.f32 %v583_v0, %v3340_v11  ;;  %v1909_v56 = vrot.slane %v2662_v36, 6  ;;  %v1907_v0 = vsel %vm3091_vm6, %v2673_v40, %v1906_v34  ;;  %v2641_v36 = vrot.slane %v2627_v24, 9 }
  0xed   : > { %v960_v13 = vadd.f32 %v927_v4, %v806_v54  ;;  %v1737_v54 = vunpack.c.l.b16 %v1704_v58  ;;  %v1372_v4 = vpack.c.b16 %v1361_v35, %v1360_v31 }
  0xee   : > { %2548 = vmatmul.msk.bf16.gmra.mxu1 %vm422_vm4, %v1371_v25 }
  0xef   : > { %2607 = vmatmul.msk.bf16.gmra.mxu2 %vm422_vm4, %v2709_v1  ;;  %v3485_v11 = vadd.f32 %v1218_v55, %v960_v13  ;;  %v1908_v55 = vrot.slane %v1906_v34, 4  ;;  %v2629_v34 = vld [vmem:[%s2954_s6 + $0x74] sm:$0x1] }
  0xf1   : > { %v1221_v28 = vpop.f32.mrf.mxu0  ;;  %2648 = vmatmul.msk.bf16.gmra.mxu3 %vm422_vm4, %v1747_v15  ;;  %v1910_v1 = vsel %vm3091_vm6, %v1908_v55, %v1909_v56  ;;  %v1942_v15 = vunpack.c.l.b16 %v1907_v0 }
  0xf2   : > { %v776_v38 = vpop.f32.mrf.mxu2  ;;  %v1943_v57 = vunpack.c.l.b16 %v1910_v1 }
  0xf3   : > { %v807_v48 = vadd.f32 %v776_v38, %v584_v46  ;;  %v585_v50 = vpop.f32.mrf.mxu1  ;;  %v1331_v46 = vrot.slane %v3210_v27, 6  ;;  %v2541_v27 = vrot.slane %v2530_v16, 10 }
  0xf4   : > { %2681 = vmatmul.msk.bf16.gmra.mxu0 %vm422_vm4, %v1953_v26  ;;  %v930_v17 = vpop.f32.mrf.mxu3  ;;  %v586_v53 = vadd.f32 %v585_v50, %v3361_v5  ;;  %v1736_v5 = vunpack.c.l.b16 %v1701_v61  ;;  %v1707_v26 = vrot.slane %v2628_v12, 5  ;;  %v1954_v38 = vpack.c.b16 %v1943_v57, %v1942_v15 }
  0xf5   : > { %v961_v3 = vadd.f32 %v930_v17, %v807_v48  ;;  %v2663_v48 = vld [vmem:[%s2954_s6 + $0x6c] sm:$0xc]  ;;  %v1913_v50 = vrot.slane %v2628_v12, 6  ;;  %v1710_v17 = vrot.slane %v2629_v34, 5  ;;  %v1332_v55 = vsel %vm3091_vm6, %v2541_v27, %v1331_v46  ;;  %v2533_v27 = vld [vmem:[%s2954_s6 + $0x68] sm:$0x3] }
  0xf6   : > { %v1748_v22 = vpack.c.b16 %v1737_v54, %v1736_v5  ;;  %v1709_v20 = vrot.slane %v1707_v26, 4  ;;  %v2674_v31 = vrot.slane %v2663_v48, 10  ;;  %v1708_v61 = vsel %vm2956_vm3, %v2641_v36, %v1707_v26  ;;  %v2532_v26 = vld [vmem:[%s2954_s6 + $0x60] sm:$0xc]  ;;  %v2630_v34 = vld [vmem:[%s2954_s6 + $0x78] sm:$0xe] }
  0xf7   : > { %v3500_v25 = vadd.f32 %v1221_v28, %v961_v3  ;;  %v1333_v28 = vrot.slane %v1331_v46, 4  ;;  %v1915_v58 = vrot.slane %v1913_v50, 4  ;;  %v1362_v5 = vunpack.c.l.b16 %v1332_v55  ;;  %v2632_v36 = vld [vmem:[%s2954_s6 + $0x80] sm:$0x1] }
  0xf8   : > { %v1711_v0 = vsel %vm2956_vm3, %v1709_v20, %v1710_v17  ;;  %v1338_v15 = vrot.slane %v3243_v59, 6  ;;  %v2542_v59 = vrot.slane %v2532_v26, 10  ;;  %v2642_v17 = vrot.slane %v2630_v34, 9  ;;  %v2712_v26 = vld [vmem:[%s2954_s6 + $0x78] sm:$0xff]  ;;  %v2534_v34 = vld [vmem:[%s2954_s6 + $0x6c] sm:$0xc] }
  0xf9   : > { %v1223_v42 = vpop.f32.mrf.mxu0  ;;  %v1335_v56 = vsel %vm3091_vm6, %v1333_v28, %v1334_v33 }
  0xfa   : > { %v778_v2 = vpop.f32.mrf.mxu2  ;;  %v1363_v54 = vunpack.c.l.b16 %v1335_v56  ;;  %v1717_v56 = vrot.slane %v2632_v36, 5 }
  0xfb   : > { %v808_v6 = vadd.f32 %v778_v2, %v586_v53  ;;  %v588_v14 = vpop.f32.mrf.mxu1  ;;  %v2664_v53 = vld [vmem:[%s2954_s6 + $0x74] sm:$0x3]  ;;  %v1738_v2 = vunpack.c.l.b16 %v1708_v61  ;;  %v1339_v61 = vsel %vm3091_vm6, %v2542_v59, %v1338_v15 }
  0xfc   : > { %v932_v13 = vpop.f32.mrf.mxu3  ;;  %v589_v41 = vadd.f32 %v588_v14, %v3321_v62  ;;  %v1914_v14 = vsel %vm3091_vm6, %v2674_v31, %v1913_v50 }
  0xfd   : > { %v962_v19 = vadd.f32 %v932_v13, %v808_v6  ;;  %v1739_v6 = vunpack.c.l.b16 %v1711_v0  ;;  %v1373_v13 = vpack.c.b16 %v1363_v54, %v1362_v5 }
  0xfe   : > { %2549 = vmatmul.msk.bf16.gmra.mxu1 %vm422_vm4, %v1372_v4 }
  0xff   : > { %2608 = vmatmul.msk.bf16.gmra.mxu2 %vm422_vm4, %v2710_v9  ;;  %v3515_v37 = vadd.f32 %v1223_v42, %v962_v19  ;;  %v1916_v42 = vrot.slane %v2664_v53, 6  ;;  %v2631_v19 = vld [vmem:[%s2954_s6 + $0x7c] sm:$0xf]  ;;  %v1749_v33 = vpack.c.b16 %v1739_v6, %v1738_v2  ;;  %v2665_v53 = vld [vmem:[%s2954_s6 + $0x78] sm:$0xc] }
 0x101   : > { %v1226_v44 = vpop.f32.mrf.mxu0  ;;  %2649 = vmatmul.msk.bf16.gmra.mxu3 %vm422_vm4, %v1748_v22  ;;  %v1917_v9 = vsel %vm3091_vm6, %v1915_v58, %v1916_v42  ;;  %v1944_v22 = vunpack.c.l.b16 %v1914_v14  ;;  %v2675_v42 = vrot.slane %v2665_v53, 10 }
 0x102   : > { %v781_v52 = vpop.f32.mrf.mxu2  ;;  %v1945_v24 = vunpack.c.l.b16 %v1917_v9 }
 0x103   : > { %v809_v3 = vadd.f32 %v781_v52, %v589_v41  ;;  %v590_v40 = vpop.f32.mrf.mxu1  ;;  %v1340_v41 = vrot.slane %v1338_v15, 4 }
 0x104   : > { %2682 = vmatmul.msk.bf16.gmra.mxu0 %vm422_vm4, %v1954_v38  ;;  %v935_v62 = vpop.f32.mrf.mxu3  ;;  %v591_v4 = vadd.f32 %v590_v40, %v3336_v39  ;;  %v1714_v38 = vrot.slane %v2631_v19, 5  ;;  %v1955_v48 = vpack.c.b16 %v1945_v24, %v1944_v22 }
 0x105   : > { %v963_v35 = vadd.f32 %v935_v62, %v809_v3  ;;  %v1920_v3 = vrot.slane %v2631_v19, 6  ;;  %v2666_v62 = vld [vmem:[%s2954_s6 + $0x80] sm:$0x3] }
 0x106   : > { %v1716_v55 = vrot.slane %v1714_v38, 4  ;;  %v1715_v54 = vsel %vm2956_vm3, %v2642_v17, %v1714_v38  ;;  %v1923_v2 = vrot.slane %v2666_v62, 6  ;;  %v2535_v38 = vld [vmem:[%s2954_s6 + $0x74] sm:$0x3] }
 0x107   : > { %v3530_v1 = vadd.f32 %v1226_v44, %v963_v35  ;;  %v1341_v44 = vrot.slane %v2533_v27, 6  ;;  %v1922_v0 = vrot.slane %v1920_v3, 4  ;;  %v1740_v9 = vunpack.c.l.b16 %v1715_v54  ;;  %v2634_v27 = vld [vmem:[%s2954_s6 + $0x88] sm:$0xf] }
 0x108   : > { %v1718_v6 = vsel %vm2956_vm3, %v1716_v55, %v1717_v56  ;;  %v1721_v36 = vrot.slane %v2634_v27, 5  ;;  %v2667_v56 = vld [vmem:[%s2954_s6 + $0x84] sm:$0xc]  ;;  %v1927_v62 = vrot.slane %v2634_v27, 6 }
 0x109   : > { %v1228_v46 = vpop.f32.mrf.mxu0  ;;  %v1342_v58 = vsel %vm3091_vm6, %v1340_v41, %v1341_v44  ;;  %v1741_v15 = vunpack.c.l.b16 %v1718_v6  ;;  %v2633_v44 = vld [vmem:[%s2954_s6 + $0x84] sm:$0xe] }
 0x10a   : > { %v783_v12 = vpop.f32.mrf.mxu2  ;;  %v2643_v55 = vrot.slane %v2633_v44, 9 }
 0x10b   : > { %v810_v57 = vadd.f32 %v783_v12, %v591_v4  ;;  %v593_v16 = vpop.f32.mrf.mxu1  ;;  %v1364_v4 = vunpack.c.l.b16 %v1339_v61  ;;  %v1750_v41 = vpack.c.b16 %v1741_v15, %v1740_v9 }
 0x10c   : > { %v937_v39 = vpop.f32.mrf.mxu3  ;;  %v594_v52 = vadd.f32 %v593_v16, %v3357_v63  ;;  %v1924_v16 = vsel %vm3091_vm6, %v1922_v0, %v1923_v2  ;;  %v2676_v0 = vrot.slane %v2667_v56, 10 }
 0x10d   : > { %v964_v28 = vadd.f32 %v937_v39, %v810_v57  ;;  %v1921_v57 = vsel %vm3091_vm6, %v2675_v42, %v1920_v3  ;;  %v1345_v39 = vrot.slane %v3276_v29, 6  ;;  %v2543_v29 = vrot.slane %v2534_v34, 10 }
 0x10e   : > { %2550 = vmatmul.msk.bf16.gmra.mxu1 %vm422_vm4, %v1373_v13 }
 0x10f   : > { %2609 = vmatmul.msk.bf16.gmra.mxu2 %vm422_vm4, %v2711_v51  ;;  %v3546_v50 = vadd.f32 %v1228_v46, %v964_v28  ;;  %v1365_v46 = vunpack.c.l.b16 %v1342_v58  ;;  %v1946_v28 = vunpack.c.l.b16 %v1921_v57  ;;  %v2668_v58 = vld [vmem:[%s2954_s6 + $0x8c] sm:$0x3] }
 0x110   : > { %v1930_v6 = vrot.slane %v2668_v58, 6 }
 0x111   : > { %v1231_v20 = vpop.f32.mrf.mxu0  ;;  %2650 = vmatmul.msk.bf16.gmra.mxu3 %vm422_vm4, %v1749_v33  ;;  %v1374_v19 = vpack.c.b16 %v1365_v46, %v1364_v4  ;;  %v1947_v33 = vunpack.c.l.b16 %v1924_v16  ;;  %v1722_v4 = vsel %vm2956_vm3, %v2643_v55, %v1721_v36  ;;  %v1929_v46 = vrot.slane %v1927_v62, 4 }
 0x112   : > { %v786_v40 = vpop.f32.mrf.mxu2  ;;  %v1742_v57 = vunpack.c.l.b16 %v1722_v4 }
 0x113   : > { %v811_v31 = vadd.f32 %v786_v40, %v594_v52  ;;  %v595_v35 = vpop.f32.mrf.mxu1  ;;  %v1348_v52 = vrot.slane %v2535_v38, 6  ;;  %v1956_v53 = vpack.c.b16 %v1947_v33, %v1946_v28  ;;  %v2713_v28 = vld [vmem:[%s2954_s6 + $0x84] sm:$0xff] }
 0x114   : > { %2683 = vmatmul.msk.bf16.gmra.mxu0 %vm422_vm4, %v1955_v48  ;;  %v940_v63 = vpop.f32.mrf.mxu3  ;;  %v596_v12 = vadd.f32 %v595_v35, %v3380_v30  ;;  %v1347_v48 = vrot.slane %v1345_v39, 4  ;;  %v1723_v35 = vrot.slane %v1721_v36, 4 }
 0x115   : > { %v965_v5 = vadd.f32 %v940_v63, %v811_v31 }
 0x116   : > { %v1349_v54 = vsel %vm3091_vm6, %v1347_v48, %v1348_v52 }
 0x117   : > { %v3561_v14 = vadd.f32 %v1231_v20, %v965_v5  ;;  %v2635_v20 = vld [vmem:[%s2954_s6 + $0x8c] sm:$0x1]  ;;  %v1346_v5 = vsel %vm3091_vm6, %v2543_v29, %v1345_v39  ;;  %v1928_v39 = vsel %vm3091_vm6, %v2676_v0, %v1927_v62 }
 0x118   : > { %v1724_v61 = vrot.slane %v2635_v20, 5  ;;  %v1366_v9 = vunpack.c.l.b16 %v1346_v5  ;;  %v1948_v33 = vunpack.c.l.b16 %v1928_v39 }
 0x119   : > { %v1233_v13 = vpop.f32.mrf.mxu0 }
 0x11a   : > { %v788_v51 = vpop.f32.mrf.mxu2 }
 0x11b   : > { %v812_v22 = vadd.f32 %v788_v51, %v596_v12  ;;  %v598_v24 = vpop.f32.mrf.mxu1  ;;  %v1367_v12 = vunpack.c.l.b16 %v1349_v54 }
 0x11c   : > { %v942_v30 = vpop.f32.mrf.mxu3  ;;  %v599_v3 = vadd.f32 %v598_v24, %v3328_v32 }
 0x11d   : > { %v966_v59 = vadd.f32 %v942_v30, %v812_v22  ;;  %v1931_v22 = vsel %vm3091_vm6, %v1929_v46, %v1930_v6 }
 0x11e   : > { %2551 = vmatmul.msk.bf16.gmra.mxu1 %vm422_vm4, %v1374_v19  ;;  %v1949_v34 = vunpack.c.l.b16 %v1931_v22 }
 0x11f   : > { %2610 = vmatmul.msk.bf16.gmra.mxu2 %vm422_vm4, %v2712_v26  ;;  %v3577_v17 = vadd.f32 %v1233_v13, %v966_v59  ;;  %v1725_v13 = vsel %vm2956_vm3, %v1723_v35, %v1724_v61  ;;  %v1375_v26 = vpack.c.b16 %v1367_v12, %v1366_v9 }
 0x120   : > { %v1743_v19 = vunpack.c.l.b16 %v1725_v13 }
 0x121   : > { %v1236_v40 = vpop.f32.mrf.mxu0  ;;  %2651 = vmatmul.msk.bf16.gmra.mxu3 %vm422_vm4, %v1750_v41  ;;  %v1957_v41 = vpack.c.b16 %v1949_v34, %v1948_v33 }
 0x122   : > { %v791_v31 = vpop.f32.mrf.mxu2  ;;  %v1751_v59 = vpack.c.b16 %v1743_v19, %v1742_v57 }
 0x123   : > { %v813_v63 = vadd.f32 %v791_v31, %v599_v3  ;;  %v600_v42 = vpop.f32.mrf.mxu1 }
 0x124   : > { %2684 = vmatmul.msk.bf16.gmra.mxu0 %vm422_vm4, %v1956_v53  ;;  %v945_v32 = vpop.f32.mrf.mxu3  ;;  %v601_v16 = vadd.f32 %v600_v42, %v3343_v47 }
 0x125   : > { %v967_v2 = vadd.f32 %v945_v32, %v813_v63 }
 0x127   : > { %v3592_v15 = vadd.f32 %v1236_v40, %v967_v2 }
 0x129   : > { %v1238_v51 = vpop.f32.mrf.mxu0 }
 0x12a   : > { %v793_v24 = vpop.f32.mrf.mxu2 }
 0x12b   : > { %v814_v27 = vadd.f32 %v793_v24, %v601_v16  ;;  %v603_v30 = vpop.f32.mrf.mxu1 }
 0x12c   : > { %v947_v10 = vpop.f32.mrf.mxu3  ;;  %v604_v23 = vadd.f32 %v603_v30, %v3368_v8 }
 0x12d   : > { %v968_v38 = vadd.f32 %v947_v10, %v814_v27 }
 0x12e   : > { %2552 = vmatmul.msk.bf16.gmra.mxu1 %vm422_vm4, %v1375_v26 }
 0x12f   : > { %2611 = vmatmul.msk.bf16.gmra.mxu2 %vm422_vm4, %v2713_v28  ;;  %v3602_v47 = vadd.f32 %v1238_v51, %v968_v38 }
 0x131   : > { %v1241_v44 = vpop.f32.mrf.mxu0  ;;  %2652 = vmatmul.msk.bf16.gmra.mxu3 %vm422_vm4, %v1751_v59 }
 0x132   : > { %v796_v36 = vpop.f32.mrf.mxu2 }
 0x133   : > { %v815_v29 = vadd.f32 %v796_v36, %v604_v23  ;;  %v605_v48 = vpop.f32.mrf.mxu1 }
 0x134   : > { %2685 = vmatmul.msk.bf16.gmra.mxu0 %vm422_vm4, %v1957_v41  ;;  %v950_v52 = vpop.f32.mrf.mxu3  ;;  %v606_v3 = vadd.f32 %v605_v48, %v3385_v43 }
 0x135   : > { %v969_v20 = vadd.f32 %v950_v52, %v815_v29 }
 0x137   : > { %v3607_v53 = vadd.f32 %v1241_v44, %v969_v20 }
 0x139   : > { %v1243_v40 = vpop.f32.mrf.mxu0 }
 0x13a   : > { %v798_v55 = vpop.f32.mrf.mxu2 }
 0x13b   : > { %v816_v56 = vadd.f32 %v798_v55, %v606_v3  ;;  %v1412_v8 = vpop.f32.mrf.mxu1 }
 0x13c   : > { %v952_v62 = vpop.f32.mrf.mxu3  ;;  %v1452_v58 = vadd.f32 %v1412_v8, %v3407_v21 }
 0x13d   : > { %v970_v31 = vadd.f32 %v952_v62, %v816_v56 }
 0x13f   : > { %v3611_v35 = vadd.f32 %v1243_v40, %v970_v31 }
 0x141   : > { %v1994_v61 = vpop.f32.mrf.mxu0 }
 0x142   : > { %v1566_v63 = vpop.f32.mrf.mxu2 }
 0x143   : > { %v1414_v42 = vpop.f32.mrf.mxu1  ;;  %v1606_v5 = vadd.f32 %v1566_v63, %v1452_v58 }
 0x144   : > { %v1788_v54 = vpop.f32.mrf.mxu3  ;;  %v1453_v32 = vadd.f32 %v1414_v42, %v3423_v60 }
 0x145   : > { %v1828_v43 = vadd.f32 %v1788_v54, %v1606_v5 }
 0x147   : > { %v2034_v6 = vadd.f32 %v1994_v61, %v1828_v43 }
 0x149   : > { %v1996_v0 = vpop.f32.mrf.mxu0  ;;  %v2103_v13 = vmul.f32 %v2034_v6, %v2034_v6 }
 0x14a   : > { %v1568_v2 = vpop.f32.mrf.mxu2 }
 0x14b   : > { %v1607_v4 = vadd.f32 %v1568_v2, %v1453_v32  ;;  %v1417_v46 = vpop.f32.mrf.mxu1 }
 0x14c   : > { %v1790_v9 = vpop.f32.mrf.mxu3  ;;  %v1454_v51 = vadd.f32 %v1417_v46, %v3438_v49 }
 0x14d   : > { %v1829_v12 = vadd.f32 %v1790_v9, %v1607_v4 }
 0x14f   : > { %v2035_v21 = vadd.f32 %v1996_v0, %v1829_v12 }
 0x151   : > { %v2717_v57 = vpack.c.bf16 %v2035_v21, %v2034_v6  ;;  %v2082_v16 = vadd.f32 %v2035_v21, %v2034_v6  ;;  %v2104_v60 = vmul.f32 %v2035_v21, %v2035_v21  ;;  %v1999_v19 = vpop.f32.mrf.mxu0 }
 0x152   : > { %v1571_v39 = vpop.f32.mrf.mxu2 }
 0x153   : > { %2718 = vst [vmem:[%s3619_s7] sm:$0xff] %v2717_v57   ;;  %v2119_v22 = vadd.f32 %v2104_v60, %v2103_v13  ;;  %v1608_v24 = vadd.f32 %v1571_v39, %v1454_v51  ;;  %v1419_v26 = vpop.f32.mrf.mxu1 }
 0x154   : > { %v1793_v27 = vpop.f32.mrf.mxu3  ;;  %v1455_v34 = vadd.f32 %v1419_v26, %v3454_v7 }
 0x155   : > { %v1830_v30 = vadd.f32 %v1793_v27, %v1608_v24 }
 0x157   : > { %v2036_v28 = vadd.f32 %v1999_v19, %v1830_v30 }
 0x159   : > { %v2083_v10 = vadd.f32 %v2082_v16, %v2036_v28  ;;  %v2105_v33 = vmul.f32 %v2036_v28, %v2036_v28  ;;  %v2001_v38 = vpop.f32.mrf.mxu0 }
 0x15a   : > { %v1573_v59 = vpop.f32.mrf.mxu2 }
 0x15b   : > { %v2120_v41 = vadd.f32 %v2119_v22, %v2105_v33  ;;  %v1609_v23 = vadd.f32 %v1573_v59, %v1455_v34  ;;  %v1422_v44 = vpop.f32.mrf.mxu1 }
 0x15c   : > { %v1795_v49 = vpop.f32.mrf.mxu3  ;;  %v1456_v3 = vadd.f32 %v1422_v44, %v3469_v45 }
 0x15d   : > { %v1831_v36 = vadd.f32 %v1795_v49, %v1609_v23 }
 0x15f   : > { %v2037_v29 = vadd.f32 %v2001_v38, %v1831_v36 }
 0x161   : > { %v2722_v48 = vpack.c.bf16 %v2037_v29, %v2036_v28  ;;  %v2084_v52 = vadd.f32 %v2083_v10, %v2037_v29  ;;  %v2106_v20 = vmul.f32 %v2037_v29, %v2037_v29  ;;  %v2004_v40 = vpop.f32.mrf.mxu0 }
 0x162   : > { %v1576_v55 = vpop.f32.mrf.mxu2 }
 0x163   : > { %2754 = vst [vmem:[%s3619_s7 + $0x8] sm:$0xff] %v2722_v48   ;;  %v2121_v56 = vadd.f32 %v2120_v41, %v2106_v20  ;;  %v1610_v8 = vadd.f32 %v1576_v55, %v1456_v3  ;;  %v1424_v62 = vpop.f32.mrf.mxu1 }
 0x164   : > { %v1798_v7 = vpop.f32.mrf.mxu3  ;;  %v1457_v42 = vadd.f32 %v1424_v62, %v3485_v11 }
 0x165   : > { %v1832_v31 = vadd.f32 %v1798_v7, %v1610_v8 }
 0x167   : > { %v2038_v61 = vadd.f32 %v2004_v40, %v1832_v31 }
 0x169   : > { %v2085_v58 = vadd.f32 %v2084_v52, %v2038_v61  ;;  %v2107_v63 = vmul.f32 %v2038_v61, %v2038_v61  ;;  %v2006_v5 = vpop.f32.mrf.mxu0 }
 0x16a   : > { %v1578_v54 = vpop.f32.mrf.mxu2 }
 0x16b   : > { %v2122_v43 = vadd.f32 %v2121_v56, %v2107_v63  ;;  %v1611_v32 = vadd.f32 %v1578_v54, %v1457_v42  ;;  %v1427_v0 = vpop.f32.mrf.mxu1 }
 0x16c   : > { %v1800_v45 = vpop.f32.mrf.mxu3  ;;  %v1458_v12 = vadd.f32 %v1427_v0, %v3500_v25 }
 0x16d   : > { %v1833_v2 = vadd.f32 %v1800_v45, %v1611_v32 }
 0x16f   : > { %v2039_v4 = vadd.f32 %v2006_v5, %v1833_v2 }
 0x171   : > { %v2727_v46 = vpack.c.bf16 %v2039_v4, %v2038_v61  ;;  %v2086_v6 = vadd.f32 %v2085_v58, %v2039_v4  ;;  %v2108_v9 = vmul.f32 %v2039_v4, %v2039_v4  ;;  %v2009_v21 = vpop.f32.mrf.mxu0 }
 0x172   : > { %v1581_v13 = vpop.f32.mrf.mxu2 }
 0x173   : > { %2755 = vst [vmem:[%s3619_s7 + $0x10] sm:$0xff] %v2727_v46   ;;  %v2123_v57 = vadd.f32 %v2122_v43, %v2108_v9  ;;  %v1612_v16 = vadd.f32 %v1581_v13, %v1458_v12  ;;  %v1429_v60 = vpop.f32.mrf.mxu1 }
 0x174   : > { %v1803_v11 = vpop.f32.mrf.mxu3  ;;  %v1459_v24 = vadd.f32 %v1429_v60, %v3515_v37 }
 0x175   : > { %v1834_v51 = vadd.f32 %v1803_v11, %v1612_v16 }
 0x177   : > { %v2040_v19 = vadd.f32 %v2009_v21, %v1834_v51 }
 0x179   : > { %v2087_v39 = vadd.f32 %v2086_v6, %v2040_v19  ;;  %v2109_v22 = vmul.f32 %v2040_v19, %v2040_v19  ;;  %v2011_v26 = vpop.f32.mrf.mxu0 }
 0x17a   : > { %v1583_v27 = vpop.f32.mrf.mxu2 }
 0x17b   : > { %v2124_v30 = vadd.f32 %v2123_v57, %v2109_v22  ;;  %v1613_v28 = vadd.f32 %v1583_v27, %v1459_v24  ;;  %v1432_v10 = vpop.f32.mrf.mxu1 }
 0x17c   : > { %v1805_v25 = vpop.f32.mrf.mxu3  ;;  %v1460_v23 = vadd.f32 %v1432_v10, %v3530_v1 }
 0x17d   : > { %v1835_v33 = vadd.f32 %v1805_v25, %v1613_v28 }
 0x17f   : > { %v2041_v34 = vadd.f32 %v2011_v26, %v1835_v33 }
 0x181   : > { %v2732_v38 = vpack.c.bf16 %v2041_v34, %v2040_v19  ;;  %v2088_v59 = vadd.f32 %v2087_v39, %v2041_v34  ;;  %v2110_v41 = vmul.f32 %v2041_v34, %v2041_v34  ;;  %v2014_v44 = vpop.f32.mrf.mxu0 }
 0x182   : > { %v1586_v49 = vpop.f32.mrf.mxu2 }
 0x183   : > { %2756 = vst [vmem:[%s3619_s7 + $0x18] sm:$0xff] %v2732_v38   ;;  %v2125_v36 = vadd.f32 %v2124_v30, %v2110_v41  ;;  %v1614_v29 = vadd.f32 %v1586_v49, %v1460_v23  ;;  %v1434_v48 = vpop.f32.mrf.mxu1 }
 0x184   : > { %v1808_v37 = vpop.f32.mrf.mxu3  ;;  %v1461_v55 = vadd.f32 %v1434_v48, %v3546_v50 }
 0x185   : > { %v1836_v52 = vadd.f32 %v1808_v37, %v1614_v29 }
 0x187   : > { %v2042_v20 = vadd.f32 %v2014_v44, %v1836_v52 }
 0x189   : > { %v2089_v3 = vadd.f32 %v2088_v59, %v2042_v20  ;;  %v2111_v40 = vmul.f32 %v2042_v20, %v2042_v20  ;;  %v2016_v56 = vpop.f32.mrf.mxu0 }
 0x18a   : > { %v1588_v8 = vpop.f32.mrf.mxu2 }
 0x18b   : > { %v2126_v62 = vadd.f32 %v2125_v36, %v2111_v40  ;;  %v1615_v7 = vadd.f32 %v1588_v8, %v1461_v55  ;;  %v1437_v31 = vpop.f32.mrf.mxu1 }
 0x18c   : > { %v1810_v1 = vpop.f32.mrf.mxu3  ;;  %v1462_v54 = vadd.f32 %v1437_v31, %v3561_v14 }
 0x18d   : > { %v1837_v61 = vadd.f32 %v1810_v1, %v1615_v7 }
 0x18f   : > { %v2043_v58 = vadd.f32 %v2016_v56, %v1837_v61 }
 0x191   : > { %v2737_v63 = vpack.c.bf16 %v2043_v58, %v2042_v20  ;;  %v2090_v42 = vadd.f32 %v2089_v3, %v2043_v58  ;;  %v2112_v5 = vmul.f32 %v2043_v58, %v2043_v58  ;;  %v2019_v43 = vpop.f32.mrf.mxu0 }
 0x192   : > { %v1591_v32 = vpop.f32.mrf.mxu2 }
 0x193   : > { %2757 = vst [vmem:[%s3619_s7 + $0x20] sm:$0xff] %v2737_v63   ;;  %v2127_v0 = vadd.f32 %v2126_v62, %v2112_v5  ;;  %v1616_v45 = vadd.f32 %v1591_v32, %v1462_v54  ;;  %v1439_v2 = vpop.f32.mrf.mxu1 }
 0x194   : > { %v1813_v50 = vpop.f32.mrf.mxu3  ;;  %v1463_v12 = vadd.f32 %v1439_v2, %v3577_v17 }
 0x195   : > { %v1838_v4 = vadd.f32 %v1813_v50, %v1616_v45 }
 0x197   : > { %v2044_v46 = vadd.f32 %v2019_v43, %v1838_v4 }
 0x199   : > { %v2091_v6 = vadd.f32 %v2090_v42, %v2044_v46  ;;  %v2113_v9 = vmul.f32 %v2044_v46, %v2044_v46  ;;  %v2021_v21 = vpop.f32.mrf.mxu0 }
 0x19a   : > { %v1593_v13 = vpop.f32.mrf.mxu2 }
 0x19b   : > { %v2128_v57 = vadd.f32 %v2127_v0, %v2113_v9  ;;  %v1617_v16 = vadd.f32 %v1593_v13, %v1463_v12  ;;  %v1442_v60 = vpop.f32.mrf.mxu1 }
 0x19c   : > { %v1815_v14 = vpop.f32.mrf.mxu3  ;;  %v1464_v24 = vadd.f32 %v1442_v60, %v3592_v15 }
 0x19d   : > { %v1839_v11 = vadd.f32 %v1815_v14, %v1617_v16 }
 0x19f   : > { %v2045_v51 = vadd.f32 %v2021_v21, %v1839_v11 }
 0x1a1   : > { %v2742_v19 = vpack.c.bf16 %v2045_v51, %v2044_v46  ;;  %v2092_v39 = vadd.f32 %v2091_v6, %v2045_v51  ;;  %v2114_v22 = vmul.f32 %v2045_v51, %v2045_v51  ;;  %v2024_v26 = vpop.f32.mrf.mxu0 }
 0x1a2   : > { %v1596_v27 = vpop.f32.mrf.mxu2 }
 0x1a3   : > { %2758 = vst [vmem:[%s3619_s7 + $0x28] sm:$0xff] %v2742_v19   ;;  %v2129_v30 = vadd.f32 %v2128_v57, %v2114_v22  ;;  %v1618_v28 = vadd.f32 %v1596_v27, %v1464_v24  ;;  %v1444_v10 = vpop.f32.mrf.mxu1 }
 0x1a4   : > { %v1818_v17 = vpop.f32.mrf.mxu3  ;;  %v1465_v59 = vadd.f32 %v1444_v10, %v3602_v47 }
 0x1a5   : > { %v1840_v25 = vadd.f32 %v1818_v17, %v1618_v28 }
 0x1a7   : > { %v2046_v33 = vadd.f32 %v2024_v26, %v1840_v25 }
 0x1a9   : > { %v2093_v34 = vadd.f32 %v2092_v39, %v2046_v33  ;;  %v2115_v38 = vmul.f32 %v2046_v33, %v2046_v33  ;;  %v2026_v41 = vpop.f32.mrf.mxu0 }
 0x1aa   : > { %v1598_v23 = vpop.f32.mrf.mxu2 }
 0x1ab   : > { %v2130_v44 = vadd.f32 %v2129_v30, %v2115_v38  ;;  %v1619_v49 = vadd.f32 %v1598_v23, %v1465_v59  ;;  %v1447_v15 = vpop.f32.mrf.mxu1 }
 0x1ac   : > { %v1820_v36 = vpop.f32.mrf.mxu3  ;;  %v1466_v3 = vadd.f32 %v1447_v15, %v3607_v53 }
 0x1ad   : > { %v1841_v29 = vadd.f32 %v1820_v36, %v1619_v49 }
 0x1af   : > { %v2047_v48 = vadd.f32 %v2026_v41, %v1841_v29 }
 0x1b1   : > { %v2747_v37 = vpack.c.bf16 %v2047_v48, %v2046_v33  ;;  %v2094_v52 = vadd.f32 %v2093_v34, %v2047_v48  ;;  %v2116_v20 = vmul.f32 %v2047_v48, %v2047_v48  ;;  %v2029_v8 = vpop.f32.mrf.mxu0 }
 0x1b2   : > { %v1601_v40 = vpop.f32.mrf.mxu2 }
 0x1b3   : > { %2759 = vst [vmem:[%s3619_s7 + $0x30] sm:$0xff] %v2747_v37   ;;  %v2131_v55 = vadd.f32 %v2130_v44, %v2116_v20  ;;  %v1620_v56 = vadd.f32 %v1601_v40, %v1466_v3  ;;  %v1449_v7 = vpop.f32.mrf.mxu1 }
 0x1b4   : > { %v1823_v62 = vpop.f32.mrf.mxu3  ;;  %v1467_v58 = vadd.f32 %v1449_v7, %v3611_v35 }
 0x1b5   : > { %v1842_v47 = vadd.f32 %v1823_v62, %v1620_v56 }
 0x1b7   : > { %v2048_v31 = vadd.f32 %v2029_v8, %v1842_v47 }
 0x1b9   : > { %v2095_v1 = vadd.f32 %v2094_v52, %v2048_v31  ;;  %v2117_v61 = vmul.f32 %v2048_v31, %v2048_v31  ;;  %v2031_v53 = vpop.f32.mrf.mxu0 }
 0x1ba   : > { %v1603_v63 = vpop.f32.mrf.mxu2 }
 0x1bb   : > { %v2132_v42 = vadd.f32 %v2131_v55, %v2117_v61  ;;  %v1621_v5 = vadd.f32 %v1603_v63, %v1467_v58 }
 0x1bc   : > { %v1825_v54 = vpop.f32.mrf.mxu3 }
 0x1bd   : > { %v1843_v43 = vadd.f32 %v1825_v54, %v1621_v5 }
 0x1bf   : > { %v2049_v32 = vadd.f32 %v2031_v53, %v1843_v43 }
 0x1c1   : > { %v2752_v0 = vpack.c.bf16 %v2049_v32, %v2048_v31  ;;  %v2096_v45 = vadd.f32 %v2095_v1, %v2049_v32  ;;  %v2118_v2 = vmul.f32 %v2049_v32, %v2049_v32 }
 0x1c3   : > { %2760 = vst [vmem:[%s3619_s7 + $0x38] sm:$0xff] %v2752_v0   ;;  %v2097_v50 = vrot.slane %v2096_v45, 4  ;;  %v2133_v4 = vadd.f32 %v2132_v42, %v2118_v2 }
 0x1c5   : > { %v2098_v46 = vadd.f32 %v2097_v50, %v2096_v45  ;;  %v2134_v6 = vrot.slane %v2133_v4, 4 }
 0x1c7   : > { %v2099_v9 = vrot.slane %v2098_v46, 2  ;;  %v2135_v12 = vadd.f32 %v2134_v6, %v2133_v4 }
 0x1c9   : > { %v2100_v21 = vadd.f32 %v2099_v9, %v2098_v46  ;;  %v2136_v13 = vrot.slane %v2135_v12, 2 }
 0x1cb   : > { %v2101_v35 = vrot.slane %v2100_v21, 1  ;;  %v2137_v57 = vadd.f32 %v2136_v13, %v2135_v12  ;;  %2143 = sbr.rel (%p2686_p7) target bundleno = 468 (0x1d4), region = 32 }
 0x1cd   : > { %v2102_v16 = vadd.f32 %v2101_v35, %v2100_v21  ;;  %v2138_v60 = vrot.slane %v2137_v57, 1 }
 0x1cf   : > { %v2139_v14 = vadd.f32 %v2138_v60, %v2137_v57 }
 0x1d0   : > { %vm2146_vm7 = vcmask 24576   ;;  %v2846_v11 = vmov 0.0  }
 0x1d1   : > { %2144 = vst [vmem:[%s2936_s14] sm:$0x1] %v2846_v11 }
 0x1d2   : > { %2145 = vst [vmem:[%s2943_s17] sm:$0x1] %v2846_v11 }
 0x1d3   : > { %2147 = vst.msk [vmem:[%s2949_s27] sm:$0x1] %vm2146_vm7, %v2846_v11 }
 0x1d4 PF: > { %vm2156_vm8 = vcmask 24576  }
 0x1d8   : > { %v2148_v51 = vld [vmem:[%s2936_s14] sm:$0x1] }
 0x1d9   : > { %v2151_v19 = vld [vmem:[%s2943_s17] sm:$0x1]  ;;  %v2149_v22 = vadd.f32 %v2148_v51, %v2102_v16 }
 0x1da   : > { %v2154_v39 = vld [vmem:[%s2949_s27] sm:$0x1]  ;;  %v2152_v24 = vadd.f32 %v2151_v19, %v2139_v14 }
 0x1db   : > { %v2155_v26 = vadd.f32 %v2154_v39, %v3323_v18  ;;  %2150 = vst [vmem:[%s2936_s14] sm:$0x1] %v2149_v22 }
 0x1dc   : > { %2153 = vst [vmem:[%s2943_s17] sm:$0x1] %v2152_v24 }
 0x1dd   : > { %2157 = vst.msk [vmem:[%s2949_s27] sm:$0x1] %vm2156_vm8, %v2155_v26 }
 0x1de PF: > { %s16_s22 = sadd.s32 1, %s2844_s22   ;;  %s3679_s18 = smov %s2836_s20 }
 0x1df   : > { %p13_p8 = scmp.ge.s32.totalorder %s16_s22, 6   ;;  %s3680_s19 = smov %s2840_s21 }
 0x1e0   : > { %s3681_s20 = smov %s3684_s23  ;;  %s3682_s21 = smov %s3688_s24 }
 0x1e1   :  { %15 = sbr.rel (!%p13_p8) target bundleno = 3 (0x3), region = 109 }

</bundles_post_ra>
